<compile_context>
chip_gen: v6e
topology: v6e:2x2x1
jax: 0.10.0
libtpu: 0.0.40
codegen_flags: <defaults>
</compile_context>

<pallas_src>
import jax
import jax.numpy as jnp
from jax.experimental import pallas as pl
from jax.experimental.pallas import tpu as pltpu

EPS = 1e-5


def _disentangler_kernel(
    x_ref,      # [B, D_in]   bfloat16 (one group)
    w1_ref,     # [D_in, H]   bfloat16 (pre-transposed Linear weight, resident)
    gb1_ref,    # [2, H]      float32  (row 0 = gamma1, row 1 = beta1)
    w2_ref,     # [H, F]      bfloat16 (resident)
    gb2_ref,    # [2, F]      float32  (row 0 = gamma2, row 1 = beta2)
    o_ref,      # [B, F]      float32
):
    # ---- layer 1: Linear (bias cancelled by BN mean) -> BN -> ReLU --------
    h = jnp.dot(x_ref[...], w1_ref[...], preferred_element_type=jnp.float32)
    mu = jnp.mean(h, axis=0, keepdims=True)
    var = jnp.maximum(jnp.mean(h * h, axis=0, keepdims=True) - mu * mu, 0.0)
    scale1 = gb1_ref[0:1, :] * jax.lax.rsqrt(var + EPS)       # [1, H]
    shift1 = gb1_ref[1:2, :] - mu * scale1                    # [1, H]
    h = jnp.maximum(h * scale1 + shift1, 0.0)                 # single FMA pass

    # ---- layer 2: Linear -> BN -> ReLU -------------------------------------
    y = jnp.dot(h.astype(jnp.bfloat16), w2_ref[...],
                preferred_element_type=jnp.float32)
    mu2 = jnp.mean(y, axis=0, keepdims=True)
    var2 = jnp.maximum(jnp.mean(y * y, axis=0, keepdims=True) - mu2 * mu2, 0.0)
    scale2 = gb2_ref[0:1, :] * jax.lax.rsqrt(var2 + EPS)      # [1, F]
    shift2 = gb2_ref[1:2, :] - mu2 * scale2                   # [1, F]
    o_ref[...] = jnp.maximum(y * scale2 + shift2, 0.0).astype(o_ref.dtype)


def disentangler_forward(x, params):
    """x: [B, 1024] or [G, B, 1024] float32/bf16.

    Each group of B rows gets its own training-mode BN statistics (G
    independent `Disentangler.forward` calls fused into one pallas_call so
    the weights are DMA'd once).  Returns float32 of matching leading shape.
    """
    squeeze = (x.ndim == 2)
    if squeeze:
        x = x[None]
    G, B, d_in = x.shape
    hidden = params["w1t"].shape[1]
    f_dims = params["w2t"].shape[1]

    # Activation traffic in bf16 (producer-side cast).
    xb = x.astype(jnp.bfloat16)

    flops = G * 2 * B * (d_in * hidden + hidden * f_dims)
    bytes_accessed = (
        params["w1t"].size * 2 + params["w2t"].size * 2     # bf16 weights (once)
        + xb.size * 2                                       # bf16 activations
        + G * B * f_dims * 4                                # f32 output
        + 2 * (hidden + f_dims) * 4                         # packed gamma/beta
    )

    out = pl.pallas_call(
        _disentangler_kernel,
        out_shape=jax.ShapeDtypeStruct((G, B, f_dims), jnp.float32),
        grid=(G,),
        in_specs=[
            # per-group activations
            pl.BlockSpec((None, B, d_in), lambda g: (g, 0, 0)),
            # weights + packed BN affine: constant block index -> fetched once
            pl.BlockSpec((d_in, hidden), lambda g: (0, 0)),
            pl.BlockSpec((2, hidden), lambda g: (0, 0)),
            pl.BlockSpec((hidden, f_dims), lambda g: (0, 0)),
            pl.BlockSpec((2, f_dims), lambda g: (0, 0)),
        ],
        out_specs=pl.BlockSpec((None, B, f_dims), lambda g: (g, 0, 0)),
        compiler_params=pltpu.CompilerParams(
            dimension_semantics=("parallel",),   # groups are independent
            vmem_limit_bytes=16 << 20,
        ),
        cost_estimate=pl.CostEstimate(
            flops=flops,
            transcendentals=G * (hidden + f_dims),   # two rsqrt vectors/group
            bytes_accessed=bytes_accessed,
        ),
    )(xb, params["w1t"], params["gb1"], params["w2t"], params["gb2"])

    return out[0] if squeeze else out


def init_params(key, f_dims=512, d_in=1024, hidden=1024):
    """Deterministic synthetic parameters matching the module's shapes."""
    k1, k2, k3, k4, k5, k6, k7, k8 = jax.random.split(key, 8)
    # nn.Linear stores weight as [out, in]; pre-transpose to [in, out] and
    # store in bf16 (the MXU operand dtype) to halve HBM weight traffic.
    w1 = jax.random.normal(k1, (hidden, d_in), jnp.float32) * 0.02
    b1 = jax.random.normal(k2, (hidden,), jnp.float32) * 0.01
    w2 = jax.random.normal(k3, (f_dims, hidden), jnp.float32) * 0.02
    b2 = jax.random.normal(k4, (f_dims,), jnp.float32) * 0.01
    # Non-default BN affine so the test actually exercises gamma/beta.
    g1 = 1.0 + 0.1 * jax.random.normal(k5, (hidden,), jnp.float32)
    be1 = 0.1 * jax.random.normal(k6, (hidden,), jnp.float32)
    g2 = 1.0 + 0.1 * jax.random.normal(k7, (f_dims,), jnp.float32)
    be2 = 0.1 * jax.random.normal(k8, (f_dims,), jnp.float32)
    return {
        "w1t": w1.T.astype(jnp.bfloat16),                    # [d_in, hidden] bf16
        "w2t": w2.T.astype(jnp.bfloat16),                    # [hidden, f_dims] bf16
        "gb1": jnp.stack([g1, be1]),                         # [2, hidden] f32
        "gb2": jnp.stack([g2, be2]),                         # [2, f_dims] f32
        "b1": b1.reshape(1, hidden),                         # reference only
        "b2": b2.reshape(1, f_dims),                         # reference only
    }


def _reference_forward(x, p):
    """Plain-JAX reference of the PyTorch forward (training-mode BN) for one
    group.  Weights are upcast from the same bf16 values the kernel consumes
    and the activations get the same bf16 cast before each matmul, so any
    mismatch is a genuine kernel bug rather than dtype noise.  The Linear
    biases are included here to demonstrate the BN mean cancels them."""
    hp = jax.lax.Precision.HIGHEST
    w1 = p["w1t"].astype(jnp.float32)
    w2 = p["w2t"].astype(jnp.float32)
    g1, be1 = p["gb1"][0:1], p["gb1"][1:2]
    g2, be2 = p["gb2"][0:1], p["gb2"][1:2]

    xq = x.astype(jnp.bfloat16).astype(jnp.float32)
    h = jnp.dot(xq, w1, precision=hp) + p["b1"]
    mu, var = h.mean(0, keepdims=True), h.var(0, keepdims=True)   # biased var
    h = jnp.maximum((h - mu) * jax.lax.rsqrt(var + EPS) * g1 + be1, 0.0)

    hq = h.astype(jnp.bfloat16).astype(jnp.float32)
    y = jnp.dot(hq, w2, precision=hp) + p["b2"]
    mu2, var2 = y.mean(0, keepdims=True), y.var(0, keepdims=True)
    return jnp.maximum((y - mu2) * jax.lax.rsqrt(var2 + EPS) * g2 + be2, 0.0)


if __name__ == "__main__":
    key = jax.random.PRNGKey(0)
    kx, kp = jax.random.split(key)

    # Feature dims are fixed by the module (1024 -> 1024 -> f_dims);
    # keep the batch small: G=2 independent BN groups of B=8 rows each.
    G, B, D_IN, F_DIMS = 2, 8, 1024, 512
    x = jax.random.normal(kx, (G, B, D_IN), jnp.float32)
    params = init_params(kp, f_dims=F_DIMS)

    out = disentangler_forward(x, params)
    out = jax.block_until_ready(out)
    assert out.shape == (G, B, F_DIMS)

    ref = jnp.stack([_reference_forward(x[g], params) for g in range(G)])
    err = float(jnp.max(jnp.abs(out - ref)))
    assert jnp.allclose(out, ref, atol=5e-3, rtol=5e-3), err

    # 2-D (single-group) path, matching the original module signature.
    out1 = jax.block_until_ready(disentangler_forward(x[0], params))
    assert out1.shape == (B, F_DIMS)
    assert jnp.allclose(out1, ref[0], atol=5e-3, rtol=5e-3), (
        float(jnp.max(jnp.abs(out1 - ref[0]))))

    print("KERNEL_OK")
</pallas_src>

<mosaic_0001>
module attributes {stable_mosaic.version = 11 : i64} {
  func.func @_disentangler_kernel(%arg0: i32, %arg1: memref<1x8x1024xbf16, #tpu.memory_space<vmem>>, %arg2: memref<1024x1024xbf16, #tpu.memory_space<vmem>>, %arg3: memref<2x1024xf32, #tpu.memory_space<vmem>>, %arg4: memref<1024x512xbf16, #tpu.memory_space<vmem>>, %arg5: memref<2x512xf32, #tpu.memory_space<vmem>>, %arg6: memref<1x8x512xf32, #tpu.memory_space<vmem>>) attributes {dimension_semantics = [#tpu.dimension_semantics<parallel>], iteration_bounds = array<i64: 2>, scalar_prefetch = 0 : i64, scratch_operands = 0 : i64, tpu.core_type = #tpu.core_type<tc>, window_params = [{transform_indices = @transform_0, window_bounds = array<i64: 1, 8, 1024>}, {pipeline_mode = #tpu.pipeline_mode<synchronous>, transform_indices = @transform_1, window_bounds = array<i64: 1024, 1024>}, {pipeline_mode = #tpu.pipeline_mode<synchronous>, transform_indices = @transform_2, window_bounds = array<i64: 2, 1024>}, {pipeline_mode = #tpu.pipeline_mode<synchronous>, transform_indices = @transform_3, window_bounds = array<i64: 1024, 512>}, {pipeline_mode = #tpu.pipeline_mode<synchronous>, transform_indices = @transform_4, window_bounds = array<i64: 2, 512>}, {transform_indices = @transform_5, window_bounds = array<i64: 1, 8, 512>}]} {
    %c0 = arith.constant 0 : index
    %c0_0 = arith.constant 0 : index
    %c0_1 = arith.constant 0 : index
    %0 = vector.load %arg1[%c0, %c0_0, %c0_1] : memref<1x8x1024xbf16, #tpu.memory_space<vmem>>, vector<1x8x1024xbf16>
    %1 = vector.shape_cast %0 : vector<1x8x1024xbf16> to vector<8x1024xbf16>
    %c0_2 = arith.constant 0 : index
    %c0_3 = arith.constant 0 : index
    %2 = vector.load %arg2[%c0_2, %c0_3] : memref<1024x1024xbf16, #tpu.memory_space<vmem>>, vector<1024x1024xbf16>
    %cst = arith.constant dense<0.000000e+00> : vector<8x1024xf32>
    %3 = tpu.matmul %1, %2, %cst {dimension_numbers = #tpu.dot_dimension_numbers<[1], [0], [0], [1], [0, 0, 1, 1], [], []>} : vector<8x1024xbf16>, vector<1024x1024xbf16>, vector<8x1024xf32> -> vector<8x1024xf32>
    %cst_4 = arith.constant dense<0.000000e+00> : vector<1024xf32>
    %4 = vector.multi_reduction <add>, %3, %cst_4 [0] : vector<8x1024xf32> to vector<1024xf32>
    %5 = vector.shape_cast %4 : vector<1024xf32> to vector<1x1024xf32>
    %cst_5 = arith.constant 8.000000e+00 : f32
    %6 = vector.broadcast %cst_5 : f32 to vector<1x1024xf32>
    %7 = arith.divf %5, %6 : vector<1x1024xf32>
    %8 = arith.mulf %3, %3 : vector<8x1024xf32>
    %cst_6 = arith.constant dense<0.000000e+00> : vector<1024xf32>
    %9 = vector.multi_reduction <add>, %8, %cst_6 [0] : vector<8x1024xf32> to vector<1024xf32>
    %10 = vector.shape_cast %9 : vector<1024xf32> to vector<1x1024xf32>
    %cst_7 = arith.constant 8.000000e+00 : f32
    %11 = vector.broadcast %cst_7 : f32 to vector<1x1024xf32>
    %12 = arith.divf %10, %11 : vector<1x1024xf32>
    %13 = arith.mulf %7, %7 : vector<1x1024xf32>
    %14 = arith.subf %12, %13 : vector<1x1024xf32>
    %cst_8 = arith.constant 0.000000e+00 : f32
    %15 = vector.broadcast %cst_8 : f32 to vector<1x1024xf32>
    %16 = arith.maximumf %14, %15 : vector<1x1024xf32>
    %c0_9 = arith.constant 0 : index
    %c0_10 = arith.constant 0 : index
    %17 = vector.load %arg3[%c0_9, %c0_10] : memref<2x1024xf32, #tpu.memory_space<vmem>>, vector<1x1024xf32>
    %cst_11 = arith.constant 9.99999974E-6 : f32
    %18 = vector.broadcast %cst_11 : f32 to vector<1x1024xf32>
    %19 = arith.addf %16, %18 : vector<1x1024xf32>
    %20 = math.rsqrt %19 : vector<1x1024xf32>
    %21 = arith.mulf %17, %20 : vector<1x1024xf32>
    %c1 = arith.constant 1 : index
    %c0_12 = arith.constant 0 : index
    %22 = vector.load %arg3[%c1, %c0_12] : memref<2x1024xf32, #tpu.memory_space<vmem>>, vector<1x1024xf32>
    %23 = arith.mulf %7, %21 : vector<1x1024xf32>
    %24 = arith.subf %22, %23 : vector<1x1024xf32>
    %25 = vector.broadcast %21 : vector<1x1024xf32> to vector<8x1024xf32>
    %26 = arith.mulf %3, %25 : vector<8x1024xf32>
    %27 = vector.broadcast %24 : vector<1x1024xf32> to vector<8x1024xf32>
    %28 = arith.addf %26, %27 : vector<8x1024xf32>
    %cst_13 = arith.constant 0.000000e+00 : f32
    %29 = vector.broadcast %cst_13 : f32 to vector<8x1024xf32>
    %30 = arith.maximumf %28, %29 : vector<8x1024xf32>
    %31 = arith.truncf %30 : vector<8x1024xf32> to vector<8x1024xbf16>
    %c0_14 = arith.constant 0 : index
    %c0_15 = arith.constant 0 : index
    %32 = vector.load %arg4[%c0_14, %c0_15] : memref<1024x512xbf16, #tpu.memory_space<vmem>>, vector<1024x512xbf16>
    %cst_16 = arith.constant dense<0.000000e+00> : vector<8x512xf32>
    %33 = tpu.matmul %31, %32, %cst_16 {dimension_numbers = #tpu.dot_dimension_numbers<[1], [0], [0], [1], [0, 0, 1, 1], [], []>} : vector<8x1024xbf16>, vector<1024x512xbf16>, vector<8x512xf32> -> vector<8x512xf32>
    %cst_17 = arith.constant dense<0.000000e+00> : vector<512xf32>
    %34 = vector.multi_reduction <add>, %33, %cst_17 [0] : vector<8x512xf32> to vector<512xf32>
    %35 = vector.shape_cast %34 : vector<512xf32> to vector<1x512xf32>
    %cst_18 = arith.constant 8.000000e+00 : f32
    %36 = vector.broadcast %cst_18 : f32 to vector<1x512xf32>
    %37 = arith.divf %35, %36 : vector<1x512xf32>
    %38 = arith.mulf %33, %33 : vector<8x512xf32>
    %cst_19 = arith.constant dense<0.000000e+00> : vector<512xf32>
    %39 = vector.multi_reduction <add>, %38, %cst_19 [0] : vector<8x512xf32> to vector<512xf32>
    %40 = vector.shape_cast %39 : vector<512xf32> to vector<1x512xf32>
    %cst_20 = arith.constant 8.000000e+00 : f32
    %41 = vector.broadcast %cst_20 : f32 to vector<1x512xf32>
    %42 = arith.divf %40, %41 : vector<1x512xf32>
    %43 = arith.mulf %37, %37 : vector<1x512xf32>
    %44 = arith.subf %42, %43 : vector<1x512xf32>
    %cst_21 = arith.constant 0.000000e+00 : f32
    %45 = vector.broadcast %cst_21 : f32 to vector<1x512xf32>
    %46 = arith.maximumf %44, %45 : vector<1x512xf32>
    %c0_22 = arith.constant 0 : index
    %c0_23 = arith.constant 0 : index
    %47 = vector.load %arg5[%c0_22, %c0_23] : memref<2x512xf32, #tpu.memory_space<vmem>>, vector<1x512xf32>
    %cst_24 = arith.constant 9.99999974E-6 : f32
    %48 = vector.broadcast %cst_24 : f32 to vector<1x512xf32>
    %49 = arith.addf %46, %48 : vector<1x512xf32>
    %50 = math.rsqrt %49 : vector<1x512xf32>
    %51 = arith.mulf %47, %50 : vector<1x512xf32>
    %c1_25 = arith.constant 1 : index
    %c0_26 = arith.constant 0 : index
    %52 = vector.load %arg5[%c1_25, %c0_26] : memref<2x512xf32, #tpu.memory_space<vmem>>, vector<1x512xf32>
    %53 = arith.mulf %37, %51 : vector<1x512xf32>
    %54 = arith.subf %52, %53 : vector<1x512xf32>
    %55 = vector.broadcast %51 : vector<1x512xf32> to vector<8x512xf32>
    %56 = arith.mulf %33, %55 : vector<8x512xf32>
    %57 = vector.broadcast %54 : vector<1x512xf32> to vector<8x512xf32>
    %58 = arith.addf %56, %57 : vector<8x512xf32>
    %cst_27 = arith.constant 0.000000e+00 : f32
    %59 = vector.broadcast %cst_27 : f32 to vector<8x512xf32>
    %60 = arith.maximumf %58, %59 : vector<8x512xf32>
    %c0_28 = arith.constant 0 : index
    %c0_29 = arith.constant 0 : index
    %c0_30 = arith.constant 0 : index
    %61 = vector.load %arg6[%c0_28, %c0_29, %c0_30] : memref<1x8x512xf32, #tpu.memory_space<vmem>>, vector<1x8x512xf32>
    %62 = vector.shape_cast %61 : vector<1x8x512xf32> to vector<8x512xf32>
    %63 = vector.shape_cast %60 : vector<8x512xf32> to vector<1x8x512xf32>
    tpu.vector_store %arg6[%c0_28, %c0_29, %c0_30], %63 {strides = array<i32>} : memref<1x8x512xf32, #tpu.memory_space<vmem>>, vector<1x8x512xf32>,
    return
  }
  func.func @transform_0(%arg0: i32) -> (i32, i32, i32) {
    %c0_i32 = arith.constant 0 : i32
    %c0_i32_0 = arith.constant 0 : i32
    %c0_i32_1 = arith.constant 0 : i32
    return %arg0, %c0_i32, %c0_i32_0 : i32, i32, i32
  }
  func.func @transform_1(%arg0: i32) -> (i32, i32) {
    %c0_i32 = arith.constant 0 : i32
    %c0_i32_0 = arith.constant 0 : i32
    %c0_i32_1 = arith.constant 0 : i32
    return %c0_i32, %c0_i32_0 : i32, i32
  }
  func.func @transform_2(%arg0: i32) -> (i32, i32) {
    %c0_i32 = arith.constant 0 : i32
    %c0_i32_0 = arith.constant 0 : i32
    %c0_i32_1 = arith.constant 0 : i32
    return %c0_i32, %c0_i32_0 : i32, i32
  }
  func.func @transform_3(%arg0: i32) -> (i32, i32) {
    %c0_i32 = arith.constant 0 : i32
    %c0_i32_0 = arith.constant 0 : i32
    %c0_i32_1 = arith.constant 0 : i32
    return %c0_i32, %c0_i32_0 : i32, i32
  }
  func.func @transform_4(%arg0: i32) -> (i32, i32) {
    %c0_i32 = arith.constant 0 : i32
    %c0_i32_0 = arith.constant 0 : i32
    %c0_i32_1 = arith.constant 0 : i32
    return %c0_i32, %c0_i32_0 : i32, i32
  }
  func.func @transform_5(%arg0: i32) -> (i32, i32, i32) {
    %c0_i32 = arith.constant 0 : i32
    %c0_i32_0 = arith.constant 0 : i32
    %c0_i32_1 = arith.constant 0 : i32
    return %arg0, %c0_i32, %c0_i32_0 : i32, i32, i32
  }
}

</mosaic_0001>

<bundles_post_ra>
// kernel: tpu_custom_call.1
= control target key start
LH: loop header
LB: loop body
LE: loop exit
PB: predicated region body
PF: predicated region fallthrough
CT: control target
= control target key end

     0   :  { %10 = vsyncpa [#allocation3], 0  ;;  %s8774_s0 = inlined_call_operand.hbm [shape: bf16[2,8,1024], index: 0, kind: input, shape index: {}]   ;;  %s8775_s1 = inlined_call_operand.hbm [shape: bf16[1024,1024], index: 1, kind: input, shape index: {}]   ;;  %s8776_s2 = inlined_call_operand.hbm [shape: f32[2,1024], index: 2, kind: input, shape index: {}]   ;;  %s8777_s3 = inlined_call_operand.hbm [shape: bf16[1024,512], index: 3, kind: input, shape index: {}]   ;;  %s8778_s4 = inlined_call_operand.hbm [shape: f32[2,512], index: 4, kind: input, shape index: {}]   ;;  %s8779_s5 = inlined_call_operand.hbm [shape: f32[2,8,512], index: 5, kind: output, shape index: {}]  }
   0x1   :  { %12 = vsyncpa [#allocation3 + $0x1], 0 }
   0x2   :  { %13 = vsyncpa [#allocation6], 0 }
   0x3   :  { %14 = vsyncpa [#allocation9], 0 }
   0x4   :  { %15 = vsyncpa [#allocation4], 0 }
   0x5   :  { %17 = vsyncpa [#allocation4 + $0x1], 0  ;;  %s8206_s18 = smov 0   ;;  %s8208_s19 = smov 0  }
   0x6   :  { %s8210_s20 = smov 0   ;;  %s8212_s21 = smov 0  }
   0x7 LB: > { %s8165_s22 = smov [#allocation5]   ;;  %s8227_s24 = sadd.s32 4294967295, %s8163_s21   ;;  %s8163_s21 = sphi %s8212_s21, %s8803_s21   ;;  %s8159_s20 = sphi %s8210_s20, %s8802_s20   ;;  %s8155_s19 = sphi %s8208_s19, %s8801_s19   ;;  %s8151_s18 = sphi %s8206_s18, %s8800_s18  }
   0x8   : > { %s176_s23 = sshll.u32 %s8165_s22, 4  ;;  %p6652_p0 = scmp.ge.s32.totalorder %s8163_s21, 1  ;;  %s177_s23 = int_to_ptr.vmem [resolvable:$true] %s176_s23 }
   0x9   : > { %p8780_p1 = scmp.eq.s32.totalorder %s8227_s24, 0  ;;  %p164_p2 = scmp.lt.s32.totalorder %s8163_s21, 3 }
   0xa   : > { %s8166_s26 = smov [#allocation8]   ;;  %s8167_s29 = smov [#allocation7]  }
   0xb   : > { %p8232_p3 = pnand %p6652_p0, %p164_p2  ;;  %s200_s27 = sshll.u32 %s8166_s26, 4  ;;  %s8245_s27 = int_to_ptr.vmem [resolvable:$true] %s200_s27 }
   0xc   : > { %s8247_s30 = sshll.u32 %s8167_s29, 4  ;;  %s7970_s6 = scalar_lea.vmem %s177_s23, 65536  ;;  %s191_s30 = int_to_ptr.vmem [resolvable:$true] %s8247_s30 }
   0xd   : > { %s8784_s25 = scalar_select %p8232_p3, 1, 0 }
   0xe   : > { %p7471_p5 = pneg %p8232_p3  ;;  %p7971_p8 = scmp.ne.s32.totalorder %s177_s23, %s7970_s6 }
   0xf   : > { %p7978_p11 = scmp.lt.s32.totalorder %s177_s23, %s177_s23  ;;  %p7979_p12 = scmp.lt.s32.totalorder %s7970_s6, %s7970_s6 }
  0x10   : > { %p8241_p6 = pnand %p7471_p5, %p8780_p1 }
  0x11   : > { %p7980_p13 = por %p7979_p12, %p7978_p11 }
  0x12   : > { %p7961_p7 = pneg %p8241_p6 }
  0x14   : > { %p7973_p9 = pnand %p7971_p8, %p7961_p7 }
  0x16   : > { %p7974_p10 = pneg %p7973_p9 }
  0x18   : > { %p7981_p0 = pnand %p7980_p13, %p7974_p10 }
  0x1a   : > { %7984 = shalt.err (!%p7981_p0)
}
  0x1b   : > { %s8168_s7 = smov 512   ;;  %s8169_s8 = smov 32  }
  0x1c   : > { %7474 = dma.hbm_to_vmem [thread:$0]  (!%p8241_p6), %s8775_s1, 65536, %s177_s23, [#allocation6], %s8168_s7, %s8168_s7, %s8169_s8  }
  0x1d   : > { %s7996_s11 = scalar_lea.vmem %s8245_s27, 32768  ;;  %p8004_p9 = scmp.lt.s32.totalorder %s8245_s27, %s8245_s27 }
  0x1e   : > { %p7997_p2 = scmp.ne.s32.totalorder %s8245_s27, %s7996_s11  ;;  %p8005_p10 = scmp.lt.s32.totalorder %s7996_s11, %s7996_s11 }
  0x20   : > { %p7999_p5 = pnand %p7997_p2, %p7961_p7  ;;  %p8006_p11 = por %p8005_p10, %p8004_p9 }
  0x22   : > { %p8000_p8 = pneg %p7999_p5 }
  0x24   : > { %p8007_p12 = pnand %p8006_p11, %p8000_p8 }
  0x26   : > { %8010 = shalt.err (!%p8007_p12)
}
  0x27   : > { %s8170_s12 = smov 256   ;;  %s8171_s13 = smov 16  }
  0x28   : > { %7480 = dma.hbm_to_vmem [thread:$0]  (!%p8241_p6), %s8777_s3, 32768, %s8245_s27, [#allocation9], %s8170_s12, %s8170_s12, %s8171_s13  }
  0x29   : > { %s8022_s16 = scalar_lea.vmem %s191_s30, 256  ;;  %p8030_p5 = scmp.lt.s32.totalorder %s191_s30, %s191_s30 }
  0x2a   : > { %p8023_p13 = scmp.ne.s32.totalorder %s191_s30, %s8022_s16  ;;  %p8031_p8 = scmp.lt.s32.totalorder %s8022_s16, %s8022_s16 }
  0x2c   : > { %p8025_p0 = pnand %p8023_p13, %p7961_p7  ;;  %p8032_p9 = por %p8031_p8, %p8030_p5 }
  0x2e   : > { %p8026_p2 = pneg %p8025_p0 }
  0x30   : > { %p8033_p10 = pnand %p8032_p9, %p8026_p2 }
  0x32   : > { %8036 = shalt.err (!%p8033_p10)
}
  0x33   : > { %7477 = dma.hbm_to_vmem [thread:$0]  (!%p8241_p6), %s8776_s2, 256, %s191_s30, [#allocation6]  }
  0x34   : > { %s8172_s23 = smov [#allocation10]  }
  0x35   : > { %s214_s26 = sshll.u32 %s8172_s23, 4  ;;  %s215_s26 = int_to_ptr.vmem [resolvable:$true] %s214_s26 }
  0x36   : > { %s8048_s27 = scalar_lea.vmem %s215_s26, 128  ;;  %p8056_p0 = scmp.lt.s32.totalorder %s215_s26, %s215_s26 }
  0x37   : > { %p8049_p11 = scmp.ne.s32.totalorder %s215_s26, %s8048_s27  ;;  %p8057_p5 = scmp.lt.s32.totalorder %s8048_s27, %s8048_s27 }
  0x39   : > { %p8051_p12 = pnand %p8049_p11, %p7961_p7  ;;  %p8058_p2 = por %p8057_p5, %p8056_p0 }
  0x3b   : > { %p8052_p13 = pneg %p8051_p12 }
  0x3d   : > { %p8059_p8 = pnand %p8058_p2, %p8052_p13 }
  0x3f   : > { %8062 = shalt.err (!%p8059_p8)
}
  0x40   : > { %7483 = dma.hbm_to_vmem [thread:$0]  (!%p8241_p6), %s8778_s4, 128, %s215_s26, [#allocation9]  }
  0x41   : > { %s6651_s30 = sadd.s32 4294967294, %s8163_s21   ;;  %s8291_s28 = sadd.s32 1, %s8163_s21  }
  0x42   : > { %s27_s7 = ssub.s32 %s8163_s21, %s8291_s28  ;;  %s30_s8 = sadd.s32 1, %s8159_s20 }
  0x43   : > { %p28_p7 = scmp.eq.s32.totalorder %s27_s7, 0  ;;  %p37_p9 = scmp.ne.s32.totalorder %s8159_s20, %s8155_s19 }
  0x44   : > { %p38_p10 = scmp.eq.s32.totalorder %s8163_s21, 0  ;;  %p43_p11 = scmp.ne.s32.totalorder %s8155_s19, %s8151_s18 }
  0x45   : > { %s8302_s9 = scalar_select %p28_p7, %s8159_s20, %s30_s8  }
  0x46   : > { %p8304_p12 = por %p38_p10, %p37_p9  ;;  %p8310_p6 = por %p8780_p1, %p43_p11 }
  0x47   : > { %p151_p13 = scmp.eq.s32.totalorder %s8227_s24, 1  ;;  %p157_p0 = scmp.eq.s32.totalorder %s6651_s30, 1 }
  0x48   : > { %s8787_s11 = scalar_select %p8310_p6, 1, 0 }
  0x49   : > { %p7496_p5 = scmp.lt.s32.totalorder %s8163_s21, 2  ;;  %s225_s12 = sand.u32 1, %s8159_s20  }
  0x4a   : > { %p8317_p2 = por %p151_p13, %p37_p9  ;;  %p8321_p8 = por %p157_p0, %p43_p11 }
  0x4b   : > { %s6658_s15 = sshll.u32 %s225_s12, 5  ;;  %s7449_s16 = sshll.u32 %s8163_s21, 9 }
  0x4c   : > { %s8788_s13 = scalar_select %p8317_p2, 1, 0 }
  0x4d   : > { %s8789_s14 = scalar_select %p8321_p8, 1, 0 }
  0x4e   : > { %s8329_s23 = scalar_lea.hbm %s8774_s0, %s7449_s16  ;;  %s229_s26 = scalar_lea.vmem [#allocation2], %s6658_s15 }
  0x4f   : > { %s237_s27 = sshll.u32 %s229_s26, 4  ;;  %p8333_p7 = pnand %p7496_p5, %p8304_p12  ;;  %s238_s27 = int_to_ptr.vmem [resolvable:$true] %s237_s27 }
  0x50   : > { %s226_s6 = scalar_lea.sflag [#allocation3], %s225_s12  ;;  %s8063_s30 = scalar_lea.hbm %s8329_s23, 512 }
  0x51   : > { %p8064_p9 = scmp.ne.s32.totalorder %s8329_s23, %s8063_s30  ;;  %p8065_p10 = pneg %p8333_p7 }
  0x52   : > { %s8068_s16 = scalar_lea.hbm %s8774_s0, 1024  ;;  %p8069_p0 = scmp.lt.s32.totalorder %s8329_s23, %s8774_s0 }
  0x53   : > { %p8066_p11 = pnand %p8065_p10, %p8064_p9  ;;  %p8070_p12 = scmp.lt.s32.totalorder %s8068_s16, %s8063_s30 }
  0x55   : > { %p8067_p13 = pneg %p8066_p11  ;;  %p8071_p5 = por %p8070_p12, %p8069_p0 }
  0x57   : > { %p8072_p4 = pnand %p8071_p5, %p8067_p13 }
  0x59   : > { %8075 = shalt.err (!%p8072_p4)
}
  0x5a   : > { %s8076_s10 = scalar_lea.vmem %s238_s27, 512  ;;  %s8173_s12 = smov [#allocation2]  }
  0x5b   : > { %p8077_p1 = scmp.ne.s32.totalorder %s238_s27, %s8076_s10  ;;  %s8081_s22 = sshll.u32 %s8173_s12, 4  ;;  %s8082_s22 = int_to_ptr.vmem [resolvable:$false] %s8081_s22 }
  0x5c   : > { %s8083_s26 = scalar_lea.vmem %s8082_s22, 1024  ;;  %p8084_p9 = scmp.lt.s32.totalorder %s238_s27, %s8082_s22 }
  0x5d   : > { %p8079_p8 = pnand %p8077_p1, %p8065_p10  ;;  %p8085_p11 = scmp.lt.s32.totalorder %s8083_s26, %s8076_s10 }
  0x5f   : > { %p8080_p2 = pneg %p8079_p8  ;;  %p8086_p6 = por %p8085_p11, %p8084_p9 }
  0x61   : > { %p8087_p3 = pnand %p8086_p6, %p8080_p2 }
  0x63   : > { %8090 = shalt.err (!%p8087_p3)
}
  0x64   : > { %7487 = dma.hbm_to_vmem [thread:$0]  (!%p8333_p7), %s8329_s23, 512, %s238_s27, %s226_s6  }
  0x65   : > { %p8791_p13 = scmp.ne.s32.totalorder %s8784_s25, 0 }
  0x66   : > { %s8354_s30 = sand.u32 (!%p8791_p13), 1, %s8155_s19   ;;  %p8792_p1 = scmp.ne.s32.totalorder (!%p8791_p13), %s8787_s11, 0 }
  0x67   : > { %246 = sbr.rel (%p8791_p13) target bundleno = 1376 (0x560), region = 40  ;;  %s6662_s7 = sshll.u32 (!%p8791_p13), %s8354_s30, 5 }
  0x68   : > { %s249_s8 = scalar_lea.sflag (!%p8791_p13), [#allocation3], %s8354_s30  ;;  %s8360_s16 = scalar_lea.vmem (!%p8791_p13), [#allocation2], %s6662_s7 }
  0x6c   : > { %8134 = dma.done.wait (%p8792_p1), %s249_s8, 512  }
  0x6d   : > { %8136 = vsyncadd (%p8792_p1), %s249_s8, 4294966784  ;;  %p8793_p3 = scmp.eq.s32.totalorder %s8227_s24, 0 }
  0x6f   : > { %8138 = dma.done.wait (%p8793_p3), [#allocation6], 65792   ;;  %p8794_p4 = pmov %p8793_p3 }
  0x70   : > { %p8795_p6 = pmov %p8793_p3 }
  0x71   : > { %8140 = vsyncadd (%p8794_p4), [#allocation6], 4294901504 }
  0x72   : > { %8142 = dma.done.wait (%p8795_p6), [#allocation9], 32896   ;;  %p8796_p2 = pmov %p8793_p3 }
  0x73   : > { %v355_v0 = vld [vmem:[#allocation5 + $0x1c0] sm:$0xff]  ;;  %v8378_v54 = vld [vmem:[%s8360_s16 + $0x8] sm:$0xff]  ;;  %s7450_s25 = sshll.u32 %s8227_s24, 9  ;;  %s294_s11 = scalar_lea.vmem [#allocation11], %s6662_s7 }
  0x74   : > { %8144 = vsyncadd (%p8796_p2), [#allocation9], 4294934400  ;;  %v359_v1 = vld [vmem:[#allocation5 + $0x1e0] sm:$0xff]  ;;  %v8386_v59 = vcombine.high %v8378_v54, %v8378_v54  ;;  %s6543_s23 = sshll.u32 %s294_s11, 4  ;;  %s8731_s6 = scalar_lea.hbm %s8779_s5, %s7450_s25  ;;  %s8733_s23 = int_to_ptr.vmem [resolvable:$true] %s6543_s23 }
  0x75   : > { %v483_v2 = vld [vmem:[#allocation5 + $0x5c0] sm:$0xff]  ;;  %v6733_v3 = vcombine.high %v355_v0, %v359_v1  ;;  %v6732_v5 = vcombine.low %v355_v0, %v359_v1  ;;  %s6529_s24 = scalar_lea.sflag [#allocation4], %s8354_s30  ;;  %s8091_s15 = scalar_lea.vmem %s8733_s23, 512 }
  0x76   : > { %v487_v4 = vld [vmem:[#allocation5 + $0x5e0] sm:$0xff]  ;;  %3472 = vmatprep.mubr.bf16.mxu1 %v8386_v59  ;;  %p8092_p8 = scmp.ne.s32.totalorder %s8733_s23, %s8091_s15  ;;  %p8797_p7 = scmp.ne.s32.totalorder %s8788_s13, 0 }
  0x77   : > { %v347_v6 = vld [vmem:[#allocation5 + $0x180] sm:$0xff]  ;;  %v6861_v8 = vcombine.high %v483_v2, %v487_v4  ;;  %v6860_v9 = vcombine.low %v483_v2, %v487_v4  ;;  %3399 = vmatprep.subr.bf16.mxu0 %v6733_v3  ;;  %s8175_s17 = smov [#allocation11]  }
  0x78   : > { %v351_v7 = vld [vmem:[#allocation5 + $0x1a0] sm:$0xff]  ;;  %3400 = vmatpush1.bf16.msra.mxu0 %v6732_v5  ;;  %p8093_p10 = pnand %p8092_p8, %p8797_p7  ;;  %s8095_s10 = sshll.u32 %s8175_s17, 4  ;;  %s8096_s10 = int_to_ptr.vmem [resolvable:$false] %s8095_s10 }
  0x79   : > { %v6725_v10 = vcombine.high %v347_v6, %v351_v7  ;;  %v475_v11 = vld [vmem:[#allocation5 + $0x580] sm:$0xff]  ;;  %3440 = vmatprep.subr.bf16.mxu1 %v6861_v8  ;;  %v6724_v18 = vcombine.low %v347_v6, %v351_v7  ;;  %s8097_s12 = scalar_lea.vmem %s8096_s10, 1024  ;;  %p8098_p12 = scmp.lt.s32.totalorder %s8733_s23, %s8096_s10 }
  0x7a   : > { %v479_v12 = vld [vmem:[#allocation5 + $0x5a0] sm:$0xff]  ;;  %3441 = vmatpush1.bf16.msra.mxu1 %v6860_v9  ;;  %p8094_p0 = pneg %p8093_p10  ;;  %p8099_p5 = scmp.lt.s32.totalorder %s8097_s12, %s8091_s15 }
  0x7b   : > { %v339_v13 = vld [vmem:[#allocation5 + $0x140] sm:$0xff]  ;;  %v6853_v14 = vcombine.high %v475_v11, %v479_v12  ;;  %3401 = vmatprep.subr.bf16.mxu0 %v6725_v10  ;;  %v6852_v19 = vcombine.low %v475_v11, %v479_v12 }
  0x7c   : > { %v343_v15 = vld [vmem:[#allocation5 + $0x160] sm:$0xff]  ;;  %3402 = vmatpush1.bf16.msra.mxu0 %v6724_v18  ;;  %p8100_p9 = por %p8099_p5, %p8098_p12 }
  0x7d   : > { %v467_v16 = vld [vmem:[#allocation5 + $0x540] sm:$0xff]  ;;  %v6717_v20 = vcombine.high %v339_v13, %v343_v15  ;;  %3442 = vmatprep.subr.bf16.mxu1 %v6853_v14  ;;  %v6716_v26 = vcombine.low %v339_v13, %v343_v15 }
  0x7e   : > { %v471_v17 = vld [vmem:[#allocation5 + $0x560] sm:$0xff]  ;;  %3443 = vmatpush1.bf16.msra.mxu1 %v6852_v19  ;;  %p8101_p11 = pnand %p8100_p9, %p8094_p0 }
  0x7f   : > { %v6845_v21 = vcombine.high %v467_v16, %v471_v17  ;;  %v331_v22 = vld [vmem:[#allocation5 + $0x100] sm:$0xff]  ;;  %3403 = vmatprep.subr.bf16.mxu0 %v6717_v20  ;;  %v6844_v27 = vcombine.low %v467_v16, %v471_v17 }
  0x80   : > { %v335_v23 = vld [vmem:[#allocation5 + $0x120] sm:$0xff]  ;;  %3404 = vmatpush1.bf16.msra.mxu0 %v6716_v26 }
  0x81   : > { %v459_v24 = vld [vmem:[#allocation5 + $0x500] sm:$0xff]  ;;  %v6709_v28 = vcombine.high %v331_v22, %v335_v23  ;;  %3444 = vmatprep.subr.bf16.mxu1 %v6845_v21  ;;  %v6708_v34 = vcombine.low %v331_v22, %v335_v23 }
  0x82   : > { %v463_v25 = vld [vmem:[#allocation5 + $0x520] sm:$0xff]  ;;  %3445 = vmatpush1.bf16.msra.mxu1 %v6844_v27 }
  0x83   : > { %v6837_v29 = vcombine.high %v459_v24, %v463_v25  ;;  %v323_v30 = vld [vmem:[#allocation5 + $0xc0] sm:$0xff]  ;;  %3405 = vmatprep.subr.bf16.mxu0 %v6709_v28  ;;  %v6836_v35 = vcombine.low %v459_v24, %v463_v25 }
  0x84   : > { %v327_v31 = vld [vmem:[#allocation5 + $0xe0] sm:$0xff]  ;;  %3406 = vmatpush1.bf16.msra.mxu0 %v6708_v34 }
  0x85   : > { %v451_v32 = vld [vmem:[#allocation5 + $0x4c0] sm:$0xff]  ;;  %v6701_v36 = vcombine.high %v323_v30, %v327_v31  ;;  %3446 = vmatprep.subr.bf16.mxu1 %v6837_v29  ;;  %v6700_v42 = vcombine.low %v323_v30, %v327_v31 }
  0x86   : > { %v455_v33 = vld [vmem:[#allocation5 + $0x4e0] sm:$0xff]  ;;  %3447 = vmatpush1.bf16.msra.mxu1 %v6836_v35 }
  0x87   : > { %v6829_v37 = vcombine.high %v451_v32, %v455_v33  ;;  %v315_v38 = vld [vmem:[#allocation5 + $0x80] sm:$0xff]  ;;  %3407 = vmatprep.subr.bf16.mxu0 %v6701_v36  ;;  %v6828_v43 = vcombine.low %v451_v32, %v455_v33 }
  0x88   : > { %v319_v39 = vld [vmem:[#allocation5 + $0xa0] sm:$0xff]  ;;  %3408 = vmatpush1.bf16.msra.mxu0 %v6700_v42 }
  0x89   : > { %v443_v40 = vld [vmem:[#allocation5 + $0x480] sm:$0xff]  ;;  %v6693_v44 = vcombine.high %v315_v38, %v319_v39  ;;  %3448 = vmatprep.subr.bf16.mxu1 %v6829_v37  ;;  %v6692_v50 = vcombine.low %v315_v38, %v319_v39 }
  0x8a   : > { %v447_v41 = vld [vmem:[#allocation5 + $0x4a0] sm:$0xff]  ;;  %3449 = vmatpush1.bf16.msra.mxu1 %v6828_v43 }
  0x8b   : > { %v6821_v45 = vcombine.high %v443_v40, %v447_v41  ;;  %v307_v46 = vld [vmem:[#allocation5 + $0x40] sm:$0xff]  ;;  %3409 = vmatprep.subr.bf16.mxu0 %v6693_v44  ;;  %v6820_v51 = vcombine.low %v443_v40, %v447_v41 }
  0x8c   : > { %v311_v47 = vld [vmem:[#allocation5 + $0x60] sm:$0xff]  ;;  %3410 = vmatpush1.bf16.msra.mxu0 %v6692_v50 }
  0x8d   : > { %v435_v48 = vld [vmem:[#allocation5 + $0x440] sm:$0xff]  ;;  %v6685_v52 = vcombine.high %v307_v46, %v311_v47  ;;  %3450 = vmatprep.subr.bf16.mxu1 %v6821_v45  ;;  %v6684_v62 = vcombine.low %v307_v46, %v311_v47 }
  0x8e   : > { %v439_v49 = vld [vmem:[#allocation5 + $0x460] sm:$0xff]  ;;  %3451 = vmatpush1.bf16.msra.mxu1 %v6820_v51 }
  0x8f   : > { %v8375_v53 = vld [vmem:[%s8360_s16] sm:$0xff]  ;;  %v6813_v55 = vcombine.high %v435_v48, %v439_v49  ;;  %3411 = vmatprep.subr.bf16.mxu0 %v6685_v52  ;;  %v6812_v63 = vcombine.low %v435_v48, %v439_v49 }
  0x90   : > { %v299_v56 = vld [vmem:[#allocation5] sm:$0xff]  ;;  %v8382_v58 = vcombine.high %v8375_v53, %v8375_v53  ;;  %3412 = vmatpush1.bf16.msra.mxu0 %v6684_v62 }
  0x91   : > { %v303_v57 = vld [vmem:[#allocation5 + $0x20] sm:$0xff]  ;;  %3452 = vmatprep.subr.bf16.mxu1 %v6813_v55 }
  0x92   : > { %v427_v60 = vld [vmem:[#allocation5 + $0x400] sm:$0xff]  ;;  %3431 = vmatprep.mubr.bf16.mxu0 %v8382_v58  ;;  %v6677_v0 = vcombine.high %v299_v56, %v303_v57  ;;  %v6676_v6 = vcombine.low %v299_v56, %v303_v57  ;;  %3453 = vmatpush1.bf16.msra.mxu1 %v6812_v63 }
  0x93   : > { %v431_v61 = vld [vmem:[#allocation5 + $0x420] sm:$0xff] }
  0x94   : > { %v6805_v1 = vcombine.high %v427_v60, %v431_v61  ;;  %v419_v2 = vld [vmem:[#allocation5 + $0x3c0] sm:$0xff]  ;;  %3413 = vmatprep.subr.bf16.mxu0 %v6677_v0  ;;  %v6804_v7 = vcombine.low %v427_v60, %v431_v61 }
  0x95   : > { %v423_v3 = vld [vmem:[#allocation5 + $0x3e0] sm:$0xff]  ;;  %3414 = vmatpush1.bf16.msra.mxu0 %v6676_v6 }
  0x96   : > { %v547_v4 = vld [vmem:[#allocation5 + $0x7c0] sm:$0xff]  ;;  %v6797_v8 = vcombine.high %v419_v2, %v423_v3  ;;  %3454 = vmatprep.subr.bf16.mxu1 %v6805_v1  ;;  %v6796_v14 = vcombine.low %v419_v2, %v423_v3 }
  0x97   : > { %v551_v5 = vld [vmem:[#allocation5 + $0x7e0] sm:$0xff]  ;;  %3455 = vmatpush1.bf16.msra.mxu1 %v6804_v7 }
  0x98   : > { %v6925_v9 = vcombine.high %v547_v4, %v551_v5  ;;  %v411_v10 = vld [vmem:[#allocation5 + $0x380] sm:$0xff]  ;;  %3415 = vmatprep.subr.bf16.mxu0 %v6797_v8  ;;  %v6924_v15 = vcombine.low %v547_v4, %v551_v5 }
  0x99   : > { %v415_v11 = vld [vmem:[#allocation5 + $0x3a0] sm:$0xff]  ;;  %3416 = vmatpush2.bf16.msra.mxu0 %v6796_v14 }
  0x9a   : > { %v539_v12 = vld [vmem:[#allocation5 + $0x780] sm:$0xff]  ;;  %v6789_v16 = vcombine.high %v411_v10, %v415_v11  ;;  %3456 = vmatprep.subr.bf16.mxu1 %v6925_v9  ;;  %v6788_v22 = vcombine.low %v411_v10, %v415_v11 }
  0x9b   : > { %v543_v13 = vld [vmem:[#allocation5 + $0x7a0] sm:$0xff]  ;;  %3457 = vmatpush2.bf16.msra.mxu1 %v6924_v15 }
  0x9c   : > { %v6917_v17 = vcombine.high %v539_v12, %v543_v13  ;;  %v403_v18 = vld [vmem:[#allocation5 + $0x340] sm:$0xff]  ;;  %3417 = vmatprep.subr.bf16.mxu0 %v6789_v16  ;;  %v6916_v23 = vcombine.low %v539_v12, %v543_v13  ;;  %v8392_v16 = vcombine.low %v8375_v53, %v8375_v53 }
  0x9d   : > { %v407_v19 = vld [vmem:[#allocation5 + $0x360] sm:$0xff]  ;;  %3418 = vmatpush2.bf16.msra.mxu0 %v6788_v22  ;;  %v8402_v22 = vld [vmem:[%s8360_s16 + $0x18] sm:$0xff] }
  0x9e   : > { %v531_v20 = vld [vmem:[#allocation5 + $0x740] sm:$0xff]  ;;  %v6781_v24 = vcombine.high %v403_v18, %v407_v19  ;;  %3458 = vmatprep.subr.bf16.mxu1 %v6917_v17  ;;  %v6780_v30 = vcombine.low %v403_v18, %v407_v19  ;;  %v8395_v19 = vld [vmem:[%s8360_s16 + $0x10] sm:$0xff] }
  0x9f   : > { %v535_v21 = vld [vmem:[#allocation5 + $0x760] sm:$0xff]  ;;  %3459 = vmatpush2.bf16.msra.mxu1 %v6916_v23 }
  0xa0   : > { %v6909_v25 = vcombine.high %v531_v20, %v535_v21  ;;  %v395_v26 = vld [vmem:[#allocation5 + $0x300] sm:$0xff]  ;;  %3419 = vmatprep.subr.bf16.mxu0 %v6781_v24  ;;  %v6908_v31 = vcombine.low %v531_v20, %v535_v21  ;;  %v8399_v20 = vcombine.low %v8378_v54, %v8378_v54  ;;  %v8411_v54 = vcombine.high %v8402_v22, %v8402_v22 }
  0xa1   : > { %v399_v27 = vld [vmem:[#allocation5 + $0x320] sm:$0xff]  ;;  %3420 = vmatpush2.bf16.msra.mxu0 %v6780_v30 }
  0xa2   : > { %v523_v28 = vld [vmem:[#allocation5 + $0x700] sm:$0xff]  ;;  %v6773_v32 = vcombine.high %v395_v26, %v399_v27  ;;  %3460 = vmatprep.subr.bf16.mxu1 %v6909_v25  ;;  %v6772_v38 = vcombine.low %v395_v26, %v399_v27 }
  0xa3   : > { %v527_v29 = vld [vmem:[#allocation5 + $0x720] sm:$0xff]  ;;  %3461 = vmatpush2.bf16.msra.mxu1 %v6908_v31 }
  0xa4   : > { %v6901_v33 = vcombine.high %v523_v28, %v527_v29  ;;  %v387_v34 = vld [vmem:[#allocation5 + $0x2c0] sm:$0xff]  ;;  %3421 = vmatprep.subr.bf16.mxu0 %v6773_v32  ;;  %v6900_v39 = vcombine.low %v523_v28, %v527_v29  ;;  %v8406_v29 = vcombine.high %v8395_v19, %v8395_v19 }
  0xa5   : > { %v391_v35 = vld [vmem:[#allocation5 + $0x2e0] sm:$0xff]  ;;  %3422 = vmatpush2.bf16.msra.mxu0 %v6772_v38 }
  0xa6   : > { %v515_v36 = vld [vmem:[#allocation5 + $0x6c0] sm:$0xff]  ;;  %v6765_v40 = vcombine.high %v387_v34, %v391_v35  ;;  %3462 = vmatprep.subr.bf16.mxu1 %v6901_v33  ;;  %v6764_v46 = vcombine.low %v387_v34, %v391_v35 }
  0xa7   : > { %v519_v37 = vld [vmem:[#allocation5 + $0x6e0] sm:$0xff]  ;;  %3463 = vmatpush2.bf16.msra.mxu1 %v6900_v39 }
  0xa8   : > { %v6893_v41 = vcombine.high %v515_v36, %v519_v37  ;;  %v379_v42 = vld [vmem:[#allocation5 + $0x280] sm:$0xff]  ;;  %3423 = vmatprep.subr.bf16.mxu0 %v6765_v40  ;;  %v6892_v47 = vcombine.low %v515_v36, %v519_v37 }
  0xa9   : > { %v383_v43 = vld [vmem:[#allocation5 + $0x2a0] sm:$0xff]  ;;  %3424 = vmatpush2.bf16.msra.mxu0 %v6764_v46 }
  0xaa   : > { %v507_v44 = vld [vmem:[#allocation5 + $0x680] sm:$0xff]  ;;  %v6757_v48 = vcombine.high %v379_v42, %v383_v43  ;;  %3464 = vmatprep.subr.bf16.mxu1 %v6893_v41  ;;  %v6756_v56 = vcombine.low %v379_v42, %v383_v43 }
  0xab   : > { %v511_v45 = vld [vmem:[#allocation5 + $0x6a0] sm:$0xff]  ;;  %3465 = vmatpush2.bf16.msra.mxu1 %v6892_v47 }
  0xac   : > { %v6885_v49 = vcombine.high %v507_v44, %v511_v45  ;;  %v371_v50 = vld [vmem:[#allocation5 + $0x240] sm:$0xff]  ;;  %3425 = vmatprep.subr.bf16.mxu0 %v6757_v48  ;;  %v6884_v57 = vcombine.low %v507_v44, %v511_v45 }
  0xad   : > { %v375_v51 = vld [vmem:[#allocation5 + $0x260] sm:$0xff]  ;;  %3426 = vmatpush2.bf16.msra.mxu0 %v6756_v56 }
  0xae   : > { %v499_v52 = vld [vmem:[#allocation5 + $0x640] sm:$0xff]  ;;  %v6749_v60 = vcombine.high %v371_v50, %v375_v51  ;;  %3466 = vmatprep.subr.bf16.mxu1 %v6885_v49  ;;  %v6748_v2 = vcombine.low %v371_v50, %v375_v51 }
  0xaf   : > { %v503_v55 = vld [vmem:[#allocation5 + $0x660] sm:$0xff]  ;;  %3467 = vmatpush2.bf16.msra.mxu1 %v6884_v57 }
  0xb0   : > { %v6877_v61 = vcombine.high %v499_v52, %v503_v55  ;;  %v363_v62 = vld [vmem:[#allocation5 + $0x200] sm:$0xff]  ;;  %3427 = vmatprep.subr.bf16.mxu0 %v6749_v60  ;;  %v6876_v3 = vcombine.low %v499_v52, %v503_v55 }
  0xb1   : > { %v367_v63 = vld [vmem:[#allocation5 + $0x220] sm:$0xff]  ;;  %3428 = vmatpush2.bf16.msra.mxu0 %v6748_v2 }
  0xb2   : > { %v491_v0 = vld [vmem:[#allocation5 + $0x600] sm:$0xff]  ;;  %v6741_v4 = vcombine.high %v363_v62, %v367_v63  ;;  %3468 = vmatprep.subr.bf16.mxu1 %v6877_v61  ;;  %v6740_v10 = vcombine.low %v363_v62, %v367_v63 }
  0xb3   : > { %v495_v1 = vld [vmem:[#allocation5 + $0x620] sm:$0xff]  ;;  %3469 = vmatpush2.bf16.msra.mxu1 %v6876_v3 }
  0xb4   : > { %v6869_v5 = vcombine.high %v491_v0, %v495_v1  ;;  %v611_v6 = vld [vmem:[#allocation5 + $0x9c0] sm:$0xff]  ;;  %3429 = vmatprep.subr.bf16.mxu0 %v6741_v4  ;;  %v6868_v11 = vcombine.low %v491_v0, %v495_v1 }
  0xb5   : > { %v615_v7 = vld [vmem:[#allocation5 + $0x9e0] sm:$0xff]  ;;  %3430 = vmatpush2.bf16.msra.mxu0 %v6740_v10 }
  0xb6   : > { %v739_v8 = vld [vmem:[#allocation5 + $0xdc0] sm:$0xff]  ;;  %v6989_v12 = vcombine.high %v611_v6, %v615_v7  ;;  %3470 = vmatprep.subr.bf16.mxu1 %v6869_v5  ;;  %v6988_v21 = vcombine.low %v611_v6, %v615_v7 }
  0xb7   : > { %v743_v9 = vld [vmem:[#allocation5 + $0xde0] sm:$0xff]  ;;  %3471 = vmatpush2.bf16.msra.mxu1 %v6868_v11 }
  0xb8   : > { %v7117_v13 = vcombine.high %v739_v8, %v743_v9  ;;  %v603_v14 = vld [vmem:[#allocation5 + $0x980] sm:$0xff]  ;;  %3481 = vmatprep.subr.bf16.mxu0 %v6989_v12  ;;  %v7116_v23 = vcombine.low %v739_v8, %v743_v9  ;;  %3432 = vmatmul.mubr.bf16.vlgmr.msra.gmra.mxu0 %v8392_v16 }
  0xb9   : > { %v607_v15 = vld [vmem:[#allocation5 + $0x9a0] sm:$0xff]  ;;  %3482 = vmatpush1.bf16.msra.mxu0 %v6988_v21  ;;  %3513 = vmatprep.mubr.bf16.mxu0 %v8406_v29 }
  0xba   : > { %v731_v17 = vld [vmem:[#allocation5 + $0xd80] sm:$0xff]  ;;  %v6981_v24 = vcombine.high %v603_v14, %v607_v15  ;;  %3522 = vmatprep.subr.bf16.mxu1 %v7117_v13  ;;  %3473 = vmatmul.mubr.bf16.vlgmr.msra.gmra.mxu1 %v8399_v20  ;;  %v6980_v30 = vcombine.low %v603_v14, %v607_v15 }
  0xbb   : > { %v735_v18 = vld [vmem:[#allocation5 + $0xda0] sm:$0xff]  ;;  %3523 = vmatpush1.bf16.msra.mxu1 %v7116_v23  ;;  %3554 = vmatprep.mubr.bf16.mxu1 %v8411_v54 }
  0xbc   : > { %v595_v25 = vld [vmem:[#allocation5 + $0x940] sm:$0xff]  ;;  %v7109_v53 = vcombine.high %v731_v17, %v735_v18  ;;  %3483 = vmatprep.subr.bf16.mxu0 %v6981_v24  ;;  %v7108_v31 = vcombine.low %v731_v17, %v735_v18 }
  0xbd   : > { %v599_v26 = vld [vmem:[#allocation5 + $0x960] sm:$0xff]  ;;  %3484 = vmatpush1.bf16.msra.mxu0 %v6980_v30 }
  0xbe   : > { %v723_v27 = vld [vmem:[#allocation5 + $0xd40] sm:$0xff]  ;;  %v6973_v32 = vcombine.high %v595_v25, %v599_v26  ;;  %3524 = vmatprep.subr.bf16.mxu1 %v7109_v53  ;;  %v6972_v38 = vcombine.low %v595_v25, %v599_v26 }
  0xbf   : > { %v727_v28 = vld [vmem:[#allocation5 + $0xd60] sm:$0xff]  ;;  %3525 = vmatpush1.bf16.msra.mxu1 %v7108_v31 }
  0xc0   : > { %v587_v33 = vld [vmem:[#allocation5 + $0x900] sm:$0xff]  ;;  %v7101_v36 = vcombine.high %v723_v27, %v727_v28  ;;  %3485 = vmatprep.subr.bf16.mxu0 %v6973_v32  ;;  %v7100_v39 = vcombine.low %v723_v27, %v727_v28 }
  0xc1   : > { %v591_v34 = vld [vmem:[#allocation5 + $0x920] sm:$0xff]  ;;  %3486 = vmatpush1.bf16.msra.mxu0 %v6972_v38 }
  0xc2   : > { %v715_v35 = vld [vmem:[#allocation5 + $0xd00] sm:$0xff]  ;;  %v6965_v40 = vcombine.high %v587_v33, %v591_v34  ;;  %3526 = vmatprep.subr.bf16.mxu1 %v7101_v36  ;;  %v6964_v46 = vcombine.low %v587_v33, %v591_v34 }
  0xc3   : > { %v719_v37 = vld [vmem:[#allocation5 + $0xd20] sm:$0xff]  ;;  %3527 = vmatpush1.bf16.msra.mxu1 %v7100_v39 }
  0xc4   : > { %v579_v41 = vld [vmem:[#allocation5 + $0x8c0] sm:$0xff]  ;;  %v7093_v44 = vcombine.high %v715_v35, %v719_v37  ;;  %3487 = vmatprep.subr.bf16.mxu0 %v6965_v40  ;;  %v7092_v47 = vcombine.low %v715_v35, %v719_v37 }
  0xc5   : > { %v583_v42 = vld [vmem:[#allocation5 + $0x8e0] sm:$0xff]  ;;  %3488 = vmatpush1.bf16.msra.mxu0 %v6964_v46 }
  0xc6   : > { %v707_v43 = vld [vmem:[#allocation5 + $0xcc0] sm:$0xff]  ;;  %v6957_v48 = vcombine.high %v579_v41, %v583_v42  ;;  %3528 = vmatprep.subr.bf16.mxu1 %v7093_v44  ;;  %v6956_v56 = vcombine.low %v579_v41, %v583_v42 }
  0xc7   : > { %v711_v45 = vld [vmem:[#allocation5 + $0xce0] sm:$0xff]  ;;  %3529 = vmatpush1.bf16.msra.mxu1 %v7092_v47 }
  0xc8   : > { %v571_v49 = vld [vmem:[#allocation5 + $0x880] sm:$0xff]  ;;  %v7085_v52 = vcombine.high %v707_v43, %v711_v45  ;;  %3489 = vmatprep.subr.bf16.mxu0 %v6957_v48  ;;  %v7084_v57 = vcombine.low %v707_v43, %v711_v45 }
  0xc9   : > { %v575_v50 = vld [vmem:[#allocation5 + $0x8a0] sm:$0xff]  ;;  %3490 = vmatpush1.bf16.msra.mxu0 %v6956_v56 }
  0xca   : > { %v699_v51 = vld [vmem:[#allocation5 + $0xc80] sm:$0xff]  ;;  %v6949_v60 = vcombine.high %v571_v49, %v575_v50  ;;  %3530 = vmatprep.subr.bf16.mxu1 %v7085_v52  ;;  %v6948_v2 = vcombine.low %v571_v49, %v575_v50 }
  0xcb   : > { %v703_v55 = vld [vmem:[#allocation5 + $0xca0] sm:$0xff]  ;;  %3531 = vmatpush1.bf16.msra.mxu1 %v7084_v57 }
  0xcc   : > { %v563_v61 = vld [vmem:[#allocation5 + $0x840] sm:$0xff]  ;;  %v7077_v0 = vcombine.high %v699_v51, %v703_v55  ;;  %3491 = vmatprep.subr.bf16.mxu0 %v6949_v60  ;;  %v7076_v3 = vcombine.low %v699_v51, %v703_v55 }
  0xcd   : > { %v567_v62 = vld [vmem:[#allocation5 + $0x860] sm:$0xff]  ;;  %3492 = vmatpush1.bf16.msra.mxu0 %v6948_v2 }
  0xce   : > { %v691_v63 = vld [vmem:[#allocation5 + $0xc40] sm:$0xff]  ;;  %v6941_v4 = vcombine.high %v563_v61, %v567_v62  ;;  %3532 = vmatprep.subr.bf16.mxu1 %v7077_v0  ;;  %v6940_v10 = vcombine.low %v563_v61, %v567_v62 }
  0xcf   : > { %v695_v1 = vld [vmem:[#allocation5 + $0xc60] sm:$0xff]  ;;  %3533 = vmatpush1.bf16.msra.mxu1 %v7076_v3 }
  0xd0   : > { %v555_v5 = vld [vmem:[#allocation5 + $0x800] sm:$0xff]  ;;  %v7069_v8 = vcombine.high %v691_v63, %v695_v1  ;;  %3493 = vmatprep.subr.bf16.mxu0 %v6941_v4  ;;  %v7068_v11 = vcombine.low %v691_v63, %v695_v1 }
  0xd1   : > { %v559_v6 = vld [vmem:[#allocation5 + $0x820] sm:$0xff]  ;;  %3494 = vmatpush1.bf16.msra.mxu0 %v6940_v10 }
  0xd2   : > { %v683_v7 = vld [vmem:[#allocation5 + $0xc00] sm:$0xff]  ;;  %v6933_v12 = vcombine.high %v555_v5, %v559_v6  ;;  %3534 = vmatprep.subr.bf16.mxu1 %v7069_v8  ;;  %v6932_v21 = vcombine.low %v555_v5, %v559_v6 }
  0xd3   : > { %v687_v9 = vld [vmem:[#allocation5 + $0xc20] sm:$0xff]  ;;  %3535 = vmatpush1.bf16.msra.mxu1 %v7068_v11 }
  0xd4   : > { %v675_v13 = vld [vmem:[#allocation5 + $0xbc0] sm:$0xff]  ;;  %v7061_v17 = vcombine.high %v683_v7, %v687_v9  ;;  %3495 = vmatprep.subr.bf16.mxu0 %v6933_v12  ;;  %v7060_v23 = vcombine.low %v683_v7, %v687_v9 }
  0xd5   : > { %v679_v14 = vld [vmem:[#allocation5 + $0xbe0] sm:$0xff]  ;;  %3496 = vmatpush1.bf16.msra.mxu0 %v6932_v21 }
  0xd6   : > { %v803_v15 = vld [vmem:[#allocation5 + $0xfc0] sm:$0xff]  ;;  %v7053_v24 = vcombine.high %v675_v13, %v679_v14  ;;  %3536 = vmatprep.subr.bf16.mxu1 %v7061_v17  ;;  %v7052_v30 = vcombine.low %v675_v13, %v679_v14 }
  0xd7   : > { %v807_v18 = vld [vmem:[#allocation5 + $0xfe0] sm:$0xff]  ;;  %3537 = vmatpush1.bf16.msra.mxu1 %v7060_v23 }
  0xd8   : > { %v667_v25 = vld [vmem:[#allocation5 + $0xb80] sm:$0xff]  ;;  %v7181_v27 = vcombine.high %v803_v15, %v807_v18  ;;  %3497 = vmatprep.subr.bf16.mxu0 %v7053_v24  ;;  %v7180_v31 = vcombine.low %v803_v15, %v807_v18 }
  0xd9   : > { %v671_v26 = vld [vmem:[#allocation5 + $0xba0] sm:$0xff]  ;;  %3498 = vmatpush2.bf16.msra.mxu0 %v7052_v30 }
  0xda   : > { %v795_v53 = vld [vmem:[#allocation5 + $0xf80] sm:$0xff]  ;;  %v7045_v32 = vcombine.high %v667_v25, %v671_v26  ;;  %3538 = vmatprep.subr.bf16.mxu1 %v7181_v27  ;;  %v7044_v38 = vcombine.low %v667_v25, %v671_v26  ;;  %v356_v25 = vld [vmem:[#allocation5 + $0x1c8] sm:$0xff] }
  0xdb   : > { %v799_v28 = vld [vmem:[#allocation5 + $0xfa0] sm:$0xff]  ;;  %3539 = vmatpush2.bf16.msra.mxu1 %v7180_v31  ;;  %v360_v26 = vld [vmem:[#allocation5 + $0x1e8] sm:$0xff] }
  0xdc   : > { %v659_v33 = vld [vmem:[#allocation5 + $0xb40] sm:$0xff]  ;;  %v7173_v36 = vcombine.high %v795_v53, %v799_v28  ;;  %3499 = vmatprep.subr.bf16.mxu0 %v7045_v32  ;;  %v7172_v39 = vcombine.low %v795_v53, %v799_v28  ;;  %v484_v53 = vld [vmem:[#allocation5 + $0x5c8] sm:$0xff]  ;;  %v6735_v32 = vcombine.high %v356_v25, %v360_v26 }
  0xdd   : > { %v663_v34 = vld [vmem:[#allocation5 + $0xb60] sm:$0xff]  ;;  %3500 = vmatpush2.bf16.msra.mxu0 %v7044_v38  ;;  %v488_v28 = vld [vmem:[#allocation5 + $0x5e8] sm:$0xff]  ;;  %v8418_v38 = vcombine.low %v8395_v19, %v8395_v19 }
  0xde   : > { %v787_v35 = vld [vmem:[#allocation5 + $0xf40] sm:$0xff]  ;;  %v7037_v40 = vcombine.high %v659_v33, %v663_v34  ;;  %3540 = vmatprep.subr.bf16.mxu1 %v7173_v36  ;;  %v7036_v46 = vcombine.low %v659_v33, %v663_v34  ;;  %v348_v33 = vld [vmem:[#allocation5 + $0x188] sm:$0xff]  ;;  %v6863_v36 = vcombine.high %v484_v53, %v488_v28 }
  0xdf   : > { %v791_v37 = vld [vmem:[#allocation5 + $0xf60] sm:$0xff]  ;;  %3541 = vmatpush2.bf16.msra.mxu1 %v7172_v39  ;;  %v352_v34 = vld [vmem:[#allocation5 + $0x1a8] sm:$0xff]  ;;  %v8422_v39 = vcombine.low %v8402_v22, %v8402_v22 }
  0xe0   : > { %v651_v41 = vld [vmem:[#allocation5 + $0xb00] sm:$0xff]  ;;  %v7165_v44 = vcombine.high %v787_v35, %v791_v37  ;;  %3501 = vmatprep.subr.bf16.mxu0 %v7037_v40  ;;  %v7164_v47 = vcombine.low %v787_v35, %v791_v37  ;;  %v476_v35 = vld [vmem:[#allocation5 + $0x588] sm:$0xff]  ;;  %v6734_v40 = vcombine.low %v356_v25, %v360_v26  ;;  %v6726_v19 = vcombine.low %v348_v33, %v352_v34 }
  0xe1   : > { %v655_v42 = vld [vmem:[#allocation5 + $0xb20] sm:$0xff]  ;;  %3502 = vmatpush2.bf16.msra.mxu0 %v7036_v46  ;;  %v480_v37 = vld [vmem:[#allocation5 + $0x5a8] sm:$0xff] }
  0xe2   : > { %v779_v43 = vld [vmem:[#allocation5 + $0xf00] sm:$0xff]  ;;  %v7029_v48 = vcombine.high %v651_v41, %v655_v42  ;;  %3542 = vmatprep.subr.bf16.mxu1 %v7165_v44  ;;  %v7028_v56 = vcombine.low %v651_v41, %v655_v42  ;;  %v6862_v41 = vcombine.low %v484_v53, %v488_v28  ;;  %v6727_v42 = vcombine.high %v348_v33, %v352_v34  ;;  %v344_v44 = vld [vmem:[#allocation5 + $0x168] sm:$0xff] }
  0xe3   : > { %v783_v45 = vld [vmem:[#allocation5 + $0xf20] sm:$0xff]  ;;  %3543 = vmatpush2.bf16.msra.mxu1 %v7164_v47  ;;  %v6855_v46 = vcombine.high %v476_v35, %v480_v37  ;;  %v472_v47 = vld [vmem:[#allocation5 + $0x568] sm:$0xff]  ;;  %v6854_v22 = vcombine.low %v476_v35, %v480_v37 }
  0xe4   : > { %v643_v49 = vld [vmem:[#allocation5 + $0xac0] sm:$0xff]  ;;  %v7157_v52 = vcombine.high %v779_v43, %v783_v45  ;;  %3503 = vmatprep.subr.bf16.mxu0 %v7029_v48  ;;  %v7156_v57 = vcombine.low %v779_v43, %v783_v45  ;;  %v340_v43 = vld [vmem:[#allocation5 + $0x148] sm:$0xff] }
  0xe5   : > { %v647_v50 = vld [vmem:[#allocation5 + $0xae0] sm:$0xff]  ;;  %3504 = vmatpush2.bf16.msra.mxu0 %v7028_v56  ;;  %v468_v45 = vld [vmem:[#allocation5 + $0x548] sm:$0xff]  ;;  %v6719_v48 = vcombine.high %v340_v43, %v344_v44  ;;  %v6718_v56 = vcombine.low %v340_v43, %v344_v44 }
  0xe6   : > { %v771_v51 = vld [vmem:[#allocation5 + $0xec0] sm:$0xff]  ;;  %v7021_v60 = vcombine.high %v643_v49, %v647_v50  ;;  %3544 = vmatprep.subr.bf16.mxu1 %v7157_v52  ;;  %v7020_v2 = vcombine.low %v643_v49, %v647_v50  ;;  %v332_v49 = vld [vmem:[#allocation5 + $0x108] sm:$0xff]  ;;  %v6847_v52 = vcombine.high %v468_v45, %v472_v47 }
  0xe7   : > { %v775_v55 = vld [vmem:[#allocation5 + $0xee0] sm:$0xff]  ;;  %3545 = vmatpush2.bf16.msra.mxu1 %v7156_v57  ;;  %v336_v50 = vld [vmem:[#allocation5 + $0x128] sm:$0xff]  ;;  %v6846_v57 = vcombine.low %v468_v45, %v472_v47 }
  0xe8   : > { %v635_v61 = vld [vmem:[#allocation5 + $0xa80] sm:$0xff]  ;;  %v7149_v0 = vcombine.high %v771_v51, %v775_v55  ;;  %3505 = vmatprep.subr.bf16.mxu0 %v7021_v60  ;;  %v7148_v3 = vcombine.low %v771_v51, %v775_v55  ;;  %v460_v51 = vld [vmem:[#allocation5 + $0x508] sm:$0xff]  ;;  %v6711_v60 = vcombine.high %v332_v49, %v336_v50 }
  0xe9   : > { %v639_v62 = vld [vmem:[#allocation5 + $0xaa0] sm:$0xff]  ;;  %3506 = vmatpush2.bf16.msra.mxu0 %v7020_v2  ;;  %v464_v55 = vld [vmem:[#allocation5 + $0x528] sm:$0xff]  ;;  %v6710_v2 = vcombine.low %v332_v49, %v336_v50 }
  0xea   : > { %v763_v63 = vld [vmem:[#allocation5 + $0xe80] sm:$0xff]  ;;  %v7013_v4 = vcombine.high %v635_v61, %v639_v62  ;;  %3546 = vmatprep.subr.bf16.mxu1 %v7149_v0  ;;  %v7012_v10 = vcombine.low %v635_v61, %v639_v62  ;;  %v324_v61 = vld [vmem:[#allocation5 + $0xc8] sm:$0xff]  ;;  %v6839_v0 = vcombine.high %v460_v51, %v464_v55 }
  0xeb   : > { %v767_v1 = vld [vmem:[#allocation5 + $0xea0] sm:$0xff]  ;;  %3547 = vmatpush2.bf16.msra.mxu1 %v7148_v3  ;;  %v328_v62 = vld [vmem:[#allocation5 + $0xe8] sm:$0xff]  ;;  %v6838_v3 = vcombine.low %v460_v51, %v464_v55 }
  0xec   : > { %v627_v5 = vld [vmem:[#allocation5 + $0xa40] sm:$0xff]  ;;  %v7141_v8 = vcombine.high %v763_v63, %v767_v1  ;;  %3507 = vmatprep.subr.bf16.mxu0 %v7013_v4  ;;  %v7140_v11 = vcombine.low %v763_v63, %v767_v1  ;;  %v452_v63 = vld [vmem:[#allocation5 + $0x4c8] sm:$0xff]  ;;  %v6703_v4 = vcombine.high %v324_v61, %v328_v62 }
  0xed   : > { %v631_v6 = vld [vmem:[#allocation5 + $0xa60] sm:$0xff]  ;;  %3508 = vmatpush2.bf16.msra.mxu0 %v7012_v10  ;;  %v456_v1 = vld [vmem:[#allocation5 + $0x4e8] sm:$0xff]  ;;  %v6702_v10 = vcombine.low %v324_v61, %v328_v62 }
  0xee   : > { %v755_v7 = vld [vmem:[#allocation5 + $0xe40] sm:$0xff]  ;;  %v7005_v12 = vcombine.high %v627_v5, %v631_v6  ;;  %3548 = vmatprep.subr.bf16.mxu1 %v7141_v8  ;;  %v7004_v21 = vcombine.low %v627_v5, %v631_v6  ;;  %v316_v5 = vld [vmem:[#allocation5 + $0x88] sm:$0xff]  ;;  %v6831_v8 = vcombine.high %v452_v63, %v456_v1 }
  0xef   : > { %v759_v9 = vld [vmem:[#allocation5 + $0xe60] sm:$0xff]  ;;  %3549 = vmatpush2.bf16.msra.mxu1 %v7140_v11  ;;  %v320_v6 = vld [vmem:[#allocation5 + $0xa8] sm:$0xff]  ;;  %v6830_v11 = vcombine.low %v452_v63, %v456_v1 }
  0xf0   : > { %v619_v13 = vld [vmem:[#allocation5 + $0xa00] sm:$0xff]  ;;  %v7133_v17 = vcombine.high %v755_v7, %v759_v9  ;;  %3509 = vmatprep.subr.bf16.mxu0 %v7005_v12  ;;  %v7132_v23 = vcombine.low %v755_v7, %v759_v9  ;;  %v444_v7 = vld [vmem:[#allocation5 + $0x488] sm:$0xff]  ;;  %v6695_v12 = vcombine.high %v316_v5, %v320_v6 }
  0xf1   : > { %v623_v14 = vld [vmem:[#allocation5 + $0xa20] sm:$0xff]  ;;  %3510 = vmatpush2.bf16.msra.mxu0 %v7004_v21  ;;  %v448_v9 = vld [vmem:[#allocation5 + $0x4a8] sm:$0xff]  ;;  %v6694_v21 = vcombine.low %v316_v5, %v320_v6 }
  0xf2   : > { %v747_v15 = vld [vmem:[#allocation5 + $0xe00] sm:$0xff]  ;;  %v6997_v24 = vcombine.high %v619_v13, %v623_v14  ;;  %3550 = vmatprep.subr.bf16.mxu1 %v7133_v17  ;;  %v6996_v30 = vcombine.low %v619_v13, %v623_v14  ;;  %v308_v13 = vld [vmem:[#allocation5 + $0x48] sm:$0xff]  ;;  %v6823_v17 = vcombine.high %v444_v7, %v448_v9 }
  0xf3   : > { %v751_v18 = vld [vmem:[#allocation5 + $0xe20] sm:$0xff]  ;;  %3551 = vmatpush2.bf16.msra.mxu1 %v7132_v23  ;;  %v312_v14 = vld [vmem:[#allocation5 + $0x68] sm:$0xff]  ;;  %v6822_v23 = vcombine.low %v444_v7, %v448_v9 }
  0xf4   : > { %v7125_v27 = vcombine.high %v747_v15, %v751_v18  ;;  %3511 = vmatprep.subr.bf16.mxu0 %v6997_v24  ;;  %v7124_v31 = vcombine.low %v747_v15, %v751_v18  ;;  %v436_v15 = vld [vmem:[#allocation5 + $0x448] sm:$0xff]  ;;  %v6687_v24 = vcombine.high %v308_v13, %v312_v14 }
  0xf5   : > { %3512 = vmatpush2.bf16.msra.mxu0 %v6996_v30  ;;  %v440_v18 = vld [vmem:[#allocation5 + $0x468] sm:$0xff]  ;;  %v6686_v30 = vcombine.low %v308_v13, %v312_v14 }
  0xf6   : > { %3552 = vmatprep.subr.bf16.mxu1 %v7125_v27  ;;  %3563 = vmatprep.subr.bf16.mxu0 %v6735_v32  ;;  %v300_v25 = vld [vmem:[#allocation5 + $0x8] sm:$0xff]  ;;  %v6815_v27 = vcombine.high %v436_v15, %v440_v18 }
  0xf7   : > { %3553 = vmatpush2.bf16.msra.mxu1 %v7124_v31  ;;  %v304_v26 = vld [vmem:[#allocation5 + $0x28] sm:$0xff]  ;;  %v6814_v31 = vcombine.low %v436_v15, %v440_v18 }
  0xf8   : > { %3604 = vmatprep.subr.bf16.mxu1 %v6863_v36  ;;  %3514 = vmatmul.mubr.bf16.vlgmr.msra.gmra.mxu0 %v8418_v38  ;;  %v428_v53 = vld [vmem:[#allocation5 + $0x408] sm:$0xff]  ;;  %v6679_v32 = vcombine.high %v300_v25, %v304_v26 }
  0xf9   : > { %3564 = vmatpush1.bf16.msra.mxu0 %v6734_v40  ;;  %3595 = vmatprep.mubr.bf16.mxu0 %v8382_v58  ;;  %v432_v28 = vld [vmem:[#allocation5 + $0x428] sm:$0xff]  ;;  %v6678_v40 = vcombine.low %v300_v25, %v304_v26 }
  0xfa   : > { %3555 = vmatmul.mubr.bf16.vlgmr.msra.gmra.mxu1 %v8422_v39  ;;  %3565 = vmatprep.subr.bf16.mxu0 %v6727_v42  ;;  %v420_v33 = vld [vmem:[#allocation5 + $0x3c8] sm:$0xff]  ;;  %v6807_v36 = vcombine.high %v428_v53, %v432_v28 }
  0xfb   : > { %3605 = vmatpush1.bf16.msra.mxu1 %v6862_v41  ;;  %3636 = vmatprep.mubr.bf16.mxu1 %v8386_v59  ;;  %v424_v34 = vld [vmem:[#allocation5 + $0x3e8] sm:$0xff]  ;;  %v6806_v41 = vcombine.low %v428_v53, %v432_v28 }
  0xfc   : > { %3606 = vmatprep.subr.bf16.mxu1 %v6855_v46  ;;  %v548_v35 = vld [vmem:[#allocation5 + $0x7c8] sm:$0xff]  ;;  %v6799_v42 = vcombine.high %v420_v33, %v424_v34 }
  0xfd   : > { %3566 = vmatpush1.bf16.msra.mxu0 %v6726_v19  ;;  %v552_v37 = vld [vmem:[#allocation5 + $0x7e8] sm:$0xff]  ;;  %v6798_v19 = vcombine.low %v420_v33, %v424_v34 }
  0xfe   : > { %3567 = vmatprep.subr.bf16.mxu0 %v6719_v48  ;;  %v412_v43 = vld [vmem:[#allocation5 + $0x388] sm:$0xff]  ;;  %v6927_v46 = vcombine.high %v548_v35, %v552_v37 }
  0xff   : > { %3607 = vmatpush1.bf16.msra.mxu1 %v6854_v22  ;;  %v416_v44 = vld [vmem:[#allocation5 + $0x3a8] sm:$0xff]  ;;  %v6926_v22 = vcombine.low %v548_v35, %v552_v37 }
 0x100   : > { %3608 = vmatprep.subr.bf16.mxu1 %v6847_v52  ;;  %v540_v45 = vld [vmem:[#allocation5 + $0x788] sm:$0xff]  ;;  %v6791_v48 = vcombine.high %v412_v43, %v416_v44 }
 0x101   : > { %3568 = vmatpush1.bf16.msra.mxu0 %v6718_v56  ;;  %v544_v47 = vld [vmem:[#allocation5 + $0x7a8] sm:$0xff]  ;;  %v6790_v56 = vcombine.low %v412_v43, %v416_v44 }
 0x102   : > { %3569 = vmatprep.subr.bf16.mxu0 %v6711_v60  ;;  %v404_v49 = vld [vmem:[#allocation5 + $0x348] sm:$0xff]  ;;  %v6919_v52 = vcombine.high %v540_v45, %v544_v47 }
 0x103   : > { %3609 = vmatpush1.bf16.msra.mxu1 %v6846_v57  ;;  %v408_v50 = vld [vmem:[#allocation5 + $0x368] sm:$0xff]  ;;  %v6918_v57 = vcombine.low %v540_v45, %v544_v47 }
 0x104   : > { %3610 = vmatprep.subr.bf16.mxu1 %v6839_v0  ;;  %v532_v51 = vld [vmem:[#allocation5 + $0x748] sm:$0xff]  ;;  %v6783_v60 = vcombine.high %v404_v49, %v408_v50 }
 0x105   : > { %3570 = vmatpush1.bf16.msra.mxu0 %v6710_v2  ;;  %v536_v55 = vld [vmem:[#allocation5 + $0x768] sm:$0xff]  ;;  %v6782_v2 = vcombine.low %v404_v49, %v408_v50 }
 0x106   : > { %3571 = vmatprep.subr.bf16.mxu0 %v6703_v4  ;;  %v396_v61 = vld [vmem:[#allocation5 + $0x308] sm:$0xff]  ;;  %v6911_v0 = vcombine.high %v532_v51, %v536_v55 }
 0x107   : > { %3611 = vmatpush1.bf16.msra.mxu1 %v6838_v3  ;;  %v400_v62 = vld [vmem:[#allocation5 + $0x328] sm:$0xff]  ;;  %v6910_v3 = vcombine.low %v532_v51, %v536_v55 }
 0x108   : > { %3612 = vmatprep.subr.bf16.mxu1 %v6831_v8  ;;  %v524_v63 = vld [vmem:[#allocation5 + $0x708] sm:$0xff]  ;;  %v6775_v4 = vcombine.high %v396_v61, %v400_v62 }
 0x109   : > { %3572 = vmatpush1.bf16.msra.mxu0 %v6702_v10  ;;  %v528_v1 = vld [vmem:[#allocation5 + $0x728] sm:$0xff]  ;;  %v6774_v10 = vcombine.low %v396_v61, %v400_v62 }
 0x10a   : > { %3573 = vmatprep.subr.bf16.mxu0 %v6695_v12  ;;  %v388_v5 = vld [vmem:[#allocation5 + $0x2c8] sm:$0xff]  ;;  %v6903_v8 = vcombine.high %v524_v63, %v528_v1 }
 0x10b   : > { %3613 = vmatpush1.bf16.msra.mxu1 %v6830_v11  ;;  %v392_v6 = vld [vmem:[#allocation5 + $0x2e8] sm:$0xff]  ;;  %v6902_v11 = vcombine.low %v524_v63, %v528_v1 }
 0x10c   : > { %3614 = vmatprep.subr.bf16.mxu1 %v6823_v17  ;;  %v516_v7 = vld [vmem:[#allocation5 + $0x6c8] sm:$0xff]  ;;  %v6767_v12 = vcombine.high %v388_v5, %v392_v6 }
 0x10d   : > { %3574 = vmatpush1.bf16.msra.mxu0 %v6694_v21  ;;  %v520_v9 = vld [vmem:[#allocation5 + $0x6e8] sm:$0xff]  ;;  %v6766_v21 = vcombine.low %v388_v5, %v392_v6 }
 0x10e   : > { %3575 = vmatprep.subr.bf16.mxu0 %v6687_v24  ;;  %v380_v13 = vld [vmem:[#allocation5 + $0x288] sm:$0xff]  ;;  %v6895_v17 = vcombine.high %v516_v7, %v520_v9 }
 0x10f   : > { %3615 = vmatpush1.bf16.msra.mxu1 %v6822_v23  ;;  %v384_v14 = vld [vmem:[#allocation5 + $0x2a8] sm:$0xff]  ;;  %v6894_v23 = vcombine.low %v516_v7, %v520_v9 }
 0x110   : > { %3616 = vmatprep.subr.bf16.mxu1 %v6815_v27  ;;  %v508_v15 = vld [vmem:[#allocation5 + $0x688] sm:$0xff]  ;;  %v6759_v24 = vcombine.high %v380_v13, %v384_v14 }
 0x111   : > { %3576 = vmatpush1.bf16.msra.mxu0 %v6686_v30  ;;  %v512_v18 = vld [vmem:[#allocation5 + $0x6a8] sm:$0xff]  ;;  %v6758_v30 = vcombine.low %v380_v13, %v384_v14 }
 0x112   : > { %3577 = vmatprep.subr.bf16.mxu0 %v6679_v32  ;;  %v372_v25 = vld [vmem:[#allocation5 + $0x248] sm:$0xff]  ;;  %v6887_v27 = vcombine.high %v508_v15, %v512_v18 }
 0x113   : > { %3617 = vmatpush1.bf16.msra.mxu1 %v6814_v31  ;;  %v376_v26 = vld [vmem:[#allocation5 + $0x268] sm:$0xff]  ;;  %v6886_v31 = vcombine.low %v508_v15, %v512_v18 }
 0x114   : > { %3618 = vmatprep.subr.bf16.mxu1 %v6807_v36  ;;  %v500_v53 = vld [vmem:[#allocation5 + $0x648] sm:$0xff]  ;;  %v6751_v32 = vcombine.high %v372_v25, %v376_v26 }
 0x115   : > { %3578 = vmatpush1.bf16.msra.mxu0 %v6678_v40  ;;  %v504_v28 = vld [vmem:[#allocation5 + $0x668] sm:$0xff]  ;;  %v6750_v40 = vcombine.low %v372_v25, %v376_v26 }
 0x116   : > { %3579 = vmatprep.subr.bf16.mxu0 %v6799_v42  ;;  %v364_v33 = vld [vmem:[#allocation5 + $0x208] sm:$0xff]  ;;  %v6879_v36 = vcombine.high %v500_v53, %v504_v28 }
 0x117   : > { %3619 = vmatpush1.bf16.msra.mxu1 %v6806_v41  ;;  %v368_v34 = vld [vmem:[#allocation5 + $0x228] sm:$0xff]  ;;  %v6878_v41 = vcombine.low %v500_v53, %v504_v28 }
 0x118   : > { %3620 = vmatprep.subr.bf16.mxu1 %v6927_v46  ;;  %v492_v35 = vld [vmem:[#allocation5 + $0x608] sm:$0xff]  ;;  %v6743_v42 = vcombine.high %v364_v33, %v368_v34 }
 0x119   : > { %3580 = vmatpush2.bf16.msra.mxu0 %v6798_v19  ;;  %v496_v37 = vld [vmem:[#allocation5 + $0x628] sm:$0xff]  ;;  %v6742_v19 = vcombine.low %v364_v33, %v368_v34 }
 0x11a   : > { %3581 = vmatprep.subr.bf16.mxu0 %v6791_v48  ;;  %v612_v43 = vld [vmem:[#allocation5 + $0x9c8] sm:$0xff]  ;;  %v6871_v46 = vcombine.high %v492_v35, %v496_v37 }
 0x11b   : > { %3621 = vmatpush2.bf16.msra.mxu1 %v6926_v22  ;;  %v616_v44 = vld [vmem:[#allocation5 + $0x9e8] sm:$0xff]  ;;  %v6870_v22 = vcombine.low %v492_v35, %v496_v37 }
 0x11c   : > { %3622 = vmatprep.subr.bf16.mxu1 %v6919_v52  ;;  %v740_v45 = vld [vmem:[#allocation5 + $0xdc8] sm:$0xff]  ;;  %v6991_v48 = vcombine.high %v612_v43, %v616_v44 }
 0x11d   : > { %3582 = vmatpush2.bf16.msra.mxu0 %v6790_v56  ;;  %v744_v47 = vld [vmem:[#allocation5 + $0xde8] sm:$0xff]  ;;  %v6990_v56 = vcombine.low %v612_v43, %v616_v44 }
 0x11e   : > { %3583 = vmatprep.subr.bf16.mxu0 %v6783_v60  ;;  %v604_v49 = vld [vmem:[#allocation5 + $0x988] sm:$0xff]  ;;  %v7119_v52 = vcombine.high %v740_v45, %v744_v47 }
 0x11f   : > { %3623 = vmatpush2.bf16.msra.mxu1 %v6918_v57  ;;  %v608_v50 = vld [vmem:[#allocation5 + $0x9a8] sm:$0xff]  ;;  %v7118_v57 = vcombine.low %v740_v45, %v744_v47 }
 0x120   : > { %3624 = vmatprep.subr.bf16.mxu1 %v6911_v0  ;;  %v732_v51 = vld [vmem:[#allocation5 + $0xd88] sm:$0xff]  ;;  %v6983_v60 = vcombine.high %v604_v49, %v608_v50 }
 0x121   : > { %3584 = vmatpush2.bf16.msra.mxu0 %v6782_v2  ;;  %v736_v55 = vld [vmem:[#allocation5 + $0xda8] sm:$0xff]  ;;  %v6982_v2 = vcombine.low %v604_v49, %v608_v50 }
 0x122   : > { %3585 = vmatprep.subr.bf16.mxu0 %v6775_v4  ;;  %v7111_v61 = vcombine.high %v732_v51, %v736_v55  ;;  %v596_v62 = vld [vmem:[#allocation5 + $0x948] sm:$0xff] }
 0x123   : > { %3625 = vmatpush2.bf16.msra.mxu1 %v6910_v3  ;;  %v600_v63 = vld [vmem:[#allocation5 + $0x968] sm:$0xff]  ;;  %v7110_v3 = vcombine.low %v732_v51, %v736_v55 }
 0x124   : > { %3626 = vmatprep.subr.bf16.mxu1 %v6903_v8  ;;  %v724_v0 = vld [vmem:[#allocation5 + $0xd48] sm:$0xff]  ;;  %v6975_v4 = vcombine.high %v596_v62, %v600_v63 }
 0x125   : > { %3586 = vmatpush2.bf16.msra.mxu0 %v6774_v10  ;;  %v728_v1 = vld [vmem:[#allocation5 + $0xd68] sm:$0xff]  ;;  %v6974_v10 = vcombine.low %v596_v62, %v600_v63 }
 0x126   : > { %3587 = vmatprep.subr.bf16.mxu0 %v6767_v12  ;;  %v7103_v5 = vcombine.high %v724_v0, %v728_v1  ;;  %v588_v6 = vld [vmem:[#allocation5 + $0x908] sm:$0xff] }
 0x127   : > { %3627 = vmatpush2.bf16.msra.mxu1 %v6902_v11  ;;  %v592_v7 = vld [vmem:[#allocation5 + $0x928] sm:$0xff]  ;;  %v7102_v11 = vcombine.low %v724_v0, %v728_v1 }
 0x128   : > { %3628 = vmatprep.subr.bf16.mxu1 %v6895_v17  ;;  %v716_v8 = vld [vmem:[#allocation5 + $0xd08] sm:$0xff]  ;;  %v6967_v12 = vcombine.high %v588_v6, %v592_v7 }
 0x129   : > { %3588 = vmatpush2.bf16.msra.mxu0 %v6766_v21  ;;  %v720_v9 = vld [vmem:[#allocation5 + $0xd28] sm:$0xff]  ;;  %v6966_v21 = vcombine.low %v588_v6, %v592_v7 }
 0x12a   : > { %3589 = vmatprep.subr.bf16.mxu0 %v6759_v24  ;;  %v7095_v13 = vcombine.high %v716_v8, %v720_v9  ;;  %v580_v14 = vld [vmem:[#allocation5 + $0x8c8] sm:$0xff] }
 0x12b   : > { %3629 = vmatpush2.bf16.msra.mxu1 %v6894_v23  ;;  %v584_v15 = vld [vmem:[#allocation5 + $0x8e8] sm:$0xff]  ;;  %v7094_v23 = vcombine.low %v716_v8, %v720_v9 }
 0x12c   : > { %3630 = vmatprep.subr.bf16.mxu1 %v6887_v27  ;;  %v708_v17 = vld [vmem:[#allocation5 + $0xcc8] sm:$0xff]  ;;  %v6959_v24 = vcombine.high %v580_v14, %v584_v15 }
 0x12d   : > { %3590 = vmatpush2.bf16.msra.mxu0 %v6758_v30  ;;  %v712_v18 = vld [vmem:[#allocation5 + $0xce8] sm:$0xff]  ;;  %v6958_v30 = vcombine.low %v580_v14, %v584_v15 }
 0x12e   : > { %3591 = vmatprep.subr.bf16.mxu0 %v6751_v32  ;;  %v7087_v25 = vcombine.high %v708_v17, %v712_v18  ;;  %v572_v26 = vld [vmem:[#allocation5 + $0x888] sm:$0xff] }
 0x12f   : > { %3631 = vmatpush2.bf16.msra.mxu1 %v6886_v31  ;;  %v576_v53 = vld [vmem:[#allocation5 + $0x8a8] sm:$0xff]  ;;  %v7086_v31 = vcombine.low %v708_v17, %v712_v18 }
 0x130   : > { %3632 = vmatprep.subr.bf16.mxu1 %v6879_v36  ;;  %v700_v27 = vld [vmem:[#allocation5 + $0xc88] sm:$0xff]  ;;  %v6951_v32 = vcombine.high %v572_v26, %v576_v53 }
 0x131   : > { %3592 = vmatpush2.bf16.msra.mxu0 %v6750_v40  ;;  %v704_v28 = vld [vmem:[#allocation5 + $0xca8] sm:$0xff]  ;;  %v6950_v40 = vcombine.low %v572_v26, %v576_v53 }
 0x132   : > { %3593 = vmatprep.subr.bf16.mxu0 %v6743_v42  ;;  %v7079_v33 = vcombine.high %v700_v27, %v704_v28  ;;  %v564_v34 = vld [vmem:[#allocation5 + $0x848] sm:$0xff] }
 0x133   : > { %3633 = vmatpush2.bf16.msra.mxu1 %v6878_v41  ;;  %v568_v35 = vld [vmem:[#allocation5 + $0x868] sm:$0xff]  ;;  %v7078_v41 = vcombine.low %v700_v27, %v704_v28 }
 0x134   : > { %3634 = vmatprep.subr.bf16.mxu1 %v6871_v46  ;;  %v692_v36 = vld [vmem:[#allocation5 + $0xc48] sm:$0xff]  ;;  %v6943_v42 = vcombine.high %v564_v34, %v568_v35 }
 0x135   : > { %3594 = vmatpush2.bf16.msra.mxu0 %v6742_v19  ;;  %v696_v37 = vld [vmem:[#allocation5 + $0xc68] sm:$0xff]  ;;  %v6942_v19 = vcombine.low %v564_v34, %v568_v35 }
 0x136   : > { %3645 = vmatprep.subr.bf16.mxu0 %v6991_v48  ;;  %v7071_v43 = vcombine.high %v692_v36, %v696_v37  ;;  %v556_v44 = vld [vmem:[#allocation5 + $0x808] sm:$0xff] }
 0x137   : > { %3635 = vmatpush2.bf16.msra.mxu1 %v6870_v22  ;;  %v560_v45 = vld [vmem:[#allocation5 + $0x828] sm:$0xff]  ;;  %v7070_v22 = vcombine.low %v692_v36, %v696_v37 }
 0x138   : > { %3686 = vmatprep.subr.bf16.mxu1 %v7119_v52  ;;  %3596 = vmatmul.mubr.bf16.vlgmr.msra.gmra.mxu0 %v8392_v16  ;;  %v684_v46 = vld [vmem:[#allocation5 + $0xc08] sm:$0xff]  ;;  %v6935_v48 = vcombine.high %v556_v44, %v560_v45 }
 0x139   : > { %3646 = vmatpush1.bf16.msra.mxu0 %v6990_v56  ;;  %3677 = vmatprep.mubr.bf16.mxu0 %v8406_v29  ;;  %v688_v47 = vld [vmem:[#allocation5 + $0xc28] sm:$0xff]  ;;  %v6934_v56 = vcombine.low %v556_v44, %v560_v45 }
 0x13a   : > { %3637 = vmatmul.mubr.bf16.vlgmr.msra.gmra.mxu1 %v8399_v20  ;;  %3647 = vmatprep.subr.bf16.mxu0 %v6983_v60  ;;  %v7063_v49 = vcombine.high %v684_v46, %v688_v47  ;;  %v676_v50 = vld [vmem:[#allocation5 + $0xbc8] sm:$0xff] }
 0x13b   : > { %3687 = vmatpush1.bf16.msra.mxu1 %v7118_v57  ;;  %3718 = vmatprep.mubr.bf16.mxu1 %v8411_v54  ;;  %v680_v51 = vld [vmem:[#allocation5 + $0xbe8] sm:$0xff]  ;;  %v7062_v57 = vcombine.low %v684_v46, %v688_v47 }
 0x13c   : > { %3688 = vmatprep.subr.bf16.mxu1 %v7111_v61  ;;  %v804_v52 = vld [vmem:[#allocation5 + $0xfc8] sm:$0xff]  ;;  %v7055_v60 = vcombine.high %v676_v50, %v680_v51 }
 0x13d   : > { %3648 = vmatpush1.bf16.msra.mxu0 %v6982_v2  ;;  %v808_v55 = vld [vmem:[#allocation5 + $0xfe8] sm:$0xff]  ;;  %v7054_v2 = vcombine.low %v676_v50, %v680_v51 }
 0x13e   : > { %3649 = vmatprep.subr.bf16.mxu0 %v6975_v4  ;;  %v7183_v61 = vcombine.high %v804_v52, %v808_v55  ;;  %v668_v62 = vld [vmem:[#allocation5 + $0xb88] sm:$0xff] }
 0x13f   : > { %3689 = vmatpush1.bf16.msra.mxu1 %v7110_v3  ;;  %v672_v63 = vld [vmem:[#allocation5 + $0xba8] sm:$0xff]  ;;  %v7182_v3 = vcombine.low %v804_v52, %v808_v55 }
 0x140   : > { %3690 = vmatprep.subr.bf16.mxu1 %v7103_v5  ;;  %v796_v0 = vld [vmem:[#allocation5 + $0xf88] sm:$0xff]  ;;  %v7047_v4 = vcombine.high %v668_v62, %v672_v63 }
 0x141   : > { %3650 = vmatpush1.bf16.msra.mxu0 %v6974_v10  ;;  %v800_v1 = vld [vmem:[#allocation5 + $0xfa8] sm:$0xff]  ;;  %v7046_v10 = vcombine.low %v668_v62, %v672_v63  ;;  %v357_v62 = vld [vmem:[#allocation5 + $0x1d0] sm:$0xff] }
 0x142   : > { %3651 = vmatprep.subr.bf16.mxu0 %v6967_v12  ;;  %v7175_v5 = vcombine.high %v796_v0, %v800_v1  ;;  %v660_v6 = vld [vmem:[#allocation5 + $0xb48] sm:$0xff]  ;;  %v361_v63 = vld [vmem:[#allocation5 + $0x1f0] sm:$0xff] }
 0x143   : > { %3691 = vmatpush1.bf16.msra.mxu1 %v7102_v11  ;;  %v664_v7 = vld [vmem:[#allocation5 + $0xb68] sm:$0xff]  ;;  %v7174_v11 = vcombine.low %v796_v0, %v800_v1  ;;  %v485_v0 = vld [vmem:[#allocation5 + $0x5d0] sm:$0xff] }
 0x144   : > { %3692 = vmatprep.subr.bf16.mxu1 %v7095_v13  ;;  %v788_v8 = vld [vmem:[#allocation5 + $0xf48] sm:$0xff]  ;;  %v7039_v12 = vcombine.high %v660_v6, %v664_v7  ;;  %v489_v1 = vld [vmem:[#allocation5 + $0x5f0] sm:$0xff] }
 0x145   : > { %3652 = vmatpush1.bf16.msra.mxu0 %v6966_v21  ;;  %v792_v9 = vld [vmem:[#allocation5 + $0xf68] sm:$0xff]  ;;  %v7038_v21 = vcombine.low %v660_v6, %v664_v7  ;;  %v349_v6 = vld [vmem:[#allocation5 + $0x190] sm:$0xff] }
 0x146   : > { %3653 = vmatprep.subr.bf16.mxu0 %v6959_v24  ;;  %v7167_v13 = vcombine.high %v788_v8, %v792_v9  ;;  %v652_v14 = vld [vmem:[#allocation5 + $0xb08] sm:$0xff]  ;;  %v353_v7 = vld [vmem:[#allocation5 + $0x1b0] sm:$0xff] }
 0x147   : > { %3693 = vmatpush1.bf16.msra.mxu1 %v7094_v23  ;;  %v656_v15 = vld [vmem:[#allocation5 + $0xb28] sm:$0xff]  ;;  %v7166_v23 = vcombine.low %v788_v8, %v792_v9  ;;  %v477_v8 = vld [vmem:[#allocation5 + $0x590] sm:$0xff] }
 0x148   : > { %3694 = vmatprep.subr.bf16.mxu1 %v7087_v25  ;;  %v780_v17 = vld [vmem:[#allocation5 + $0xf08] sm:$0xff]  ;;  %v7031_v24 = vcombine.high %v652_v14, %v656_v15  ;;  %v481_v9 = vld [vmem:[#allocation5 + $0x5b0] sm:$0xff] }
 0x149   : > { %3654 = vmatpush1.bf16.msra.mxu0 %v6958_v30  ;;  %v784_v18 = vld [vmem:[#allocation5 + $0xf28] sm:$0xff]  ;;  %v7030_v30 = vcombine.low %v652_v14, %v656_v15  ;;  %v341_v14 = vld [vmem:[#allocation5 + $0x150] sm:$0xff] }
 0x14a   : > { %3655 = vmatprep.subr.bf16.mxu0 %v6951_v32  ;;  %v7159_v25 = vcombine.high %v780_v17, %v784_v18  ;;  %v644_v26 = vld [vmem:[#allocation5 + $0xac8] sm:$0xff]  ;;  %v345_v15 = vld [vmem:[#allocation5 + $0x170] sm:$0xff] }
 0x14b   : > { %3695 = vmatpush1.bf16.msra.mxu1 %v7086_v31  ;;  %v648_v53 = vld [vmem:[#allocation5 + $0xae8] sm:$0xff]  ;;  %v7158_v31 = vcombine.low %v780_v17, %v784_v18  ;;  %v469_v18 = vld [vmem:[#allocation5 + $0x550] sm:$0xff] }
 0x14c   : > { %3696 = vmatprep.subr.bf16.mxu1 %v7079_v33  ;;  %v772_v27 = vld [vmem:[#allocation5 + $0xec8] sm:$0xff]  ;;  %v7023_v32 = vcombine.high %v644_v26, %v648_v53 }
 0x14d   : > { %3656 = vmatpush1.bf16.msra.mxu0 %v6950_v40  ;;  %v776_v28 = vld [vmem:[#allocation5 + $0xee8] sm:$0xff]  ;;  %v7022_v40 = vcombine.low %v644_v26, %v648_v53  ;;  %v6856_v53 = vcombine.low %v477_v8, %v481_v9 }
 0x14e   : > { %3657 = vmatprep.subr.bf16.mxu0 %v6943_v42  ;;  %v7151_v33 = vcombine.high %v772_v27, %v776_v28  ;;  %v636_v34 = vld [vmem:[#allocation5 + $0xa88] sm:$0xff] }
 0x14f   : > { %3697 = vmatpush1.bf16.msra.mxu1 %v7078_v41  ;;  %v640_v35 = vld [vmem:[#allocation5 + $0xaa8] sm:$0xff]  ;;  %v7150_v41 = vcombine.low %v772_v27, %v776_v28  ;;  %v6721_v27 = vcombine.high %v341_v14, %v345_v15 }
 0x150   : > { %3698 = vmatprep.subr.bf16.mxu1 %v7071_v43  ;;  %v764_v36 = vld [vmem:[#allocation5 + $0xe88] sm:$0xff]  ;;  %v7015_v42 = vcombine.high %v636_v34, %v640_v35 }
 0x151   : > { %3658 = vmatpush1.bf16.msra.mxu0 %v6942_v19  ;;  %v768_v37 = vld [vmem:[#allocation5 + $0xea8] sm:$0xff]  ;;  %v7014_v19 = vcombine.low %v636_v34, %v640_v35  ;;  %v461_v35 = vld [vmem:[#allocation5 + $0x510] sm:$0xff] }
 0x152   : > { %3659 = vmatprep.subr.bf16.mxu0 %v6935_v48  ;;  %v7143_v43 = vcombine.high %v764_v36, %v768_v37  ;;  %v628_v44 = vld [vmem:[#allocation5 + $0xa48] sm:$0xff] }
 0x153   : > { %3699 = vmatpush1.bf16.msra.mxu1 %v7070_v22  ;;  %v632_v45 = vld [vmem:[#allocation5 + $0xa68] sm:$0xff]  ;;  %v7142_v22 = vcombine.low %v764_v36, %v768_v37  ;;  %v465_v36 = vld [vmem:[#allocation5 + $0x530] sm:$0xff] }
 0x154   : > { %3700 = vmatprep.subr.bf16.mxu1 %v7063_v49  ;;  %v756_v46 = vld [vmem:[#allocation5 + $0xe48] sm:$0xff]  ;;  %v7007_v48 = vcombine.high %v628_v44, %v632_v45 }
 0x155   : > { %3660 = vmatpush1.bf16.msra.mxu0 %v6934_v56  ;;  %v760_v47 = vld [vmem:[#allocation5 + $0xe68] sm:$0xff]  ;;  %v7006_v56 = vcombine.low %v628_v44, %v632_v45  ;;  %v6841_v45 = vcombine.high %v461_v35, %v465_v36 }
 0x156   : > { %3661 = vmatprep.subr.bf16.mxu0 %v7055_v60  ;;  %v7135_v49 = vcombine.high %v756_v46, %v760_v47  ;;  %v620_v50 = vld [vmem:[#allocation5 + $0xa08] sm:$0xff] }
 0x157   : > { %3701 = vmatpush1.bf16.msra.mxu1 %v7062_v57  ;;  %v624_v51 = vld [vmem:[#allocation5 + $0xa28] sm:$0xff]  ;;  %v7134_v57 = vcombine.low %v756_v46, %v760_v47  ;;  %v325_v46 = vld [vmem:[#allocation5 + $0xd0] sm:$0xff] }
 0x158   : > { %3702 = vmatprep.subr.bf16.mxu1 %v7183_v61  ;;  %v748_v52 = vld [vmem:[#allocation5 + $0xe08] sm:$0xff]  ;;  %v6999_v60 = vcombine.high %v620_v50, %v624_v51  ;;  %v329_v47 = vld [vmem:[#allocation5 + $0xf0] sm:$0xff] }
 0x159   : > { %3662 = vmatpush2.bf16.msra.mxu0 %v7054_v2  ;;  %v752_v55 = vld [vmem:[#allocation5 + $0xe28] sm:$0xff]  ;;  %v6998_v2 = vcombine.low %v620_v50, %v624_v51  ;;  %v6705_v50 = vcombine.high %v325_v46, %v329_v47 }
 0x15a   : > { %3663 = vmatprep.subr.bf16.mxu0 %v7047_v4  ;;  %v7127_v61 = vcombine.high %v748_v52, %v752_v55  ;;  %v6737_v4 = vcombine.high %v357_v62, %v361_v63 }
 0x15b   : > { %3703 = vmatpush2.bf16.msra.mxu1 %v7182_v3  ;;  %v7126_v3 = vcombine.low %v748_v52, %v752_v55  ;;  %v317_v52 = vld [vmem:[#allocation5 + $0x90] sm:$0xff] }
 0x15c   : > { %3704 = vmatprep.subr.bf16.mxu1 %v7175_v5  ;;  %v6865_v5 = vcombine.high %v485_v0, %v489_v1  ;;  %v321_v55 = vld [vmem:[#allocation5 + $0xb0] sm:$0xff] }
 0x15d   : > { %3664 = vmatpush2.bf16.msra.mxu0 %v7046_v10  ;;  %v6736_v10 = vcombine.low %v357_v62, %v361_v63  ;;  %v6697_v62 = vcombine.high %v317_v52, %v321_v55 }
 0x15e   : > { %3665 = vmatprep.subr.bf16.mxu0 %v7039_v12  ;;  %v6729_v12 = vcombine.high %v349_v6, %v353_v7 }
 0x15f   : > { %3705 = vmatpush2.bf16.msra.mxu1 %v7174_v11  ;;  %v6864_v11 = vcombine.low %v485_v0, %v489_v1  ;;  %v309_v0 = vld [vmem:[#allocation5 + $0x50] sm:$0xff] }
 0x160   : > { %3706 = vmatprep.subr.bf16.mxu1 %v7167_v13  ;;  %v6857_v13 = vcombine.high %v477_v8, %v481_v9  ;;  %v313_v1 = vld [vmem:[#allocation5 + $0x70] sm:$0xff] }
 0x161   : > { %3666 = vmatpush2.bf16.msra.mxu0 %v7038_v21  ;;  %v473_v21 = vld [vmem:[#allocation5 + $0x570] sm:$0xff] }
 0x162   : > { %3667 = vmatprep.subr.bf16.mxu0 %v7031_v24  ;;  %v6728_v24 = vcombine.low %v349_v6, %v353_v7  ;;  %v6689_v6 = vcombine.high %v309_v0, %v313_v1  ;;  %v301_v8 = vld [vmem:[#allocation5 + $0x10] sm:$0xff] }
 0x163   : > { %3707 = vmatpush2.bf16.msra.mxu1 %v7166_v23  ;;  %v305_v9 = vld [vmem:[#allocation5 + $0x30] sm:$0xff] }
 0x164   : > { %3708 = vmatprep.subr.bf16.mxu1 %v7159_v25 }
 0x165   : > { %3668 = vmatpush2.bf16.msra.mxu0 %v7030_v30  ;;  %v6849_v30 = vcombine.high %v469_v18, %v473_v21 }
 0x166   : > { %3669 = vmatprep.subr.bf16.mxu0 %v7023_v32  ;;  %v337_v32 = vld [vmem:[#allocation5 + $0x130] sm:$0xff] }
 0x167   : > { %3709 = vmatpush2.bf16.msra.mxu1 %v7158_v31  ;;  %v333_v31 = vld [vmem:[#allocation5 + $0x110] sm:$0xff] }
 0x168   : > { %3710 = vmatprep.subr.bf16.mxu1 %v7151_v33 }
 0x169   : > { %3670 = vmatpush2.bf16.msra.mxu0 %v7022_v40  ;;  %v6720_v40 = vcombine.low %v341_v14, %v345_v15  ;;  %v6681_v14 = vcombine.high %v301_v8, %v305_v9 }
 0x16a   : > { %3671 = vmatprep.subr.bf16.mxu0 %v7015_v42  ;;  %v6848_v42 = vcombine.low %v469_v18, %v473_v21  ;;  %v425_v18 = vld [vmem:[#allocation5 + $0x3f0] sm:$0xff] }
 0x16b   : > { %3711 = vmatpush2.bf16.msra.mxu1 %v7150_v41  ;;  %v549_v21 = vld [vmem:[#allocation5 + $0x7d0] sm:$0xff] }
 0x16c   : > { %3712 = vmatprep.subr.bf16.mxu1 %v7143_v43  ;;  %v6713_v43 = vcombine.high %v333_v31, %v337_v32 }
 0x16d   : > { %3672 = vmatpush2.bf16.msra.mxu0 %v7014_v19  ;;  %v453_v19 = vld [vmem:[#allocation5 + $0x4d0] sm:$0xff] }
 0x16e   : > { %3673 = vmatprep.subr.bf16.mxu0 %v7007_v48  ;;  %v6712_v48 = vcombine.low %v333_v31, %v337_v32  ;;  %v541_v31 = vld [vmem:[#allocation5 + $0x790] sm:$0xff] }
 0x16f   : > { %3713 = vmatpush2.bf16.msra.mxu1 %v7142_v22  ;;  %v457_v22 = vld [vmem:[#allocation5 + $0x4f0] sm:$0xff] }
 0x170   : > { %3714 = vmatprep.subr.bf16.mxu1 %v7135_v49  ;;  %v6840_v49 = vcombine.low %v461_v35, %v465_v36  ;;  %v6833_v51 = vcombine.high %v453_v19, %v457_v22  ;;  %v545_v32 = vld [vmem:[#allocation5 + $0x7b0] sm:$0xff] }
 0x171   : > { %3674 = vmatpush2.bf16.msra.mxu0 %v7006_v56  ;;  %v445_v56 = vld [vmem:[#allocation5 + $0x490] sm:$0xff] }
 0x172   : > { %3675 = vmatprep.subr.bf16.mxu0 %v6999_v60  ;;  %v6704_v60 = vcombine.low %v325_v46, %v329_v47 }
 0x173   : > { %3715 = vmatpush2.bf16.msra.mxu1 %v7134_v57  ;;  %v449_v57 = vld [vmem:[#allocation5 + $0x4b0] sm:$0xff] }
 0x174   : > { %3716 = vmatprep.subr.bf16.mxu1 %v7127_v61  ;;  %v6832_v61 = vcombine.low %v453_v19, %v457_v22  ;;  %v6825_v63 = vcombine.high %v445_v56, %v449_v57  ;;  %v397_v19 = vld [vmem:[#allocation5 + $0x310] sm:$0xff] }
 0x175   : > { %3676 = vmatpush2.bf16.msra.mxu0 %v6998_v2  ;;  %v437_v2 = vld [vmem:[#allocation5 + $0x450] sm:$0xff] }
 0x176   : > { %3727 = vmatprep.subr.bf16.mxu0 %v6737_v4  ;;  %v6696_v4 = vcombine.low %v317_v52, %v321_v55  ;;  %v401_v22 = vld [vmem:[#allocation5 + $0x330] sm:$0xff] }
 0x177   : > { %3717 = vmatpush2.bf16.msra.mxu1 %v7126_v3  ;;  %v441_v3 = vld [vmem:[#allocation5 + $0x470] sm:$0xff]  ;;  %v6777_v52 = vcombine.high %v397_v19, %v401_v22 }
 0x178   : > { %3768 = vmatprep.subr.bf16.mxu1 %v6865_v5  ;;  %v3433_v17 = vpop.f32.mrf.mxu0  ;;  %3678 = vmatmul.mubr.bf16.vlgmr.msra.gmra.mxu0 %v8418_v38  ;;  %v6824_v5 = vcombine.low %v445_v56, %v449_v57  ;;  %v6817_v7 = vcombine.high %v437_v2, %v441_v3  ;;  %v389_v56 = vld [vmem:[#allocation5 + $0x2d0] sm:$0xff] }
 0x179   : > { %3728 = vmatpush1.bf16.msra.mxu0 %v6736_v10  ;;  %3759 = vmatprep.mubr.bf16.mxu0 %v8382_v58  ;;  %v429_v10 = vld [vmem:[#allocation5 + $0x410] sm:$0xff] }
 0x17a   : > { %v3474_v23 = vpop.f32.mrf.mxu1  ;;  %3719 = vmatmul.mubr.bf16.vlgmr.msra.gmra.mxu1 %v8422_v39  ;;  %v3435_v26 = vpop.f32.mrf.mxu0  ;;  %3729 = vmatprep.subr.bf16.mxu0 %v6729_v12  ;;  %v6688_v12 = vcombine.low %v309_v0, %v313_v1  ;;  %v393_v57 = vld [vmem:[#allocation5 + $0x2f0] sm:$0xff] }
 0x17b   : > { %v8434_v25 = vadd.f32 %v3474_v23, %v3433_v17  ;;  %3769 = vmatpush1.bf16.msra.mxu1 %v6864_v11  ;;  %3800 = vmatprep.mubr.bf16.mxu1 %v8386_v59  ;;  %v433_v11 = vld [vmem:[#allocation5 + $0x430] sm:$0xff]  ;;  %v6769_v0 = vcombine.high %v389_v56, %v393_v57 }
 0x17c   : > { %v3476_v28 = vpop.f32.mrf.mxu1  ;;  %3770 = vmatprep.subr.bf16.mxu1 %v6857_v13  ;;  %v3437_v34 = vpop.f32.mrf.mxu0  ;;  %v6816_v13 = vcombine.low %v437_v2, %v441_v3  ;;  %v6809_v15 = vcombine.high %v429_v10, %v433_v11  ;;  %v421_v17 = vld [vmem:[#allocation5 + $0x3d0] sm:$0xff] }
 0x17d   : > { %v8437_v33 = vadd.f32 %v3476_v28, %v3435_v26  ;;  %3730 = vmatpush1.bf16.msra.mxu0 %v6728_v24  ;;  %v553_v23 = vld [vmem:[#allocation5 + $0x7f0] sm:$0xff]  ;;  %v6680_v24 = vcombine.low %v301_v8, %v305_v9  ;;  %v6808_v26 = vcombine.low %v429_v10, %v433_v11  ;;  %v6800_v34 = vcombine.low %v421_v17, %v425_v18 }
 0x17e   : > { %v3478_v37 = vpop.f32.mrf.mxu1  ;;  %v3438_v41 = vpop.f32.mrf.mxu0  ;;  %3731 = vmatprep.subr.bf16.mxu0 %v6721_v27  ;;  %v6929_v27 = vcombine.high %v549_v21, %v553_v23  ;;  %v413_v28 = vld [vmem:[#allocation5 + $0x390] sm:$0xff]  ;;  %v6928_v35 = vcombine.low %v549_v21, %v553_v23 }
 0x17f   : > { %3771 = vmatpush1.bf16.msra.mxu1 %v6856_v53  ;;  %v6801_v53 = vcombine.high %v421_v17, %v425_v18  ;;  %v6921_v37 = vcombine.high %v541_v31, %v545_v32  ;;  %v409_v41 = vld [vmem:[#allocation5 + $0x370] sm:$0xff] }
 0x180   : > { %v3479_v44 = vpop.f32.mrf.mxu1  ;;  %3772 = vmatprep.subr.bf16.mxu1 %v6849_v30  ;;  %v417_v30 = vld [vmem:[#allocation5 + $0x3b0] sm:$0xff] }
 0x181   : > { %3732 = vmatpush1.bf16.msra.mxu0 %v6720_v40  ;;  %v6793_v36 = vcombine.high %v413_v28, %v417_v30  ;;  %v405_v40 = vld [vmem:[#allocation5 + $0x350] sm:$0xff]  ;;  %v6792_v44 = vcombine.low %v413_v28, %v417_v30 }
 0x182   : > { %3733 = vmatprep.subr.bf16.mxu0 %v6713_v43  ;;  %v537_v43 = vld [vmem:[#allocation5 + $0x770] sm:$0xff]  ;;  %v6785_v46 = vcombine.high %v405_v40, %v409_v41 }
 0x183   : > { %3773 = vmatpush1.bf16.msra.mxu1 %v6848_v42  ;;  %v533_v42 = vld [vmem:[#allocation5 + $0x750] sm:$0xff] }
 0x184   : > { %3774 = vmatprep.subr.bf16.mxu1 %v6841_v45  ;;  %v6920_v45 = vcombine.low %v541_v31, %v545_v32  ;;  %v6913_v47 = vcombine.high %v533_v42, %v537_v43  ;;  %v381_v2 = vld [vmem:[#allocation5 + $0x290] sm:$0xff] }
 0x185   : > { %3734 = vmatpush1.bf16.msra.mxu0 %v6712_v48  ;;  %v525_v48 = vld [vmem:[#allocation5 + $0x710] sm:$0xff] }
 0x186   : > { %3735 = vmatprep.subr.bf16.mxu0 %v6705_v50  ;;  %v6784_v50 = vcombine.low %v405_v40, %v409_v41  ;;  %v385_v3 = vld [vmem:[#allocation5 + $0x2b0] sm:$0xff] }
 0x187   : > { %3775 = vmatpush1.bf16.msra.mxu1 %v6840_v49  ;;  %v529_v49 = vld [vmem:[#allocation5 + $0x730] sm:$0xff]  ;;  %v6761_v8 = vcombine.high %v381_v2, %v385_v3 }
 0x188   : > { %3776 = vmatprep.subr.bf16.mxu1 %v6833_v51  ;;  %v6912_v51 = vcombine.low %v533_v42, %v537_v43  ;;  %v6905_v55 = vcombine.high %v525_v48, %v529_v49  ;;  %v373_v10 = vld [vmem:[#allocation5 + $0x250] sm:$0xff] }
 0x189   : > { %3736 = vmatpush1.bf16.msra.mxu0 %v6704_v60  ;;  %v517_v60 = vld [vmem:[#allocation5 + $0x6d0] sm:$0xff] }
 0x18a   : > { %3737 = vmatprep.subr.bf16.mxu0 %v6697_v62  ;;  %v6776_v62 = vcombine.low %v397_v19, %v401_v22  ;;  %v377_v11 = vld [vmem:[#allocation5 + $0x270] sm:$0xff] }
 0x18b   : > { %3777 = vmatpush1.bf16.msra.mxu1 %v6832_v61  ;;  %v521_v61 = vld [vmem:[#allocation5 + $0x6f0] sm:$0xff]  ;;  %v6753_v17 = vcombine.high %v373_v10, %v377_v11 }
 0x18c   : > { %3778 = vmatprep.subr.bf16.mxu1 %v6825_v63  ;;  %v6904_v63 = vcombine.low %v525_v48, %v529_v49  ;;  %v6897_v1 = vcombine.high %v517_v60, %v521_v61  ;;  %v365_v21 = vld [vmem:[#allocation5 + $0x210] sm:$0xff] }
 0x18d   : > { %3738 = vmatpush1.bf16.msra.mxu0 %v6696_v4  ;;  %v509_v4 = vld [vmem:[#allocation5 + $0x690] sm:$0xff] }
 0x18e   : > { %3739 = vmatprep.subr.bf16.mxu0 %v6689_v6  ;;  %v6768_v6 = vcombine.low %v389_v56, %v393_v57  ;;  %v369_v23 = vld [vmem:[#allocation5 + $0x230] sm:$0xff] }
 0x18f   : > { %3779 = vmatpush1.bf16.msra.mxu1 %v6824_v5  ;;  %v513_v5 = vld [vmem:[#allocation5 + $0x6b0] sm:$0xff]  ;;  %v6745_v28 = vcombine.high %v365_v21, %v369_v23 }
 0x190   : > { %3780 = vmatprep.subr.bf16.mxu1 %v6817_v7  ;;  %v6896_v7 = vcombine.low %v517_v60, %v521_v61  ;;  %v6889_v9 = vcombine.high %v509_v4, %v513_v5  ;;  %v613_v31 = vld [vmem:[#allocation5 + $0x9d0] sm:$0xff] }
 0x191   : > { %3740 = vmatpush1.bf16.msra.mxu0 %v6688_v12  ;;  %v501_v12 = vld [vmem:[#allocation5 + $0x650] sm:$0xff] }
 0x192   : > { %3741 = vmatprep.subr.bf16.mxu0 %v6681_v14  ;;  %v6760_v14 = vcombine.low %v381_v2, %v385_v3  ;;  %v617_v32 = vld [vmem:[#allocation5 + $0x9f0] sm:$0xff] }
 0x193   : > { %3781 = vmatpush1.bf16.msra.mxu1 %v6816_v13  ;;  %v505_v13 = vld [vmem:[#allocation5 + $0x670] sm:$0xff]  ;;  %v6993_v40 = vcombine.high %v613_v31, %v617_v32 }
 0x194   : > { %3782 = vmatprep.subr.bf16.mxu1 %v6809_v15  ;;  %v6888_v15 = vcombine.low %v509_v4, %v513_v5  ;;  %v6881_v18 = vcombine.high %v501_v12, %v505_v13  ;;  %v605_v42 = vld [vmem:[#allocation5 + $0x990] sm:$0xff] }
 0x195   : > { %3742 = vmatpush1.bf16.msra.mxu0 %v6680_v24  ;;  %v493_v24 = vld [vmem:[#allocation5 + $0x610] sm:$0xff] }
 0x196   : > { %3743 = vmatprep.subr.bf16.mxu0 %v6801_v53  ;;  %v6752_v53 = vcombine.low %v373_v10, %v377_v11  ;;  %v609_v43 = vld [vmem:[#allocation5 + $0x9b0] sm:$0xff] }
 0x197   : > { %3783 = vmatpush1.bf16.msra.mxu1 %v6808_v26  ;;  %v497_v26 = vld [vmem:[#allocation5 + $0x630] sm:$0xff]  ;;  %v6985_v19 = vcombine.high %v605_v42, %v609_v43  ;;  %v6984_v57 = vcombine.low %v605_v42, %v609_v43 }
 0x198   : > { %3784 = vmatprep.subr.bf16.mxu1 %v6929_v27  ;;  %v6880_v27 = vcombine.low %v501_v12, %v505_v13  ;;  %v6873_v30 = vcombine.high %v493_v24, %v497_v26  ;;  %v597_v48 = vld [vmem:[#allocation5 + $0x950] sm:$0xff] }
 0x199   : > { %3744 = vmatpush2.bf16.msra.mxu0 %v6800_v34  ;;  %v741_v34 = vld [vmem:[#allocation5 + $0xdd0] sm:$0xff] }
 0x19a   : > { %3745 = vmatprep.subr.bf16.mxu0 %v6793_v36  ;;  %v6744_v36 = vcombine.low %v365_v21, %v369_v23  ;;  %v601_v49 = vld [vmem:[#allocation5 + $0x970] sm:$0xff] }
 0x19b   : > { %3785 = vmatpush2.bf16.msra.mxu1 %v6928_v35  ;;  %v745_v35 = vld [vmem:[#allocation5 + $0xdf0] sm:$0xff] }
 0x19c   : > { %3786 = vmatprep.subr.bf16.mxu1 %v6921_v37  ;;  %v6872_v37 = vcombine.low %v493_v24, %v497_v26  ;;  %v7121_v41 = vcombine.high %v741_v34, %v745_v35  ;;  %v589_v3 = vld [vmem:[#allocation5 + $0x910] sm:$0xff] }
 0x19d   : > { %3746 = vmatpush2.bf16.msra.mxu0 %v6792_v44  ;;  %v733_v44 = vld [vmem:[#allocation5 + $0xd90] sm:$0xff] }
 0x19e   : > { %3747 = vmatprep.subr.bf16.mxu0 %v6785_v46  ;;  %v6992_v46 = vcombine.low %v613_v31, %v617_v32  ;;  %v593_v4 = vld [vmem:[#allocation5 + $0x930] sm:$0xff] }
 0x19f   : > { %3787 = vmatpush2.bf16.msra.mxu1 %v6920_v45  ;;  %v737_v45 = vld [vmem:[#allocation5 + $0xdb0] sm:$0xff]  ;;  %v6969_v11 = vcombine.high %v589_v3, %v593_v4  ;;  %v6968_v21 = vcombine.low %v589_v3, %v593_v4 }
 0x1a0   : > { %3788 = vmatprep.subr.bf16.mxu1 %v6913_v47  ;;  %v7120_v47 = vcombine.low %v741_v34, %v745_v35  ;;  %v7113_v22 = vcombine.high %v733_v44, %v737_v45  ;;  %v7112_v61 = vcombine.low %v733_v44, %v737_v45  ;;  %v717_v5 = vld [vmem:[#allocation5 + $0xd10] sm:$0xff] }
 0x1a1   : > { %3748 = vmatpush2.bf16.msra.mxu0 %v6784_v50  ;;  %v797_v3 = vld [vmem:[#allocation5 + $0xf90] sm:$0xff] }
 0x1a2   : > { %3749 = vmatprep.subr.bf16.mxu0 %v6777_v52  ;;  %v729_v52 = vld [vmem:[#allocation5 + $0xd70] sm:$0xff] }
 0x1a3   : > { %3789 = vmatpush2.bf16.msra.mxu1 %v6912_v51  ;;  %v725_v51 = vld [vmem:[#allocation5 + $0xd50] sm:$0xff] }
 0x1a4   : > { %3790 = vmatprep.subr.bf16.mxu1 %v6905_v55  ;;  %v7105_v2 = vcombine.high %v725_v51, %v729_v52  ;;  %v801_v4 = vld [vmem:[#allocation5 + $0xfb0] sm:$0xff] }
 0x1a5   : > { %3750 = vmatpush2.bf16.msra.mxu0 %v6776_v62  ;;  %v6977_v62 = vcombine.high %v597_v48, %v601_v49 }
 0x1a6   : > { %3751 = vmatprep.subr.bf16.mxu0 %v6769_v0 }
 0x1a7   : > { %3791 = vmatpush2.bf16.msra.mxu1 %v6904_v63 }
 0x1a8   : > { %3792 = vmatprep.subr.bf16.mxu1 %v6897_v1 }
 0x1a9   : > { %3752 = vmatpush2.bf16.msra.mxu0 %v6768_v6  ;;  %v721_v6 = vld [vmem:[#allocation5 + $0xd30] sm:$0xff] }
 0x1aa   : > { %3753 = vmatprep.subr.bf16.mxu0 %v6761_v8  ;;  %v7097_v13 = vcombine.high %v717_v5, %v721_v6  ;;  %v7096_v23 = vcombine.low %v717_v5, %v721_v6 }
 0x1ab   : > { %3793 = vmatpush2.bf16.msra.mxu1 %v6896_v7 }
 0x1ac   : > { %3794 = vmatprep.subr.bf16.mxu1 %v6889_v9  ;;  %v6976_v9 = vcombine.low %v597_v48, %v601_v49 }
 0x1ad   : > { %3754 = vmatpush2.bf16.msra.mxu0 %v6760_v14  ;;  %v581_v14 = vld [vmem:[#allocation5 + $0x8d0] sm:$0xff] }
 0x1ae   : > { %3755 = vmatprep.subr.bf16.mxu0 %v6753_v17  ;;  %v709_v17 = vld [vmem:[#allocation5 + $0xcd0] sm:$0xff] }
 0x1af   : > { %3795 = vmatpush2.bf16.msra.mxu1 %v6888_v15  ;;  %v585_v15 = vld [vmem:[#allocation5 + $0x8f0] sm:$0xff] }
 0x1b0   : > { %3796 = vmatprep.subr.bf16.mxu1 %v6881_v18  ;;  %v713_v18 = vld [vmem:[#allocation5 + $0xcf0] sm:$0xff]  ;;  %v6961_v24 = vcombine.high %v581_v14, %v585_v15  ;;  %v6960_v31 = vcombine.low %v581_v14, %v585_v15 }
 0x1b1   : > { %3756 = vmatpush2.bf16.msra.mxu0 %v6752_v53  ;;  %v7089_v26 = vcombine.high %v709_v17, %v713_v18  ;;  %v573_v53 = vld [vmem:[#allocation5 + $0x890] sm:$0xff]  ;;  %v7088_v32 = vcombine.low %v709_v17, %v713_v18 }
 0x1b2   : > { %3757 = vmatprep.subr.bf16.mxu0 %v6745_v28  ;;  %v701_v28 = vld [vmem:[#allocation5 + $0xc90] sm:$0xff] }
 0x1b3   : > { %3797 = vmatpush2.bf16.msra.mxu1 %v6880_v27  ;;  %v577_v27 = vld [vmem:[#allocation5 + $0x8b0] sm:$0xff] }
 0x1b4   : > { %3798 = vmatprep.subr.bf16.mxu1 %v6873_v30  ;;  %v705_v30 = vld [vmem:[#allocation5 + $0xcb0] sm:$0xff]  ;;  %v6953_v34 = vcombine.high %v573_v53, %v577_v27  ;;  %v6952_v42 = vcombine.low %v573_v53, %v577_v27 }
 0x1b5   : > { %3758 = vmatpush2.bf16.msra.mxu0 %v6744_v36  ;;  %v7081_v35 = vcombine.high %v701_v28, %v705_v30  ;;  %v565_v36 = vld [vmem:[#allocation5 + $0x850] sm:$0xff]  ;;  %v7080_v43 = vcombine.low %v701_v28, %v705_v30 }
 0x1b6   : > { %3809 = vmatprep.subr.bf16.mxu0 %v6993_v40  ;;  %v693_v40 = vld [vmem:[#allocation5 + $0xc50] sm:$0xff] }
 0x1b7   : > { %3799 = vmatpush2.bf16.msra.mxu1 %v6872_v37  ;;  %v569_v37 = vld [vmem:[#allocation5 + $0x870] sm:$0xff] }
 0x1b8   : > { %3850 = vmatprep.subr.bf16.mxu1 %v7121_v41  ;;  %v3515_v50 = vpop.f32.mrf.mxu0  ;;  %3760 = vmatmul.mubr.bf16.vlgmr.msra.gmra.mxu0 %v8392_v16  ;;  %v697_v41 = vld [vmem:[#allocation5 + $0xc70] sm:$0xff]  ;;  %v6945_v44 = vcombine.high %v565_v36, %v569_v37  ;;  %v6944_v48 = vcombine.low %v565_v36, %v569_v37 }
 0x1b9   : > { %v3516_v55 = vadd.f32 %v3515_v50, %v8434_v25  ;;  %3810 = vmatpush1.bf16.msra.mxu0 %v6992_v46  ;;  %3841 = vmatprep.mubr.bf16.mxu0 %v8406_v29  ;;  %v7073_v45 = vcombine.high %v693_v40, %v697_v41  ;;  %v557_v46 = vld [vmem:[#allocation5 + $0x810] sm:$0xff]  ;;  %v7072_v49 = vcombine.low %v693_v40, %v697_v41 }
 0x1ba   : > { %v3556_v56 = vpop.f32.mrf.mxu1  ;;  %3801 = vmatmul.mubr.bf16.vlgmr.msra.gmra.mxu1 %v8399_v20  ;;  %v3517_v60 = vpop.f32.mrf.mxu0  ;;  %3811 = vmatprep.subr.bf16.mxu0 %v6985_v19  ;;  %v685_v19 = vld [vmem:[#allocation5 + $0xc10] sm:$0xff] }
 0x1bb   : > { %3851 = vmatpush1.bf16.msra.mxu1 %v7120_v47  ;;  %v8443_v63 = vadd.f32 %v3556_v56, %v3516_v55  ;;  %v3518_v0 = vadd.f32 %v3517_v60, %v8437_v33  ;;  %3882 = vmatprep.mubr.bf16.mxu1 %v8411_v54  ;;  %v7104_v33 = vcombine.low %v725_v51, %v729_v52  ;;  %v561_v47 = vld [vmem:[#allocation5 + $0x830] sm:$0xff] }
 0x1bc   : > { %v3558_v1 = vpop.f32.mrf.mxu1  ;;  %3852 = vmatprep.subr.bf16.mxu1 %v7113_v22  ;;  %v3519_v25 = vpop.f32.mrf.mxu0  ;;  %v689_v22 = vld [vmem:[#allocation5 + $0xc30] sm:$0xff]  ;;  %v6937_v50 = vcombine.high %v557_v46, %v561_v47  ;;  %v6936_v60 = vcombine.low %v557_v46, %v561_v47 }
 0x1bd   : > { %v8448_v7 = vadd.f32 %v3558_v1, %v3518_v0  ;;  %3812 = vmatpush1.bf16.msra.mxu0 %v6984_v57  ;;  %v7065_v51 = vcombine.high %v685_v19, %v689_v22  ;;  %v677_v52 = vld [vmem:[#allocation5 + $0xbd0] sm:$0xff] }
 0x1be   : > { %v3560_v8 = vpop.f32.mrf.mxu1  ;;  %v3520_v10 = vpop.f32.mrf.mxu0  ;;  %3813 = vmatprep.subr.bf16.mxu0 %v6977_v62  ;;  %v681_v55 = vld [vmem:[#allocation5 + $0xbf0] sm:$0xff] }
 0x1bf   : > { %3853 = vmatpush1.bf16.msra.mxu1 %v7112_v61  ;;  %v805_v56 = vld [vmem:[#allocation5 + $0xfd0] sm:$0xff]  ;;  %v7064_v61 = vcombine.low %v685_v19, %v689_v22  ;;  %v7057_v62 = vcombine.high %v677_v52, %v681_v55  ;;  %v7056_v25 = vcombine.low %v677_v52, %v681_v55  ;;  %v7177_v8 = vcombine.high %v797_v3, %v801_v4 }
 0x1c0   : > { %v3561_v12 = vpop.f32.mrf.mxu1  ;;  %3854 = vmatprep.subr.bf16.mxu1 %v7105_v2  ;;  %v809_v57 = vld [vmem:[#allocation5 + $0xff0] sm:$0xff] }
 0x1c1   : > { %3814 = vmatpush1.bf16.msra.mxu0 %v6976_v9  ;;  %v7185_v0 = vcombine.high %v805_v56, %v809_v57  ;;  %v669_v1 = vld [vmem:[#allocation5 + $0xb90] sm:$0xff]  ;;  %v7184_v5 = vcombine.low %v805_v56, %v809_v57 }
 0x1c2   : > { %3815 = vmatprep.subr.bf16.mxu0 %v6969_v11  ;;  %v673_v2 = vld [vmem:[#allocation5 + $0xbb0] sm:$0xff] }
 0x1c3   : > { %3855 = vmatpush1.bf16.msra.mxu1 %v7104_v33  ;;  %v7049_v6 = vcombine.high %v669_v1, %v673_v2  ;;  %v661_v9 = vld [vmem:[#allocation5 + $0xb50] sm:$0xff]  ;;  %v7048_v12 = vcombine.low %v669_v1, %v673_v2 }
 0x1c4   : > { %3856 = vmatprep.subr.bf16.mxu1 %v7097_v13  ;;  %v665_v10 = vld [vmem:[#allocation5 + $0xb70] sm:$0xff]  ;;  %v7176_v13 = vcombine.low %v797_v3, %v801_v4  ;;  %v358_v3 = vld [vmem:[#allocation5 + $0x1d8] sm:$0xff] }
 0x1c5   : > { %3816 = vmatpush1.bf16.msra.mxu0 %v6968_v21  ;;  %v789_v33 = vld [vmem:[#allocation5 + $0xf50] sm:$0xff]  ;;  %v7041_v14 = vcombine.high %v661_v9, %v665_v10  ;;  %v362_v4 = vld [vmem:[#allocation5 + $0x1f8] sm:$0xff] }
 0x1c6   : > { %3817 = vmatprep.subr.bf16.mxu0 %v6961_v24  ;;  %v793_v11 = vld [vmem:[#allocation5 + $0xf70] sm:$0xff]  ;;  %v7040_v24 = vcombine.low %v661_v9, %v665_v10  ;;  %v6739_v9 = vcombine.high %v358_v3, %v362_v4 }
 0x1c7   : > { %3857 = vmatpush1.bf16.msra.mxu1 %v7096_v23  ;;  %v7169_v15 = vcombine.high %v789_v33, %v793_v11  ;;  %v653_v17 = vld [vmem:[#allocation5 + $0xb10] sm:$0xff] }
 0x1c8   : > { %3858 = vmatprep.subr.bf16.mxu1 %v7089_v26  ;;  %v657_v18 = vld [vmem:[#allocation5 + $0xb30] sm:$0xff]  ;;  %v7168_v26 = vcombine.low %v789_v33, %v793_v11  ;;  %v350_v33 = vld [vmem:[#allocation5 + $0x198] sm:$0xff] }
 0x1c9   : > { %3818 = vmatpush1.bf16.msra.mxu0 %v6960_v31  ;;  %v781_v21 = vld [vmem:[#allocation5 + $0xf10] sm:$0xff]  ;;  %v7033_v53 = vcombine.high %v653_v17, %v657_v18  ;;  %v354_v11 = vld [vmem:[#allocation5 + $0x1b8] sm:$0xff] }
 0x1ca   : > { %3819 = vmatprep.subr.bf16.mxu0 %v6953_v34  ;;  %v785_v23 = vld [vmem:[#allocation5 + $0xf30] sm:$0xff]  ;;  %v7032_v34 = vcombine.low %v653_v17, %v657_v18  ;;  %v6731_v17 = vcombine.high %v350_v33, %v354_v11 }
 0x1cb   : > { %3859 = vmatpush1.bf16.msra.mxu1 %v7088_v32  ;;  %v7161_v27 = vcombine.high %v781_v21, %v785_v23  ;;  %v645_v28 = vld [vmem:[#allocation5 + $0xad0] sm:$0xff] }
 0x1cc   : > { %3860 = vmatprep.subr.bf16.mxu1 %v7081_v35  ;;  %v649_v30 = vld [vmem:[#allocation5 + $0xaf0] sm:$0xff]  ;;  %v7160_v35 = vcombine.low %v781_v21, %v785_v23  ;;  %v342_v21 = vld [vmem:[#allocation5 + $0x158] sm:$0xff] }
 0x1cd   : > { %3820 = vmatpush1.bf16.msra.mxu0 %v6952_v42  ;;  %v773_v31 = vld [vmem:[#allocation5 + $0xed0] sm:$0xff]  ;;  %v7025_v36 = vcombine.high %v645_v28, %v649_v30  ;;  %v346_v23 = vld [vmem:[#allocation5 + $0x178] sm:$0xff] }
 0x1ce   : > { %3821 = vmatprep.subr.bf16.mxu0 %v6945_v44  ;;  %v777_v32 = vld [vmem:[#allocation5 + $0xef0] sm:$0xff]  ;;  %v7024_v44 = vcombine.low %v645_v28, %v649_v30  ;;  %v6730_v28 = vcombine.low %v350_v33, %v354_v11 }
 0x1cf   : > { %3861 = vmatpush1.bf16.msra.mxu1 %v7080_v43  ;;  %v7153_v37 = vcombine.high %v773_v31, %v777_v32  ;;  %v637_v40 = vld [vmem:[#allocation5 + $0xa90] sm:$0xff] }
 0x1d0   : > { %3862 = vmatprep.subr.bf16.mxu1 %v7073_v45  ;;  %v641_v41 = vld [vmem:[#allocation5 + $0xab0] sm:$0xff]  ;;  %v7152_v45 = vcombine.low %v773_v31, %v777_v32 }
 0x1d1   : > { %3822 = vmatpush1.bf16.msra.mxu0 %v6944_v48  ;;  %v765_v42 = vld [vmem:[#allocation5 + $0xe90] sm:$0xff]  ;;  %v7017_v46 = vcombine.high %v637_v40, %v641_v41 }
 0x1d2   : > { %3823 = vmatprep.subr.bf16.mxu0 %v6937_v50  ;;  %v769_v43 = vld [vmem:[#allocation5 + $0xeb0] sm:$0xff]  ;;  %v7016_v50 = vcombine.low %v637_v40, %v641_v41  ;;  %v338_v40 = vld [vmem:[#allocation5 + $0x138] sm:$0xff] }
 0x1d3   : > { %3863 = vmatpush1.bf16.msra.mxu1 %v7072_v49  ;;  %v7145_v47 = vcombine.high %v765_v42, %v769_v43  ;;  %v629_v19 = vld [vmem:[#allocation5 + $0xa50] sm:$0xff] }
 0x1d4   : > { %3864 = vmatprep.subr.bf16.mxu1 %v7065_v51  ;;  %v633_v22 = vld [vmem:[#allocation5 + $0xa70] sm:$0xff]  ;;  %v7144_v51 = vcombine.low %v765_v42, %v769_v43  ;;  %v462_v43 = vld [vmem:[#allocation5 + $0x518] sm:$0xff] }
 0x1d5   : > { %3824 = vmatpush1.bf16.msra.mxu0 %v6936_v60  ;;  %v757_v48 = vld [vmem:[#allocation5 + $0xe50] sm:$0xff]  ;;  %v7009_v52 = vcombine.high %v629_v19, %v633_v22 }
 0x1d6   : > { %3825 = vmatprep.subr.bf16.mxu0 %v7057_v62  ;;  %v761_v49 = vld [vmem:[#allocation5 + $0xe70] sm:$0xff]  ;;  %v7008_v62 = vcombine.low %v629_v19, %v633_v22 }
 0x1d7   : > { %3865 = vmatpush1.bf16.msra.mxu1 %v7064_v61  ;;  %v7137_v55 = vcombine.high %v757_v48, %v761_v49  ;;  %v621_v56 = vld [vmem:[#allocation5 + $0xa10] sm:$0xff] }
 0x1d8   : > { %3866 = vmatprep.subr.bf16.mxu1 %v7185_v0  ;;  %v625_v57 = vld [vmem:[#allocation5 + $0xa30] sm:$0xff]  ;;  %v7136_v0 = vcombine.low %v757_v48, %v761_v49 }
 0x1d9   : > { %3826 = vmatpush2.bf16.msra.mxu0 %v7056_v25  ;;  %v749_v60 = vld [vmem:[#allocation5 + $0xe10] sm:$0xff]  ;;  %v7001_v1 = vcombine.high %v621_v56, %v625_v57  ;;  %v486_v25 = vld [vmem:[#allocation5 + $0x5d8] sm:$0xff] }
 0x1da   : > { %3827 = vmatprep.subr.bf16.mxu0 %v7049_v6  ;;  %v753_v61 = vld [vmem:[#allocation5 + $0xe30] sm:$0xff]  ;;  %v7000_v6 = vcombine.low %v621_v56, %v625_v57 }
 0x1db   : > { %3867 = vmatpush2.bf16.msra.mxu1 %v7184_v5  ;;  %v7129_v2 = vcombine.high %v749_v60, %v753_v61  ;;  %v490_v5 = vld [vmem:[#allocation5 + $0x5f8] sm:$0xff] }
 0x1dc   : > { %3868 = vmatprep.subr.bf16.mxu1 %v7177_v8  ;;  %v7128_v8 = vcombine.low %v749_v60, %v753_v61  ;;  %v6867_v10 = vcombine.high %v486_v25, %v490_v5  ;;  %v318_v60 = vld [vmem:[#allocation5 + $0x98] sm:$0xff] }
 0x1dd   : > { %3828 = vmatpush2.bf16.msra.mxu0 %v7048_v12  ;;  %v478_v12 = vld [vmem:[#allocation5 + $0x598] sm:$0xff] }
 0x1de   : > { %3829 = vmatprep.subr.bf16.mxu0 %v7041_v14  ;;  %v6738_v14 = vcombine.low %v358_v3, %v362_v4  ;;  %v322_v61 = vld [vmem:[#allocation5 + $0xb8] sm:$0xff] }
 0x1df   : > { %3869 = vmatpush2.bf16.msra.mxu1 %v7176_v13  ;;  %v482_v13 = vld [vmem:[#allocation5 + $0x5b8] sm:$0xff]  ;;  %v6699_v3 = vcombine.high %v318_v60, %v322_v61 }
 0x1e0   : > { %3870 = vmatprep.subr.bf16.mxu1 %v7169_v15  ;;  %v6866_v15 = vcombine.low %v486_v25, %v490_v5  ;;  %v6859_v18 = vcombine.high %v478_v12, %v482_v13  ;;  %v6858_v32 = vcombine.low %v478_v12, %v482_v13  ;;  %v310_v25 = vld [vmem:[#allocation5 + $0x58] sm:$0xff] }
 0x1e1   : > { %3830 = vmatpush2.bf16.msra.mxu0 %v7040_v24  ;;  %v314_v5 = vld [vmem:[#allocation5 + $0x78] sm:$0xff] }
 0x1e2   : > { %3831 = vmatprep.subr.bf16.mxu0 %v7033_v53  ;;  %v474_v53 = vld [vmem:[#allocation5 + $0x578] sm:$0xff]  ;;  %v6691_v33 = vcombine.high %v310_v25, %v314_v5 }
 0x1e3   : > { %3871 = vmatpush2.bf16.msra.mxu1 %v7168_v26  ;;  %v470_v26 = vld [vmem:[#allocation5 + $0x558] sm:$0xff] }
 0x1e4   : > { %3872 = vmatprep.subr.bf16.mxu1 %v7161_v27  ;;  %v6850_v19 = vcombine.low %v470_v26, %v474_v53  ;;  %v302_v12 = vld [vmem:[#allocation5 + $0x18] sm:$0xff] }
 0x1e5   : > { %3832 = vmatpush2.bf16.msra.mxu0 %v7032_v34  ;;  %v6723_v34 = vcombine.high %v342_v21, %v346_v23  ;;  %v306_v13 = vld [vmem:[#allocation5 + $0x38] sm:$0xff] }
 0x1e6   : > { %3833 = vmatprep.subr.bf16.mxu0 %v7025_v36  ;;  %v6851_v36 = vcombine.high %v470_v26, %v474_v53  ;;  %v426_v26 = vld [vmem:[#allocation5 + $0x3f8] sm:$0xff] }
 0x1e7   : > { %3873 = vmatpush2.bf16.msra.mxu1 %v7160_v35  ;;  %v550_v53 = vld [vmem:[#allocation5 + $0x7d8] sm:$0xff] }
 0x1e8   : > { %3874 = vmatprep.subr.bf16.mxu1 %v7153_v37  ;;  %v334_v37 = vld [vmem:[#allocation5 + $0x118] sm:$0xff] }
 0x1e9   : > { %3834 = vmatpush2.bf16.msra.mxu0 %v7024_v44  ;;  %v466_v44 = vld [vmem:[#allocation5 + $0x538] sm:$0xff]  ;;  %v6715_v22 = vcombine.high %v334_v37, %v338_v40 }
 0x1ea   : > { %3835 = vmatprep.subr.bf16.mxu0 %v7017_v46  ;;  %v6722_v46 = vcombine.low %v342_v21, %v346_v23  ;;  %v6843_v49 = vcombine.high %v462_v43, %v466_v44  ;;  %v6683_v21 = vcombine.high %v302_v12, %v306_v13 }
 0x1eb   : > { %3875 = vmatpush2.bf16.msra.mxu1 %v7152_v45 }
 0x1ec   : > { %3876 = vmatprep.subr.bf16.mxu1 %v7145_v47 }
 0x1ed   : > { %3836 = vmatpush2.bf16.msra.mxu0 %v7016_v50  ;;  %v326_v50 = vld [vmem:[#allocation5 + $0xd8] sm:$0xff] }
 0x1ee   : > { %3837 = vmatprep.subr.bf16.mxu0 %v7009_v52  ;;  %v458_v52 = vld [vmem:[#allocation5 + $0x4f8] sm:$0xff] }
 0x1ef   : > { %3877 = vmatpush2.bf16.msra.mxu1 %v7144_v51  ;;  %v454_v51 = vld [vmem:[#allocation5 + $0x4d8] sm:$0xff] }
 0x1f0   : > { %3878 = vmatprep.subr.bf16.mxu1 %v7137_v55  ;;  %v6714_v55 = vcombine.low %v334_v37, %v338_v40  ;;  %v6835_v57 = vcombine.high %v454_v51, %v458_v52  ;;  %v542_v37 = vld [vmem:[#allocation5 + $0x798] sm:$0xff] }
 0x1f1   : > { %3838 = vmatpush2.bf16.msra.mxu0 %v7008_v62  ;;  %v446_v62 = vld [vmem:[#allocation5 + $0x498] sm:$0xff] }
 0x1f2   : > { %3839 = vmatprep.subr.bf16.mxu0 %v7001_v1  ;;  %v546_v40 = vld [vmem:[#allocation5 + $0x7b8] sm:$0xff] }
 0x1f3   : > { %3879 = vmatpush2.bf16.msra.mxu1 %v7136_v0  ;;  %v450_v0 = vld [vmem:[#allocation5 + $0x4b8] sm:$0xff] }
 0x1f4   : > { %3880 = vmatprep.subr.bf16.mxu1 %v7129_v2  ;;  %v6834_v2 = vcombine.low %v454_v51, %v458_v52  ;;  %v6827_v4 = vcombine.high %v446_v62, %v450_v0  ;;  %v398_v51 = vld [vmem:[#allocation5 + $0x318] sm:$0xff] }
 0x1f5   : > { %3840 = vmatpush2.bf16.msra.mxu0 %v7000_v6  ;;  %v438_v6 = vld [vmem:[#allocation5 + $0x458] sm:$0xff] }
 0x1f6   : > { %3891 = vmatprep.subr.bf16.mxu0 %v6739_v9  ;;  %v6698_v9 = vcombine.low %v318_v60, %v322_v61  ;;  %v402_v52 = vld [vmem:[#allocation5 + $0x338] sm:$0xff] }
 0x1f7   : > { %3881 = vmatpush2.bf16.msra.mxu1 %v7128_v8  ;;  %v442_v8 = vld [vmem:[#allocation5 + $0x478] sm:$0xff]  ;;  %v6779_v60 = vcombine.high %v398_v51, %v402_v52 }
 0x1f8   : > { %3932 = vmatprep.subr.bf16.mxu1 %v6867_v10  ;;  %v3597_v24 = vpop.f32.mrf.mxu0  ;;  %3842 = vmatmul.mubr.bf16.vlgmr.msra.gmra.mxu0 %v8418_v38  ;;  %v6826_v10 = vcombine.low %v446_v62, %v450_v0  ;;  %v6819_v11 = vcombine.high %v438_v6, %v442_v8  ;;  %v390_v62 = vld [vmem:[#allocation5 + $0x2d8] sm:$0xff] }
 0x1f9   : > { %3892 = vmatpush1.bf16.msra.mxu0 %v6738_v14  ;;  %3923 = vmatprep.mubr.bf16.mxu0 %v8382_v58  ;;  %v330_v58 = vld [vmem:[#allocation5 + $0xf8] sm:$0xff] }
 0x1fa   : > { %v3638_v27 = vpop.f32.mrf.mxu1  ;;  %3883 = vmatmul.mubr.bf16.vlgmr.msra.gmra.mxu1 %v8422_v39  ;;  %v3599_v31 = vpop.f32.mrf.mxu0  ;;  %3893 = vmatprep.subr.bf16.mxu0 %v6731_v17  ;;  %v6707_v56 = vcombine.high %v326_v50, %v330_v58  ;;  %v6706_v1 = vcombine.low %v326_v50, %v330_v58  ;;  %v430_v14 = vld [vmem:[#allocation5 + $0x418] sm:$0xff]  ;;  %v6690_v17 = vcombine.low %v310_v25, %v314_v5 }
 0x1fb   : > { %v8452_v30 = vadd.f32 %v3638_v27, %v3597_v24  ;;  %3933 = vmatpush1.bf16.msra.mxu1 %v6866_v15  ;;  %3964 = vmatprep.mubr.bf16.mxu1 %v8386_v59  ;;  %v6842_v59 = vcombine.low %v462_v43, %v466_v44  ;;  %v434_v15 = vld [vmem:[#allocation5 + $0x438] sm:$0xff] }
 0x1fc   : > { %v3640_v35 = vpop.f32.mrf.mxu1  ;;  %3934 = vmatprep.subr.bf16.mxu1 %v6859_v18  ;;  %v3601_v42 = vpop.f32.mrf.mxu0  ;;  %v6818_v18 = vcombine.low %v438_v6, %v442_v8  ;;  %v6811_v23 = vcombine.high %v430_v14, %v434_v15  ;;  %v422_v24 = vld [vmem:[#allocation5 + $0x3d8] sm:$0xff] }
 0x1fd   : > { %v8455_v41 = vadd.f32 %v3640_v35, %v3599_v31  ;;  %3894 = vmatpush1.bf16.msra.mxu0 %v6730_v28  ;;  %v554_v27 = vld [vmem:[#allocation5 + $0x7f8] sm:$0xff]  ;;  %v6682_v28 = vcombine.low %v302_v12, %v306_v13  ;;  %v6810_v31 = vcombine.low %v430_v14, %v434_v15  ;;  %v6802_v42 = vcombine.low %v422_v24, %v426_v26 }
 0x1fe   : > { %v3642_v45 = vpop.f32.mrf.mxu1  ;;  %v3602_v47 = vpop.f32.mrf.mxu0  ;;  %3895 = vmatprep.subr.bf16.mxu0 %v6723_v34  ;;  %v6931_v34 = vcombine.high %v550_v53, %v554_v27  ;;  %v414_v35 = vld [vmem:[#allocation5 + $0x398] sm:$0xff]  ;;  %v6930_v43 = vcombine.low %v550_v53, %v554_v27  ;;  %v4055_v13 = vrot.slane %v8443_v63, 4  ;;  %v4112_v14 = vmul.f32 %v8443_v63, %v8443_v63 }
 0x1ff   : > { %3935 = vmatpush1.bf16.msra.mxu1 %v6858_v32  ;;  %v6803_v32 = vcombine.high %v422_v24, %v426_v26  ;;  %v6923_v45 = vcombine.high %v542_v37, %v546_v40  ;;  %v410_v47 = vld [vmem:[#allocation5 + $0x378] sm:$0xff] }
 0x200   : > { %v3643_v48 = vpop.f32.mrf.mxu1  ;;  %3936 = vmatprep.subr.bf16.mxu1 %v6851_v36  ;;  %v418_v36 = vld [vmem:[#allocation5 + $0x3b8] sm:$0xff] }
 0x201   : > { %3896 = vmatpush1.bf16.msra.mxu0 %v6722_v46  ;;  %v6795_v44 = vcombine.high %v414_v35, %v418_v36  ;;  %v406_v46 = vld [vmem:[#allocation5 + $0x358] sm:$0xff]  ;;  %v6794_v48 = vcombine.low %v414_v35, %v418_v36 }
 0x202   : > { %3897 = vmatprep.subr.bf16.mxu0 %v6715_v22  ;;  %v538_v22 = vld [vmem:[#allocation5 + $0x778] sm:$0xff]  ;;  %v6787_v50 = vcombine.high %v406_v46, %v410_v47 }
 0x203   : > { %3937 = vmatpush1.bf16.msra.mxu1 %v6850_v19  ;;  %v534_v19 = vld [vmem:[#allocation5 + $0x758] sm:$0xff] }
 0x204   : > { %3938 = vmatprep.subr.bf16.mxu1 %v6843_v49  ;;  %v6922_v49 = vcombine.low %v542_v37, %v546_v40  ;;  %v6915_v58 = vcombine.high %v534_v19, %v538_v22  ;;  %v394_v0 = vld [vmem:[#allocation5 + $0x2f8] sm:$0xff] }
 0x205   : > { %3898 = vmatpush1.bf16.msra.mxu0 %v6714_v55  ;;  %v526_v55 = vld [vmem:[#allocation5 + $0x718] sm:$0xff]  ;;  %v6771_v25 = vcombine.high %v390_v62, %v394_v0  ;;  %v6770_v12 = vcombine.low %v390_v62, %v394_v0 }
 0x206   : > { %3899 = vmatprep.subr.bf16.mxu0 %v6707_v56  ;;  %v6786_v56 = vcombine.low %v406_v46, %v410_v47  ;;  %v382_v6 = vld [vmem:[#allocation5 + $0x298] sm:$0xff] }
 0x207   : > { %3939 = vmatpush1.bf16.msra.mxu1 %v6842_v59  ;;  %v530_v59 = vld [vmem:[#allocation5 + $0x738] sm:$0xff] }
 0x208   : > { %3940 = vmatprep.subr.bf16.mxu1 %v6835_v57  ;;  %v6914_v57 = vcombine.low %v534_v19, %v538_v22  ;;  %v6907_v61 = vcombine.high %v526_v55, %v530_v59  ;;  %v386_v8 = vld [vmem:[#allocation5 + $0x2b8] sm:$0xff] }
 0x209   : > { %3900 = vmatpush1.bf16.msra.mxu0 %v6706_v1  ;;  %v518_v1 = vld [vmem:[#allocation5 + $0x6d8] sm:$0xff] }
 0x20a   : > { %3901 = vmatprep.subr.bf16.mxu0 %v6699_v3  ;;  %v6778_v3 = vcombine.low %v398_v51, %v402_v52  ;;  %v502_v53 = vld [vmem:[#allocation5 + $0x658] sm:$0xff] }
 0x20b   : > { %3941 = vmatpush1.bf16.msra.mxu1 %v6834_v2  ;;  %v522_v2 = vld [vmem:[#allocation5 + $0x6f8] sm:$0xff] }
 0x20c   : > { %3942 = vmatprep.subr.bf16.mxu1 %v6827_v4  ;;  %v6906_v4 = vcombine.low %v526_v55, %v530_v59  ;;  %v6899_v5 = vcombine.high %v518_v1, %v522_v2  ;;  %v6898_v15 = vcombine.low %v518_v1, %v522_v2  ;;  %v506_v27 = vld [vmem:[#allocation5 + $0x678] sm:$0xff] }
 0x20d   : > { %3902 = vmatpush1.bf16.msra.mxu0 %v6698_v9  ;;  %v4061_v9 = vrot.slane %v8448_v7, 4  ;;  %v6883_v36 = vcombine.high %v502_v53, %v506_v27  ;;  %v366_v37 = vld [vmem:[#allocation5 + $0x218] sm:$0xff]  ;;  %v6882_v22 = vcombine.low %v502_v53, %v506_v27 }
 0x20e   : > { %3903 = vmatprep.subr.bf16.mxu0 %v6691_v33  ;;  %v510_v33 = vld [vmem:[#allocation5 + $0x698] sm:$0xff] }
 0x20f   : > { %3943 = vmatpush1.bf16.msra.mxu1 %v6826_v10  ;;  %v4113_v10 = vmul.f32 %v8448_v7, %v8448_v7  ;;  %v4062_v24 = vadd.f32 %v4061_v9, %v8448_v7  ;;  %v370_v40 = vld [vmem:[#allocation5 + $0x238] sm:$0xff] }
 0x210   : > { %3944 = vmatprep.subr.bf16.mxu1 %v6819_v11  ;;  %v514_v11 = vld [vmem:[#allocation5 + $0x6b8] sm:$0xff] }
 0x211   : > { %3904 = vmatpush1.bf16.msra.mxu0 %v6690_v17  ;;  %v6763_v17 = vcombine.high %v382_v6, %v386_v8  ;;  %v4126_v26 = vrot.slane %v4113_v10, 4  ;;  %v742_v55 = vld [vmem:[#allocation5 + $0xdd8] sm:$0xff] }
 0x212   : > { %3905 = vmatprep.subr.bf16.mxu0 %v6683_v21  ;;  %v374_v21 = vld [vmem:[#allocation5 + $0x258] sm:$0xff] }
 0x213   : > { %3945 = vmatpush1.bf16.msra.mxu1 %v6818_v18  ;;  %v6891_v18 = vcombine.high %v510_v33, %v514_v11  ;;  %v746_v59 = vld [vmem:[#allocation5 + $0xdf8] sm:$0xff] }
 0x214   : > { %3946 = vmatprep.subr.bf16.mxu1 %v6811_v23  ;;  %v378_v23 = vld [vmem:[#allocation5 + $0x278] sm:$0xff]  ;;  %v7123_v0 = vcombine.high %v742_v55, %v746_v59 }
 0x215   : > { %3906 = vmatpush1.bf16.msra.mxu0 %v6682_v28  ;;  %v6762_v28 = vcombine.low %v382_v6, %v386_v8  ;;  %v6755_v35 = vcombine.high %v374_v21, %v378_v23  ;;  %v6754_v46 = vcombine.low %v374_v21, %v378_v23  ;;  %v606_v1 = vld [vmem:[#allocation5 + $0x998] sm:$0xff] }
 0x216   : > { %3907 = vmatprep.subr.bf16.mxu0 %v6803_v32  ;;  %v4120_v32 = vrot.slane %v4112_v14, 4  ;;  %v610_v2 = vld [vmem:[#allocation5 + $0x9b8] sm:$0xff] }
 0x217   : > { %3947 = vmatpush1.bf16.msra.mxu1 %v6810_v31  ;;  %v4056_v31 = vadd.f32 %v4055_v13, %v8443_v63  ;;  %v8468_v13 = vld [vmem:[#allocation5 + $0x978] sm:$0xff] }
 0x218   : > { %3948 = vmatprep.subr.bf16.mxu1 %v6931_v34  ;;  %v6890_v34 = vcombine.low %v510_v33, %v514_v11  ;;  %v4121_v19 = vadd.f32 %v4120_v32, %v4112_v14  ;;  %v6987_v33 = vcombine.high %v606_v1, %v610_v2  ;;  %v730_v21 = vld [vmem:[#allocation5 + $0xd78] sm:$0xff] }
 0x219   : > { %3908 = vmatpush2.bf16.msra.mxu0 %v6802_v42  ;;  %v4063_v42 = vrot.slane %v4062_v24, 2  ;;  %v4057_v47 = vrot.slane %v4056_v31, 2 }
 0x21a   : > { %3909 = vmatprep.subr.bf16.mxu0 %v6795_v44  ;;  %v494_v44 = vld [vmem:[#allocation5 + $0x618] sm:$0xff] }
 0x21b   : > { %3949 = vmatpush2.bf16.msra.mxu1 %v6930_v43  ;;  %v4127_v43 = vadd.f32 %v4126_v26, %v4113_v10  ;;  %v4064_v51 = vadd.f32 %v4063_v42, %v4062_v24  ;;  %v7122_v10 = vcombine.low %v742_v55, %v746_v59  ;;  %v6986_v26 = vcombine.low %v606_v1, %v610_v2 }
 0x21c   : > { %3950 = vmatprep.subr.bf16.mxu1 %v6923_v45  ;;  %v498_v45 = vld [vmem:[#allocation5 + $0x638] sm:$0xff] }
 0x21d   : > { %3910 = vmatpush2.bf16.msra.mxu0 %v6794_v48  ;;  %v6747_v48 = vcombine.high %v366_v37, %v370_v40  ;;  %v4128_v52 = vrot.slane %v4127_v43, 2 }
 0x21e   : > { %3911 = vmatprep.subr.bf16.mxu0 %v6787_v50  ;;  %v614_v50 = vld [vmem:[#allocation5 + $0x9d8] sm:$0xff] }
 0x21f   : > { %3951 = vmatpush2.bf16.msra.mxu1 %v6922_v49  ;;  %v6875_v49 = vcombine.high %v494_v44, %v498_v45 }
 0x220   : > { %3952 = vmatprep.subr.bf16.mxu1 %v6915_v58  ;;  %v618_v58 = vld [vmem:[#allocation5 + $0x9f8] sm:$0xff] }
 0x221   : > { %3912 = vmatpush2.bf16.msra.mxu0 %v6786_v56  ;;  %v6746_v56 = vcombine.low %v366_v37, %v370_v40  ;;  %v6995_v62 = vcombine.high %v614_v50, %v618_v58  ;;  %v6994_v6 = vcombine.low %v614_v50, %v618_v58  ;;  %v8485_v37 = vld [vmem:[#allocation5 + $0xd18] sm:$0xff] }
 0x222   : > { %3913 = vmatprep.subr.bf16.mxu0 %v6779_v60  ;;  %v4122_v60 = vrot.slane %v4121_v19, 2  ;;  %v8487_v40 = vld [vmem:[#allocation5 + $0xd38] sm:$0xff] }
 0x223   : > { %3953 = vmatpush2.bf16.msra.mxu1 %v6914_v57  ;;  %v4058_v57 = vadd.f32 %v4057_v47, %v4056_v31  ;;  %v7099_v50 = vcombine.high %v8485_v37, %v8487_v40  ;;  %v582_v58 = vld [vmem:[#allocation5 + $0x8d8] sm:$0xff]  ;;  %v7098_v1 = vcombine.low %v8485_v37, %v8487_v40 }
 0x224   : > { %3954 = vmatprep.subr.bf16.mxu1 %v6907_v61  ;;  %v6874_v61 = vcombine.low %v494_v44, %v498_v45  ;;  %v4123_v9 = vadd.f32 %v4122_v60, %v4121_v19  ;;  %v710_v60 = vld [vmem:[#allocation5 + $0xcd8] sm:$0xff] }
 0x225   : > { %3914 = vmatpush2.bf16.msra.mxu0 %v6778_v3  ;;  %v4065_v3 = vrot.slane %v4064_v51, 1  ;;  %v4059_v8 = vrot.slane %v4058_v57, 1  ;;  %v570_v40 = vld [vmem:[#allocation5 + $0x878] sm:$0xff] }
 0x226   : > { %3915 = vmatprep.subr.bf16.mxu0 %v6771_v25  ;;  %v734_v25 = vld [vmem:[#allocation5 + $0xd98] sm:$0xff]  ;;  %v4124_v27 = vrot.slane %v4123_v9, 1 }
 0x227   : > { %3955 = vmatpush2.bf16.msra.mxu1 %v6906_v4  ;;  %v4129_v4 = vadd.f32 %v4128_v52, %v4127_v43  ;;  %v4066_v14 = vadd.f32 %v4065_v3, %v4064_v51  ;;  %v4060_v53 = vadd.f32 %v4059_v8, %v4058_v57  ;;  %v586_v57 = vld [vmem:[#allocation5 + $0x8f8] sm:$0xff] }
 0x228   : > { %3956 = vmatprep.subr.bf16.mxu1 %v6899_v5  ;;  %v738_v5 = vld [vmem:[#allocation5 + $0xdb8] sm:$0xff] }
 0x229   : > { %3916 = vmatpush2.bf16.msra.mxu0 %v6770_v12  ;;  %v7115_v11 = vcombine.high %v734_v25, %v738_v5  ;;  %v8466_v12 = vld [vmem:[#allocation5 + $0x958] sm:$0xff]  ;;  %v7114_v31 = vcombine.low %v734_v25, %v738_v5 }
 0x22a   : > { %3917 = vmatprep.subr.bf16.mxu0 %v6763_v17  ;;  %v6979_v32 = vcombine.high %v8466_v12, %v8468_v13  ;;  %v6978_v44 = vcombine.low %v8466_v12, %v8468_v13 }
 0x22b   : > { %3957 = vmatpush2.bf16.msra.mxu1 %v6898_v15  ;;  %v4130_v15 = vrot.slane %v4129_v4, 1 }
 0x22c   : > { %3958 = vmatprep.subr.bf16.mxu1 %v6891_v18  ;;  %v8471_v18 = vld [vmem:[#allocation5 + $0xd58] sm:$0xff] }
 0x22d   : > { %3918 = vmatpush2.bf16.msra.mxu0 %v6762_v28  ;;  %v4131_v42 = vadd.f32 %v4130_v15, %v4129_v4  ;;  %v578_v15 = vld [vmem:[#allocation5 + $0x8b8] sm:$0xff] }
 0x22e   : > { %3919 = vmatprep.subr.bf16.mxu0 %v6755_v35 }
 0x22f   : > { %3959 = vmatpush2.bf16.msra.mxu1 %v6890_v34 }
 0x230   : > { %3960 = vmatprep.subr.bf16.mxu1 %v6883_v36  ;;  %v8483_v36 = vld [vmem:[#allocation5 + $0x938] sm:$0xff] }
 0x231   : > { %3920 = vmatpush2.bf16.msra.mxu0 %v6754_v46 }
 0x232   : > { %3921 = vmatprep.subr.bf16.mxu0 %v6747_v48  ;;  %v4125_v48 = vadd.f32 %v4124_v27, %v4123_v9  ;;  %v6963_v9 = vcombine.high %v582_v58, %v586_v57 }
 0x233   : > { %3961 = vmatpush2.bf16.msra.mxu1 %v6882_v22  ;;  %v8501_v22 = vmul.f32 0.125, %v4060_v53 }
 0x234   : > { %3962 = vmatprep.subr.bf16.mxu1 %v6875_v49 }
 0x235   : > { %3922 = vmatpush2.bf16.msra.mxu0 %v6746_v56  ;;  %v4176_v8 = vmul.f32 %v8501_v22, %v8501_v22 }
 0x236   : > { %3973 = vmatprep.subr.bf16.mxu0 %v6995_v62  ;;  %v4169_v62 = vmul.f32 0.125, %v4131_v42  ;;  %v694_v42 = vld [vmem:[#allocation5 + $0xc58] sm:$0xff] }
 0x237   : > { %3963 = vmatpush2.bf16.msra.mxu1 %v6874_v61  ;;  %v714_v61 = vld [vmem:[#allocation5 + $0xcf8] sm:$0xff] }
 0x238   : > { %4014 = vmatprep.subr.bf16.mxu1 %v7123_v0  ;;  %v3679_v17 = vpop.f32.mrf.mxu0  ;;  %3924 = vmatmul.mubr.bf16.vlgmr.msra.gmra.mxu0 %v8392_v16  ;;  %v8477_v16 = vld [vmem:[#allocation5 + $0x918] sm:$0xff] }
 0x239   : > { %v3680_v23 = vadd.f32 %v3679_v17, %v8452_v30  ;;  %3974 = vmatpush1.bf16.msra.mxu0 %v6994_v6  ;;  %4005 = vmatprep.mubr.bf16.mxu0 %v8406_v29  ;;  %v7106_v29 = vcombine.low %v8471_v18, %v730_v21  ;;  %v6970_v0 = vcombine.low %v8477_v16, %v8483_v36  ;;  %v4168_v6 = vmul.f32 0.125, %v4125_v48  ;;  %v702_v17 = vld [vmem:[#allocation5 + $0xc98] sm:$0xff] }
 0x23a   : > { %v3720_v24 = vpop.f32.mrf.mxu1  ;;  %3965 = vmatmul.mubr.bf16.vlgmr.msra.gmra.mxu1 %v8399_v20  ;;  %v3681_v28 = vpop.f32.mrf.mxu0  ;;  %3975 = vmatprep.subr.bf16.mxu0 %v6987_v33  ;;  %v7107_v20 = vcombine.high %v8471_v18, %v730_v21  ;;  %v574_v33 = vld [vmem:[#allocation5 + $0x898] sm:$0xff]  ;;  %v6962_v21 = vcombine.low %v582_v58, %v586_v57 }
 0x23b   : > { %4015 = vmatpush1.bf16.msra.mxu1 %v7122_v10  ;;  %v8479_v34 = vadd.f32 %v3720_v24, %v3680_v23  ;;  %v3682_v30 = vadd.f32 %v3681_v28, %v8455_v41  ;;  %4046 = vmatprep.mubr.bf16.mxu1 %v8411_v54  ;;  %v8493_v41 = vmul.f32 0.125, %v4066_v14  ;;  %v6971_v54 = vcombine.high %v8477_v16, %v8483_v36  ;;  %v706_v18 = vld [vmem:[#allocation5 + $0xcb8] sm:$0xff] }
 0x23c   : > { %v3722_v35 = vpop.f32.mrf.mxu1  ;;  %4016 = vmatprep.subr.bf16.mxu1 %v7115_v11  ;;  %v3683_v43 = vpop.f32.mrf.mxu0  ;;  %v7091_v10 = vcombine.high %v710_v60, %v714_v61  ;;  %v7090_v23 = vcombine.low %v710_v60, %v714_v61  ;;  %v7083_v16 = vcombine.high %v702_v17, %v706_v18  ;;  %v562_v57 = vld [vmem:[#allocation5 + $0x838] sm:$0xff] }
 0x23d   : > { %v4067_v45 = vrot.slane %v8479_v34, 4  ;;  %v4114_v46 = vmul.f32 %v8479_v34, %v8479_v34  ;;  %v8498_v47 = vadd.f32 %v3722_v35, %v3682_v30  ;;  %3976 = vmatpush1.bf16.msra.mxu0 %v6986_v26  ;;  %v4177_v2 = vmul.f32 %v8493_v41, %v8493_v41  ;;  %v566_v30 = vld [vmem:[#allocation5 + $0x858] sm:$0xff] }
 0x23e   : > { %v3724_v19 = vpop.f32.mrf.mxu1  ;;  %v3684_v49 = vpop.f32.mrf.mxu0  ;;  %3977 = vmatprep.subr.bf16.mxu0 %v6979_v32  ;;  %v6955_v32 = vcombine.high %v574_v33, %v578_v15  ;;  %v698_v43 = vld [vmem:[#allocation5 + $0xc78] sm:$0xff]  ;;  %v6946_v60 = vcombine.low %v566_v30, %v570_v40 }
 0x23f   : > { %4017 = vmatpush1.bf16.msra.mxu1 %v7114_v31  ;;  %v4068_v51 = vadd.f32 %v4067_v45, %v8479_v34  ;;  %v4132_v52 = vrot.slane %v4114_v46, 4  ;;  %v4073_v55 = vrot.slane %v8498_v47, 4  ;;  %v4115_v59 = vmul.f32 %v8498_v47, %v8498_v47  ;;  %v686_v61 = vld [vmem:[#allocation5 + $0xc18] sm:$0xff] }
 0x240   : > { %v3725_v56 = vpop.f32.mrf.mxu1  ;;  %4018 = vmatprep.subr.bf16.mxu1 %v7107_v20  ;;  %v4185_v24 = vsub.f32 %v4169_v62, %v4177_v2  ;;  %v4184_v31 = vsub.f32 %v4168_v6, %v4176_v8  ;;  %v7075_v58 = vcombine.high %v694_v42, %v698_v43  ;;  %v690_v62 = vld [vmem:[#allocation5 + $0xc38] sm:$0xff] }
 0x241   : > { %v4069_v3 = vrot.slane %v4068_v51, 2  ;;  %v4133_v4 = vadd.f32 %v4132_v52, %v4114_v46  ;;  %v4074_v25 = vadd.f32 %v4073_v55, %v8498_v47  ;;  %v4138_v5 = vrot.slane %v4115_v59, 4  ;;  %3978 = vmatpush1.bf16.msra.mxu0 %v6978_v44  ;;  %v558_v56 = vld [vmem:[#allocation5 + $0x818] sm:$0xff] }
 0x242   : > { %3979 = vmatprep.subr.bf16.mxu0 %v6971_v54  ;;  %v6954_v44 = vcombine.low %v574_v33, %v578_v15  ;;  %v4193_v45 = vmax.f32 %v4185_v24, 0.0  ;;  %v4192_v49 = vmax.f32 %v4184_v31, 0.0  ;;  %v7082_v54 = vcombine.low %v702_v17, %v706_v18  ;;  %v682_v33 = vld [vmem:[#allocation5 + $0xbf8] sm:$0xff] }
 0x243   : > { %4019 = vmatpush1.bf16.msra.mxu1 %v7106_v29  ;;  %v4070_v11 = vadd.f32 %v4069_v3, %v4068_v51  ;;  %v4134_v12 = vrot.slane %v4133_v4, 2  ;;  %v4075_v13 = vrot.slane %v4074_v25, 2  ;;  %v4139_v14 = vadd.f32 %v4138_v5, %v4115_v59  ;;  %v670_v24 = vld [vmem:[#allocation5 + $0xb98] sm:$0xff] }
 0x244   : > { %4020 = vmatprep.subr.bf16.mxu1 %v7099_v50  ;;  %v6947_v50 = vcombine.high %v566_v30, %v570_v40  ;;  %v4202_v3 = vadd.f32 1e-05, %v4193_v45  ;;  %v4201_v5 = vadd.f32 1e-05, %v4192_v49  ;;  %v6938_v15 = vcombine.low %v558_v56, %v562_v57  ;;  %v662_v30 = vld [vmem:[#allocation5 + $0xb58] sm:$0xff] }
 0x245   : > { %v4071_v26 = vrot.slane %v4070_v11, 1  ;;  %v4135_v53 = vadd.f32 %v4134_v12, %v4133_v4  ;;  %v4076_v27 = vadd.f32 %v4075_v13, %v4074_v25  ;;  %v4140_v28 = vrot.slane %v4139_v14, 2  ;;  %3980 = vmatpush1.bf16.msra.mxu0 %v6970_v0  ;;  %v810_v12 = vld [vmem:[#allocation5 + $0xff8] sm:$0xff] }
 0x246   : > { %3981 = vmatprep.subr.bf16.mxu0 %v6963_v9  ;;  %v7074_v4 = vcombine.low %v694_v42, %v698_v43  ;;  %v6939_v25 = vcombine.high %v558_v56, %v562_v57  ;;  %v7067_v9 = vcombine.high %v686_v61, %v690_v62  ;;  %7935 = vrsqrt.f32 %v4202_v3  ;;  %v782_v49 = vld [vmem:[#allocation5 + $0xf18] sm:$0xff] }
 0x247   : > { %4021 = vmatpush1.bf16.msra.mxu1 %v7098_v1  ;;  %v4072_v35 = vadd.f32 %v4071_v26, %v4070_v11  ;;  %v4136_v20 = vrot.slane %v4135_v53, 1  ;;  %v4077_v36 = vrot.slane %v4076_v27, 1  ;;  %v4141_v37 = vadd.f32 %v4140_v28, %v4139_v14  ;;  %v806_v11 = vld [vmem:[#allocation5 + $0xfd8] sm:$0xff] }
 0x248   : > { %4022 = vmatprep.subr.bf16.mxu1 %v7091_v10  ;;  %v678_v10 = vld [vmem:[#allocation5 + $0xbd8] sm:$0xff]  ;;  %v7066_v17 = vcombine.low %v686_v61, %v690_v62  ;;  %7937 = vrsqrt.f32 %v4201_v5  ;;  %v7186_v31 = vcombine.low %v806_v11, %v810_v12  ;;  %v4232_v42 = vlaneseq }
 0x249   : > { %v8520_v46 = vmul.f32 0.125, %v4072_v35  ;;  %v4137_v19 = vadd.f32 %v4136_v20, %v4135_v53  ;;  %v4078_v29 = vadd.f32 %v4077_v36, %v4076_v27  ;;  %v4142_v48 = vrot.slane %v4141_v37, 1  ;;  %3982 = vmatpush1.bf16.msra.mxu0 %v6962_v21  ;;  %v674_v26 = vld [vmem:[#allocation5 + $0xbb8] sm:$0xff] }
 0x24a   : > { %3983 = vmatprep.subr.bf16.mxu0 %v6955_v32  ;;  %v7059_v18 = vcombine.high %v678_v10, %v682_v33  ;;  %v798_v53 = vld [vmem:[#allocation5 + $0xf98] sm:$0xff]  ;;  %v7058_v28 = vcombine.low %v678_v10, %v682_v33  ;;  %v7051_v32 = vcombine.high %v670_v24, %v674_v26  ;;  %v7050_v43 = vcombine.low %v670_v24, %v674_v26 }
 0x24b   : > { %4023 = vmatpush1.bf16.msra.mxu1 %v7090_v23  ;;  %v4170_v51 = vmul.f32 0.125, %v4137_v19  ;;  %v4178_v52 = vmul.f32 %v8520_v46, %v8520_v46  ;;  %v8524_v55 = vmul.f32 0.125, %v4078_v29  ;;  %v4143_v59 = vadd.f32 %v4142_v48, %v4141_v37  ;;  %v802_v27 = vld [vmem:[#allocation5 + $0xfb8] sm:$0xff] }
 0x24c   : > { %4024 = vmatprep.subr.bf16.mxu1 %v7083_v16  ;;  %v7187_v23 = vcombine.high %v806_v11, %v810_v12  ;;  %v7179_v16 = vcombine.high %v798_v53, %v802_v27  ;;  %v666_v35 = vld [vmem:[#allocation5 + $0xb78] sm:$0xff]  ;;  %v8174_v37 = vmov 1966171168  }
 0x24d   : > { %v4186_v0 = vsub.f32 %v4170_v51, %v4178_v52  ;;  %v4171_v1 = vmul.f32 0.125, %v4143_v59  ;;  %v4179_v2 = vmul.f32 %v8524_v55, %v8524_v55  ;;  %3984 = vmatpush1.bf16.msra.mxu0 %v6954_v44  ;;  %v790_v20 = vld [vmem:[#allocation5 + $0xf58] sm:$0xff]  ;;  %v4230_v40 = vunpack.c.l.s4 %v8174_v37 }
 0x24e   : > { %3985 = vmatprep.subr.bf16.mxu0 %v6947_v50  ;;  %v794_v36 = vld [vmem:[#allocation5 + $0xf78] sm:$0xff]  ;;  %v7178_v44 = vcombine.low %v798_v53, %v802_v27  ;;  %v7043_v45 = vcombine.high %v662_v30, %v666_v35  ;;  %v7042_v51 = vcombine.low %v662_v30, %v666_v35 }
 0x24f   : > { %4025 = vmatpush1.bf16.msra.mxu1 %v7082_v54  ;;  %v4194_v6 = vmax.f32 %v4186_v0, 0.0  ;;  %v4187_v8 = vsub.f32 %v4171_v1, %v4179_v2  ;;  %v7171_v19 = vcombine.high %v790_v20, %v794_v36  ;;  %v654_v29 = vld [vmem:[#allocation5 + $0xb18] sm:$0xff]  ;;  %v4231_v50 = vunpack.c.0.s8 %v4230_v40 }
 0x250   : > { %4026 = vmatprep.subr.bf16.mxu1 %v7075_v58  ;;  %v658_v48 = vld [vmem:[#allocation5 + $0xb38] sm:$0xff]  ;;  %v8528_v58 = vshrl.u32 %v4232_v42, 7  ;;  %v7170_v59 = vcombine.low %v790_v20, %v794_v36 }
 0x251   : > { %v4203_v13 = vadd.f32 1e-05, %v4194_v6  ;;  %v4195_v14 = vmax.f32 %v4187_v8, 0.0  ;;  %3986 = vmatpush1.bf16.msra.mxu0 %v6946_v60  ;;  %v786_v54 = vld [vmem:[#allocation5 + $0xf38] sm:$0xff]  ;;  %v7035_v56 = vcombine.high %v654_v29, %v658_v48 }
 0x252   : > { %3987 = vmatprep.subr.bf16.mxu0 %v6939_v25  ;;  %v7163_v57 = vcombine.high %v782_v49, %v786_v54  ;;  %v646_v60 = vld [vmem:[#allocation5 + $0xad8] sm:$0xff]  ;;  %v8531_v3 = vsub.s32 %v4231_v50, %v8528_v58  ;;  %v7162_v6 = vcombine.low %v782_v49, %v786_v54 }
 0x253   : > { %4027 = vmatpush1.bf16.msra.mxu1 %v7074_v4  ;;  %v4204_v21 = vadd.f32 1e-05, %v4195_v14  ;;  %7939 = vrsqrt.f32 %v4203_v13  ;;  %v7936_v52 = vpop.eup %7935  ;;  %v650_v61 = vld [vmem:[#allocation5 + $0xaf8] sm:$0xff]  ;;  %v7034_v4 = vcombine.low %v654_v29, %v658_v48 }
 0x254   : > { %4028 = vmatprep.subr.bf16.mxu1 %v7067_v9  ;;  %v774_v0 = vld [vmem:[#allocation5 + $0xed8] sm:$0xff]  ;;  %v7027_v8 = vcombine.high %v646_v60, %v650_v61 }
 0x255   : > { %7941 = vrsqrt.f32 %v4204_v21  ;;  %3988 = vmatpush1.bf16.msra.mxu0 %v6938_v15  ;;  %v7938_v62 = vpop.eup %7937  ;;  %v778_v1 = vld [vmem:[#allocation5 + $0xef8] sm:$0xff]  ;;  %v7026_v15 = vcombine.low %v646_v60, %v650_v61 }
 0x256   : > { %3989 = vmatprep.subr.bf16.mxu0 %v7059_v18  ;;  %v4225_v25 = vcombine.low %v7938_v62, %v7936_v52  ;;  %v7155_v10 = vcombine.high %v774_v0, %v778_v1  ;;  %v638_v33 = vld [vmem:[#allocation5 + $0xa98] sm:$0xff]  ;;  %v7154_v18 = vcombine.low %v774_v0, %v778_v1 }
 0x257   : > { %4029 = vmatpush1.bf16.msra.mxu1 %v7066_v17  ;;  %v642_v11 = vld [vmem:[#allocation5 + $0xab8] sm:$0xff] }
 0x258   : > { %4030 = vmatprep.subr.bf16.mxu1 %v7187_v23  ;;  %v766_v12 = vld [vmem:[#allocation5 + $0xe98] sm:$0xff]  ;;  %v8537_v17 = vrot.slane %v4225_v25, %v8531_v3  ;;  %v7019_v21 = vcombine.high %v638_v33, %v642_v11 }
 0x259   : > { %3990 = vmatpush2.bf16.msra.mxu0 %v7058_v28  ;;  %v770_v13 = vld [vmem:[#allocation5 + $0xeb8] sm:$0xff] }
 0x25a   : > { %3991 = vmatprep.subr.bf16.mxu0 %v7051_v32  ;;  %v7147_v23 = vcombine.high %v766_v12, %v770_v13  ;;  %v630_v24 = vld [vmem:[#allocation5 + $0xa58] sm:$0xff]  ;;  %v7146_v32 = vcombine.low %v766_v12, %v770_v13  ;;  %v7562_v12 = vld [vmem:[#allocation8 + $0x2c4] ss:$16 sps:$4 sm:$0xff]   ;;  %v7557_v13 = vld [vmem:[#allocation8 + $0xc0] ss:$16 sps:$4 sm:$0xff]  }
 0x25b   : > { %4031 = vmatpush2.bf16.msra.mxu1 %v7186_v31  ;;  %v634_v26 = vld [vmem:[#allocation5 + $0xa78] sm:$0xff]  ;;  %v7018_v31 = vcombine.low %v638_v33, %v642_v11  ;;  %v7554_v33 = vld [vmem:[#allocation8 + $0x2e0] ss:$16 sps:$4 sm:$0xff]   ;;  %v7559_v11 = vld [vmem:[#allocation8 + $0xc4] ss:$16 sps:$4 sm:$0xff]  }
 0x25c   : > { %4032 = vmatprep.subr.bf16.mxu1 %v7179_v16  ;;  %v758_v27 = vld [vmem:[#allocation5 + $0xe58] sm:$0xff]  ;;  %v7011_v16 = vcombine.high %v630_v24, %v634_v26  ;;  %v7010_v40 = vcombine.low %v630_v24, %v634_v26  ;;  %v7566_v24 = vld [vmem:[#allocation8 + $0x2a0] ss:$16 sps:$4 sm:$0xff]   ;;  %v7571_v26 = vld [vmem:[#allocation8 + $0x84] ss:$16 sps:$4 sm:$0xff]  }
 0x25d   : > { %3992 = vmatpush2.bf16.msra.mxu0 %v7050_v43  ;;  %v762_v28 = vld [vmem:[#allocation5 + $0xe78] sm:$0xff] }
 0x25e   : > { %3993 = vmatprep.subr.bf16.mxu0 %v7043_v45  ;;  %v7139_v30 = vcombine.high %v758_v27, %v762_v28  ;;  %v622_v35 = vld [vmem:[#allocation5 + $0xa18] sm:$0xff]  ;;  %v7138_v42 = vcombine.low %v758_v27, %v762_v28  ;;  %v7574_v27 = vld [vmem:[#allocation8 + $0x284] ss:$16 sps:$4 sm:$0xff]   ;;  %v7569_v28 = vld [vmem:[#allocation8 + $0x80] ss:$16 sps:$4 sm:$0xff]  }
 0x25f   : > { %4033 = vmatpush2.bf16.msra.mxu1 %v7178_v44  ;;  %v626_v20 = vld [vmem:[#allocation5 + $0xa38] sm:$0xff] }
 0x260   : > { %4034 = vmatprep.subr.bf16.mxu1 %v7171_v19  ;;  %v7940_v2 = vpop.eup %7939  ;;  %v750_v36 = vld [vmem:[#allocation5 + $0xe18] sm:$0xff]  ;;  %v7003_v43 = vcombine.high %v622_v35, %v626_v20  ;;  %v7002_v45 = vcombine.low %v622_v35, %v626_v20  ;;  %v7578_v35 = vld [vmem:[#allocation8 + $0x260] ss:$16 sps:$4 sm:$0xff]   ;;  %v7583_v20 = vld [vmem:[#allocation8 + $0x44] ss:$16 sps:$4 sm:$0xff]  }
 0x261   : > { %3994 = vmatpush2.bf16.msra.mxu0 %v7042_v51  ;;  %v754_v37 = vld [vmem:[#allocation5 + $0xe38] sm:$0xff] }
 0x262   : > { %v7942_v5 = vpop.eup %7941  ;;  %3995 = vmatprep.subr.bf16.mxu0 %v7035_v56  ;;  %v7131_v44 = vcombine.high %v750_v36, %v754_v37  ;;  %v7130_v19 = vcombine.low %v750_v36, %v754_v37  ;;  %v7586_v36 = vld [vmem:[#allocation8 + $0x244] ss:$16 sps:$4 sm:$0xff]   ;;  %v7581_v37 = vld [vmem:[#allocation8 + $0x40] ss:$16 sps:$4 sm:$0xff]  }
 0x263   : > { %4035 = vmatpush2.bf16.msra.mxu1 %v7170_v59  ;;  %v4226_v9 = vcombine.low %v7940_v2, %v7942_v5 }
 0x264   : > { %4036 = vmatprep.subr.bf16.mxu1 %v7163_v57 }
 0x265   : > { %v8534_v14 = vrot.slane %v4226_v9, %v8531_v3  ;;  %3996 = vmatpush2.bf16.msra.mxu0 %v7034_v4  ;;  %v7556_v9 = vld [vmem:[#allocation8 + $0x2e4] ss:$16 sps:$4 sm:$0xff]  }
 0x266   : > { %3997 = vmatprep.subr.bf16.mxu0 %v7027_v8  ;;  %v7553_v8 = vld [vmem:[#allocation8 + $0xe4] ss:$16 sps:$4 sm:$0xff]  }
 0x267   : > { %4037 = vmatpush2.bf16.msra.mxu1 %v7162_v6  ;;  %v4257_v53 = vcombine.low %v8537_v17, %v8534_v14  ;;  %v4305_v14 = vsub.s32 6, %v8528_v58  ;;  %v4309_v17 = vsub.s32 7, %v8528_v58 }
 0x268   : > { %4038 = vmatprep.subr.bf16.mxu1 %v7155_v10  ;;  %v7551_v10 = vld [vmem:[#allocation8 + $0xe0] ss:$16 sps:$4 sm:$0xff]  }
 0x269   : > { %3998 = vmatpush2.bf16.msra.mxu0 %v7026_v15  ;;  %v7560_v15 = vld [vmem:[#allocation8 + $0x2c0] ss:$16 sps:$4 sm:$0xff]  }
 0x26a   : > { %3999 = vmatprep.subr.bf16.mxu0 %v7019_v21  ;;  %v7568_v21 = vld [vmem:[#allocation8 + $0x2a4] ss:$16 sps:$4 sm:$0xff]  }
 0x26b   : > { %4039 = vmatpush2.bf16.msra.mxu1 %v7154_v18  ;;  %v7565_v18 = vld [vmem:[#allocation8 + $0xa4] ss:$16 sps:$4 sm:$0xff]  }
 0x26c   : > { %4040 = vmatprep.subr.bf16.mxu1 %v7147_v23  ;;  %v7563_v23 = vld [vmem:[#allocation8 + $0xa0] ss:$16 sps:$4 sm:$0xff]  }
 0x26d   : > { %4000 = vmatpush2.bf16.msra.mxu0 %v7018_v31  ;;  %v7572_v31 = vld [vmem:[#allocation8 + $0x280] ss:$16 sps:$4 sm:$0xff]  }
 0x26e   : > { %4001 = vmatprep.subr.bf16.mxu0 %v7011_v16  ;;  %v7580_v16 = vld [vmem:[#allocation8 + $0x264] ss:$16 sps:$4 sm:$0xff]  }
 0x26f   : > { %4041 = vmatpush2.bf16.msra.mxu1 %v7146_v32  ;;  %v7577_v32 = vld [vmem:[#allocation8 + $0x64] ss:$16 sps:$4 sm:$0xff]  }
 0x270   : > { %4042 = vmatprep.subr.bf16.mxu1 %v7139_v30  ;;  %v7575_v30 = vld [vmem:[#allocation8 + $0x60] ss:$16 sps:$4 sm:$0xff]  }
 0x271   : > { %4002 = vmatpush2.bf16.msra.mxu0 %v7010_v40  ;;  %v7584_v40 = vld [vmem:[#allocation8 + $0x240] ss:$16 sps:$4 sm:$0xff]  }
 0x272   : > { %4003 = vmatprep.subr.bf16.mxu0 %v7003_v43  ;;  %v7592_v43 = vld [vmem:[#allocation8 + $0x224] ss:$16 sps:$4 sm:$0xff]  }
 0x273   : > { %4043 = vmatpush2.bf16.msra.mxu1 %v7138_v42  ;;  %v7589_v42 = vld [vmem:[#allocation8 + $0x24] ss:$16 sps:$4 sm:$0xff]  }
 0x274   : > { %4044 = vmatprep.subr.bf16.mxu1 %v7131_v44  ;;  %v7587_v44 = vld [vmem:[#allocation8 + $0x20] ss:$16 sps:$4 sm:$0xff]  }
 0x275   : > { %4004 = vmatpush2.bf16.msra.mxu0 %v7002_v45  ;;  %v7590_v45 = vld [vmem:[#allocation8 + $0x220] ss:$16 sps:$4 sm:$0xff]  }
 0x276   : > { %5995 = vmatprep.subr.bf16.mxu0 %v7553_v8  ;;  %v7628_v8 = vld [vmem:[#allocation8 + $0x364] ss:$16 sps:$4 sm:$0xff]  }
 0x277   : > { %4045 = vmatpush2.bf16.msra.mxu1 %v7130_v19  ;;  %v7595_v19 = vld [vmem:[#allocation8 + $0x4] ss:$16 sps:$4 sm:$0xff]  }
 0x278   : > { %v3761_v29 = vpop.f32.mrf.mxu0  ;;  %4006 = vmatmul.mubr.bf16.vlgmr.msra.gmra.mxu0 %v8418_v38  ;;  %6036 = vmatprep.subr.bf16.mxu1 %v7556_v9  ;;  %v7623_v9 = vld [vmem:[#allocation8 + $0x160] ss:$16 sps:$4 sm:$0xff]  }
 0x279   : > { %5996 = vmatpush1.bf16.msra.mxu0 %v7551_v10  ;;  %v7626_v10 = vld [vmem:[#allocation8 + $0x360] ss:$16 sps:$4 sm:$0xff]  }
 0x27a   : > { %v3802_v48 = vpop.f32.mrf.mxu1  ;;  %4047 = vmatmul.mubr.bf16.vlgmr.msra.gmra.mxu1 %v8422_v39  ;;  %v3763_v54 = vpop.f32.mrf.mxu0  ;;  %5997 = vmatprep.subr.bf16.mxu0 %v7559_v11  ;;  %v7634_v11 = vld [vmem:[#allocation8 + $0x344] ss:$16 sps:$4 sm:$0xff]  }
 0x27b   : > { %v3803_v49 = vadd.f32 %v3802_v48, %v3761_v29  ;;  %6037 = vmatpush1.bf16.msra.mxu1 %v7554_v33  ;;  %v7598_v29 = vld [vmem:[#allocation8 + $0x204] ss:$16 sps:$4 sm:$0xff]   ;;  %v7593_v48 = vld [vmem:[#allocation8] ss:$16 sps:$4 sm:$0xff]  }
 0x27c   : > { %v3804_v50 = vpop.f32.mrf.mxu1  ;;  %v3765_v52 = vpop.f32.mrf.mxu0  ;;  %6038 = vmatprep.subr.bf16.mxu1 %v7562_v12  ;;  %v7631_v33 = vld [vmem:[#allocation8 + $0x144] ss:$16 sps:$4 sm:$0xff]  }
 0x27d   : > { %v3805_v51 = vadd.f32 %v3804_v50, %v3763_v54  ;;  %5998 = vmatpush1.bf16.msra.mxu0 %v7557_v13  ;;  %v7601_v54 = vld [vmem:[#allocation8 + $0x1e4] ss:$16 sps:$4 sm:$0xff]   ;;  %v7602_v52 = vld [vmem:[#allocation8 + $0x3e0] ss:$16 sps:$4 sm:$0xff]  }
 0x27e   : > { %v3806_v59 = vpop.f32.mrf.mxu1  ;;  %v3766_v56 = vpop.f32.mrf.mxu0  ;;  %5999 = vmatprep.subr.bf16.mxu0 %v7565_v18  ;;  %v7604_v50 = vld [vmem:[#allocation8 + $0x3e4] ss:$16 sps:$4 sm:$0xff]   ;;  %v7632_v18 = vld [vmem:[#allocation8 + $0x340] ss:$16 sps:$4 sm:$0xff]  }
 0x27f   : > { %6039 = vmatpush1.bf16.msra.mxu1 %v7560_v15  ;;  %v7605_v59 = vld [vmem:[#allocation8 + $0x1c0] ss:$16 sps:$4 sm:$0xff]   ;;  %v7607_v56 = vld [vmem:[#allocation8 + $0x1c4] ss:$16 sps:$4 sm:$0xff]  }
 0x280   : > { %v3807_v57 = vpop.f32.mrf.mxu1  ;;  %6040 = vmatprep.subr.bf16.mxu1 %v7568_v21  ;;  %v7629_v15 = vld [vmem:[#allocation8 + $0x140] ss:$16 sps:$4 sm:$0xff]  }
 0x281   : > { %6000 = vmatpush1.bf16.msra.mxu0 %v7563_v23  ;;  %v7608_v57 = vld [vmem:[#allocation8 + $0x3c0] ss:$16 sps:$4 sm:$0xff]  }
 0x282   : > { %6001 = vmatprep.subr.bf16.mxu0 %v7571_v26  ;;  %v7640_v26 = vld [vmem:[#allocation8 + $0x324] ss:$16 sps:$4 sm:$0xff]  }
 0x283   : > { %6041 = vmatpush1.bf16.msra.mxu1 %v7566_v24  ;;  %v7637_v24 = vld [vmem:[#allocation8 + $0x124] ss:$16 sps:$4 sm:$0xff]  }
 0x284   : > { %6042 = vmatprep.subr.bf16.mxu1 %v7574_v27 }
 0x285   : > { %6002 = vmatpush1.bf16.msra.mxu0 %v7569_v28 }
 0x286   : > { %6003 = vmatprep.subr.bf16.mxu0 %v7577_v32  ;;  %v7635_v32 = vld [vmem:[#allocation8 + $0x120] ss:$16 sps:$4 sm:$0xff]  }
 0x287   : > { %6043 = vmatpush1.bf16.msra.mxu1 %v7572_v31 }
 0x288   : > { %6044 = vmatprep.subr.bf16.mxu1 %v7580_v16  ;;  %v7638_v16 = vld [vmem:[#allocation8 + $0x320] ss:$16 sps:$4 sm:$0xff]  }
 0x289   : > { %6004 = vmatpush1.bf16.msra.mxu0 %v7575_v30 }
 0x28a   : > { %6005 = vmatprep.subr.bf16.mxu0 %v7583_v20  ;;  %v7646_v20 = vld [vmem:[#allocation8 + $0x304] ss:$16 sps:$4 sm:$0xff]  }
 0x28b   : > { %6045 = vmatpush1.bf16.msra.mxu1 %v7578_v35  ;;  %v7643_v35 = vld [vmem:[#allocation8 + $0x104] ss:$16 sps:$4 sm:$0xff]  }
 0x28c   : > { %6046 = vmatprep.subr.bf16.mxu1 %v7586_v36 }
 0x28d   : > { %6006 = vmatpush1.bf16.msra.mxu0 %v7581_v37  ;;  %v7641_v37 = vld [vmem:[#allocation8 + $0x100] ss:$16 sps:$4 sm:$0xff]  }
 0x28e   : > { %6007 = vmatprep.subr.bf16.mxu0 %v7589_v42  ;;  %v7649_v42 = vld [vmem:[#allocation8 + $0x4e4] ss:$16 sps:$4 sm:$0xff]  }
 0x28f   : > { %6047 = vmatpush1.bf16.msra.mxu1 %v7584_v40  ;;  %v7644_v40 = vld [vmem:[#allocation8 + $0x300] ss:$16 sps:$4 sm:$0xff]  }
 0x290   : > { %6048 = vmatprep.subr.bf16.mxu1 %v7592_v43  ;;  %v7652_v43 = vld [vmem:[#allocation8 + $0x6e4] ss:$16 sps:$4 sm:$0xff]  }
 0x291   : > { %6008 = vmatpush1.bf16.msra.mxu0 %v7587_v44 }
 0x292   : > { %6009 = vmatprep.subr.bf16.mxu0 %v7595_v19 }
 0x293   : > { %6049 = vmatpush1.bf16.msra.mxu1 %v7590_v45 }
 0x294   : > { %6050 = vmatprep.subr.bf16.mxu1 %v7598_v29 }
 0x295   : > { %6010 = vmatpush1.bf16.msra.mxu0 %v7593_v48 }
 0x296   : > { %6011 = vmatprep.subr.bf16.mxu0 %v7601_v54 }
 0x2b8   : > { %v3843_v60 = vpop.f32.mrf.mxu0 }
 0x2b9   : > { %v3844_v61 = vadd.f32 %v3843_v60, %v3803_v49  ;;  %v7596_v49 = vld [vmem:[#allocation8 + $0x200] ss:$16 sps:$4 sm:$0xff]   ;;  %v7610_v60 = vld [vmem:[#allocation8 + $0x3c4] ss:$16 sps:$4 sm:$0xff]  }
 0x2ba   : > { %v3884_v62 = vpop.f32.mrf.mxu1  ;;  %v3845_v0 = vpop.f32.mrf.mxu0  ;;  %6051 = vmatpush1.bf16.msra.mxu1 %v7596_v49 }
 0x2bb   : > { %v8543_v1 = vadd.f32 %v3884_v62, %v3844_v61  ;;  %v3846_v2 = vadd.f32 %v3845_v0, %v3805_v51  ;;  %v7599_v51 = vld [vmem:[#allocation8 + $0x1e0] ss:$16 sps:$4 sm:$0xff]   ;;  %6052 = vmatprep.subr.bf16.mxu1 %v7604_v50  ;;  %v7613_v61 = vld [vmem:[#allocation8 + $0x1a4] ss:$16 sps:$4 sm:$0xff]  }
 0x2bc   : > { %v3886_v4 = vpop.f32.mrf.mxu1  ;;  %v3847_v38 = vpop.f32.mrf.mxu0  ;;  %6012 = vmatpush2.bf16.msra.mxu0 %v7599_v51  ;;  %v7616_v62 = vld [vmem:[#allocation8 + $0x3a4] ss:$16 sps:$4 sm:$0xff]   ;;  %v7611_v0 = vld [vmem:[#allocation8 + $0x1a0] ss:$16 sps:$4 sm:$0xff]  }
 0x2bd   : > { %v8545_v25 = vadd.f32 %v3886_v4, %v3846_v2  ;;  %6013 = vmatprep.subr.bf16.mxu0 %v7607_v56  ;;  %v7614_v2 = vld [vmem:[#allocation8 + $0x3a0] ss:$16 sps:$4 sm:$0xff]   ;;  %v7619_v4 = vld [vmem:[#allocation8 + $0x184] ss:$16 sps:$4 sm:$0xff]   ;;  %v4079_v19 = vrot.slane %v8543_v1, 4  ;;  %v4116_v29 = vmul.f32 %v8543_v1, %v8543_v1 }
 0x2be   : > { %v3888_v39 = vpop.f32.mrf.mxu1  ;;  %v3848_v5 = vpop.f32.mrf.mxu0  ;;  %6053 = vmatpush2.bf16.msra.mxu1 %v7602_v52  ;;  %v7622_v38 = vld [vmem:[#allocation8 + $0x384] ss:$16 sps:$4 sm:$0xff]  }
 0x2bf   : > { %6054 = vmatprep.subr.bf16.mxu1 %v7610_v60  ;;  %v7617_v39 = vld [vmem:[#allocation8 + $0x180] ss:$16 sps:$4 sm:$0xff]   ;;  %v4085_v44 = vrot.slane %v8545_v25, 4  ;;  %v4117_v45 = vmul.f32 %v8545_v25, %v8545_v25  ;;  %v4080_v54 = vadd.f32 %v4079_v19, %v8543_v1  ;;  %v4144_v50 = vrot.slane %v4116_v29, 4 }
 0x2c0   : > { %v3889_v6 = vpop.f32.mrf.mxu1  ;;  %6014 = vmatpush2.bf16.msra.mxu0 %v7605_v59  ;;  %v7620_v5 = vld [vmem:[#allocation8 + $0x380] ss:$16 sps:$4 sm:$0xff]  }
 0x2c1   : > { %6015 = vmatprep.subr.bf16.mxu0 %v7613_v61  ;;  %v7625_v6 = vld [vmem:[#allocation8 + $0x164] ss:$16 sps:$4 sm:$0xff]   ;;  %v4086_v48 = vadd.f32 %v4085_v44, %v8545_v25  ;;  %v4150_v49 = vrot.slane %v4117_v45, 4  ;;  %v4081_v59 = vrot.slane %v4080_v54, 2  ;;  %v4145_v56 = vadd.f32 %v4144_v50, %v4116_v29 }
 0x2c2   : > { %6055 = vmatpush2.bf16.msra.mxu1 %v7608_v57 }
 0x2c3   : > { %6056 = vmatprep.subr.bf16.mxu1 %v7616_v62  ;;  %v4087_v51 = vrot.slane %v4086_v48, 2  ;;  %v4151_v52 = vadd.f32 %v4150_v49, %v4117_v45  ;;  %v4082_v61 = vadd.f32 %v4081_v59, %v4080_v54  ;;  %v4146_v62 = vrot.slane %v4145_v56, 2 }
 0x2c4   : > { %6016 = vmatpush2.bf16.msra.mxu0 %v7611_v0 }
 0x2c5   : > { %6017 = vmatprep.subr.bf16.mxu0 %v7619_v4  ;;  %v4088_v57 = vadd.f32 %v4087_v51, %v4086_v48  ;;  %v4152_v60 = vrot.slane %v4151_v52, 2  ;;  %v4083_v4 = vrot.slane %v4082_v61, 1 }
 0x2c6   : > { %6057 = vmatpush2.bf16.msra.mxu1 %v7614_v2 }
 0x2c7   : > { %6058 = vmatprep.subr.bf16.mxu1 %v7622_v38  ;;  %v4089_v0 = vrot.slane %v4088_v57, 1  ;;  %v4153_v2 = vadd.f32 %v4152_v60, %v4151_v52  ;;  %v4147_v38 = vadd.f32 %v4146_v62, %v4145_v56 }
 0x2c8   : > { %6018 = vmatpush2.bf16.msra.mxu0 %v7617_v39 }
 0x2c9   : > { %6019 = vmatprep.subr.bf16.mxu0 %v7625_v6  ;;  %v4090_v39 = vadd.f32 %v4089_v0, %v4088_v57 }
 0x2ca   : > { %6059 = vmatpush2.bf16.msra.mxu1 %v7620_v5  ;;  %v4154_v5 = vrot.slane %v4153_v2, 1 }
 0x2cb   : > { %6060 = vmatprep.subr.bf16.mxu1 %v7628_v8 }
 0x2cc   : > { %6020 = vmatpush2.bf16.msra.mxu0 %v7623_v9 }
 0x2cd   : > { %6021 = vmatprep.subr.bf16.mxu0 %v7631_v33  ;;  %v4084_v33 = vadd.f32 %v4083_v4, %v4082_v61 }
 0x2ce   : > { %6061 = vmatpush2.bf16.msra.mxu1 %v7626_v10 }
 0x2cf   : > { %6062 = vmatprep.subr.bf16.mxu1 %v7634_v11  ;;  %v4148_v11 = vrot.slane %v4147_v38, 1 }
 0x2d0   : > { %6022 = vmatpush2.bf16.msra.mxu0 %v7629_v15 }
 0x2d1   : > { %6023 = vmatprep.subr.bf16.mxu0 %v7637_v24  ;;  %v8557_v24 = vmul.f32 0.125, %v4090_v39 }
 0x2d2   : > { %6063 = vmatpush2.bf16.msra.mxu1 %v7632_v18 }
 0x2d3   : > { %6064 = vmatprep.subr.bf16.mxu1 %v7640_v26  ;;  %v4155_v26 = vadd.f32 %v4154_v5, %v4153_v2 }
 0x2d4   : > { %6024 = vmatpush2.bf16.msra.mxu0 %v7635_v32 }
 0x2d5   : > { %6025 = vmatprep.subr.bf16.mxu0 %v7643_v35 }
 0x2d6   : > { %6065 = vmatpush2.bf16.msra.mxu1 %v7638_v16 }
 0x2d7   : > { %6066 = vmatprep.subr.bf16.mxu1 %v7646_v20 }
 0x2d8   : > { %6026 = vmatpush2.bf16.msra.mxu0 %v7641_v37 }
 0x2d9   : > { %6077 = vmatprep.subr.bf16.mxu0 %v7649_v42  ;;  %v4173_v42 = vmul.f32 0.125, %v4155_v26 }
 0x2da   : > { %6067 = vmatpush2.bf16.msra.mxu1 %v7644_v40 }
 0x2db   : > { %6118 = vmatprep.subr.bf16.mxu1 %v7652_v43  ;;  %v4181_v43 = vmul.f32 %v8557_v24, %v8557_v24 }
 0x2dd   : > { %v4189_v59 = vsub.f32 %v4173_v42, %v4181_v43 }
 0x2df   : > { %v4197_v39 = vmax.f32 %v4189_v59, 0.0  ;;  %v8589_v59 = vsub.s32 2, %v8528_v58 }
 0x2f8   : > { %v3925_v12 = vpop.f32.mrf.mxu0 }
 0x2fa   : > { %v3966_v13 = vpop.f32.mrf.mxu1  ;;  %v3927_v23 = vpop.f32.mrf.mxu0 }
 0x2fb   : > { %v3967_v21 = vadd.f32 %v3966_v13, %v3925_v12 }
 0x2fc   : > { %v3968_v27 = vpop.f32.mrf.mxu1  ;;  %v3929_v28 = vpop.f32.mrf.mxu0 }
 0x2fd   : > { %v3969_v8 = vadd.f32 %v3968_v27, %v3927_v23  ;;  %v8564_v23 = vmul.f32 0.125, %v4084_v33  ;;  %v4149_v27 = vadd.f32 %v4148_v11, %v4147_v38 }
 0x2fe   : > { %v3970_v31 = vpop.f32.mrf.mxu1  ;;  %v3930_v30 = vpop.f32.mrf.mxu0 }
 0x2ff   : > { %v4172_v48 = vmul.f32 0.125, %v4149_v27  ;;  %v4180_v49 = vmul.f32 %v8564_v23, %v8564_v23 }
 0x300   : > { %v3971_v36 = vpop.f32.mrf.mxu1 }
 0x301   : > { %v4188_v62 = vsub.f32 %v4172_v48, %v4180_v49  ;;  %v4265_v49 = vrot.slane %v4257_v53, %v8531_v3 }
 0x338   : > { %v4007_v6 = vpop.f32.mrf.mxu0 }
 0x339   : > { %v4008_v9 = vadd.f32 %v4007_v6, %v3967_v21 }
 0x33a   : > { %v4048_v10 = vpop.f32.mrf.mxu1  ;;  %v4009_v12 = vpop.f32.mrf.mxu0 }
 0x33b   : > { %v8555_v13 = vadd.f32 %v4048_v10, %v4008_v9  ;;  %v4010_v15 = vadd.f32 %v4009_v12, %v3969_v8  ;;  %v4196_v10 = vmax.f32 %v4188_v62, 0.0 }
 0x33c   : > { %v4050_v18 = vpop.f32.mrf.mxu1  ;;  %v4011_v28 = vpop.f32.mrf.mxu0 }
 0x33d   : > { %v4091_v31 = vrot.slane %v8555_v13, 4  ;;  %v4118_v32 = vmul.f32 %v8555_v13, %v8555_v13  ;;  %v8562_v16 = vadd.f32 %v4050_v18, %v4010_v15  ;;  %v4206_v18 = vadd.f32 1e-05, %v4197_v39 }
 0x33e   : > { %v4052_v21 = vpop.f32.mrf.mxu1  ;;  %v4012_v30 = vpop.f32.mrf.mxu0 }
 0x33f   : > { %v4092_v35 = vadd.f32 %v4091_v31, %v8555_v13  ;;  %v4156_v20 = vrot.slane %v4118_v32, 4  ;;  %v4097_v36 = vrot.slane %v8562_v16, 4  ;;  %v4119_v37 = vmul.f32 %v8562_v16, %v8562_v16 }
 0x340   : > { %v4053_v40 = vpop.f32.mrf.mxu1  ;;  %7943 = vrsqrt.f32 %v4206_v18 }
 0x341   : > { %v4093_v44 = vrot.slane %v4092_v35, 2  ;;  %v4157_v45 = vadd.f32 %v4156_v20, %v4118_v32  ;;  %v4098_v19 = vadd.f32 %v4097_v36, %v8562_v16  ;;  %v4162_v29 = vrot.slane %v4119_v37, 4 }
 0x342   : > { %v4205_v32 = vadd.f32 1e-05, %v4196_v10 }
 0x343   : > { %v4094_v54 = vadd.f32 %v4093_v44, %v4092_v35  ;;  %v4158_v50 = vrot.slane %v4157_v45, 2  ;;  %v4099_v51 = vrot.slane %v4098_v19, 2  ;;  %v4163_v52 = vadd.f32 %v4162_v29, %v4119_v37 }
 0x344   : > { %7945 = vrsqrt.f32 %v4205_v32 }
 0x345   : > { %v4095_v56 = vrot.slane %v4094_v54, 1  ;;  %v4159_v57 = vadd.f32 %v4158_v50, %v4157_v45  ;;  %v4100_v60 = vadd.f32 %v4099_v51, %v4098_v19  ;;  %v4164_v61 = vrot.slane %v4163_v52, 2 }
 0x346   : > { %v8583_v50 = vsub.s32 0, %v8528_v58 }
 0x347   : > { %v4096_v0 = vadd.f32 %v4095_v56, %v4094_v54  ;;  %v4160_v2 = vrot.slane %v4159_v57, 1  ;;  %v4101_v4 = vrot.slane %v4100_v60, 1  ;;  %v4165_v38 = vadd.f32 %v4164_v61, %v4163_v52  ;;  %v4200_v54 = vld [vmem:[#allocation7] ss:$2 sm:$0xff] }
 0x348   : > { %v8586_v52 = vsub.s32 1, %v8528_v58  ;;  %v8592_v56 = vsub.s32 3, %v8528_v58 }
 0x349   : > { %v4110_v5 = vmul.f32 0.125, %v4096_v0  ;;  %v4161_v6 = vadd.f32 %v4160_v2, %v4159_v57  ;;  %v4102_v8 = vadd.f32 %v4101_v4, %v4100_v60  ;;  %v4166_v9 = vrot.slane %v4165_v38, 1 }
 0x34a   : > { %v4297_v57 = vsub.s32 4, %v8528_v58  ;;  %v4301_v60 = vsub.s32 5, %v8528_v58 }
 0x34b   : > { %v4174_v33 = vmul.f32 0.125, %v4161_v6  ;;  %v4182_v11 = vmul.f32 %v4110_v5, %v4110_v5  ;;  %v4111_v12 = vmul.f32 0.125, %v4102_v8  ;;  %v4167_v15 = vadd.f32 %v4166_v9, %v4165_v38 }
 0x34d   : > { %v4190_v26 = vsub.f32 %v4174_v33, %v4182_v11  ;;  %v4175_v28 = vmul.f32 0.125, %v4167_v15  ;;  %v4183_v31 = vmul.f32 %v4111_v12, %v4111_v12  ;;  %v7944_v36 = vpop.eup %7943 }
 0x34f   : > { %v4198_v21 = vmax.f32 %v4190_v26, 0.0  ;;  %v4191_v27 = vsub.f32 %v4175_v28, %v4183_v31 }
 0x351   : > { %v4207_v30 = vadd.f32 1e-05, %v4198_v21  ;;  %v4199_v35 = vmax.f32 %v4191_v27, 0.0  ;;  %v7946_v37 = vpop.eup %7945 }
 0x352   : > { %v4227_v42 = vcombine.low %v7946_v37, %v7944_v36 }
 0x353   : > { %v4208_v20 = vadd.f32 1e-05, %v4199_v35  ;;  %7947 = vrsqrt.f32 %v4207_v30  ;;  %v4277_v30 = vld [vmem:[#allocation7 + $0x1] ss:$2 sm:$0xff] }
 0x354   : > { %v4249_v45 = vrot.slane %v4227_v42, %v8531_v3 }
 0x355   : > { %7949 = vrsqrt.f32 %v4208_v20 }
 0x360   : > { %v7948_v40 = vpop.eup %7947 }
 0x362   : > { %v7950_v43 = vpop.eup %7949 }
 0x363   : > { %v4228_v44 = vcombine.low %v7948_v40, %v7950_v43 }
 0x365   : > { %v4256_v19 = vrot.slane %v4228_v44, %v8531_v3 }
 0x367   : > { %v4258_v29 = vcombine.low %v4249_v45, %v4256_v19 }
 0x369   : > { %v4272_v48 = vrot.slane %v4258_v29, %v8531_v3 }
 0x36b   : > { %v4273_v51 = vcombine.low %v4265_v49, %v4272_v48 }
 0x36d   : > { %v4275_v53 = vmul.f32 %v4273_v51, %v4200_v54 }
 0x36f   : > { %v4282_v61 = vrot.slane %v4275_v53, %v8583_v50  ;;  %v4286_v62 = vrot.slane %v4275_v53, %v8586_v52  ;;  %v4290_v0 = vrot.slane %v4275_v53, %v8589_v59  ;;  %v4294_v2 = vrot.slane %v4275_v53, %v8592_v56 }
 0x370   : > { %v4298_v4 = vrot.slane %v4275_v53, %v4297_v57  ;;  %v4302_v38 = vrot.slane %v4275_v53, %v4301_v60  ;;  %v4306_v39 = vrot.slane %v4275_v53, %v4305_v14  ;;  %v4310_v6 = vrot.slane %v4275_v53, %v4309_v17 }
 0x371   : > { %v4319_v8 = vmul.f32 %v4282_v61, %v8501_v22  ;;  %v4320_v9 = vmul.f32 %v4286_v62, %v8493_v41  ;;  %v4321_v10 = vmul.f32 %v4290_v0, %v8520_v46  ;;  %v4322_v58 = vmul.f32 %v4294_v2, %v8524_v55 }
 0x372   : > { %v4323_v33 = vmul.f32 %v4298_v4, %v8564_v23  ;;  %v4324_v11 = vmul.f32 %v4302_v38, %v8557_v24  ;;  %v4325_v15 = vmul.f32 %v4306_v39, %v4110_v5  ;;  %v4326_v18 = vmul.f32 %v4310_v6, %v4111_v12 }
 0x373   : > { %v4335_v26 = vcombine.low %v4319_v8, %v4320_v9  ;;  %v4336_v28 = vcombine.low %v4321_v10, %v4322_v58  ;;  %v4387_v31 = vmul.f32 %v4286_v62, %v8448_v7  ;;  %v4389_v32 = vmul.f32 %v4294_v2, %v8498_v47  ;;  %v7655_v8 = vld [vmem:[#allocation8 + $0x4c4] ss:$16 sps:$4 sm:$0xff]  }
 0x374   : > { %v4337_v21 = vcombine.low %v4323_v33, %v4324_v11  ;;  %v4338_v22 = vcombine.low %v4325_v15, %v4326_v18  ;;  %v4393_v55 = vmul.f32 %v4310_v6, %v8562_v16  ;;  %v4392_v5 = vmul.f32 %v4306_v39, %v8555_v13  ;;  %v7658_v9 = vld [vmem:[#allocation8 + $0x6c4] ss:$16 sps:$4 sm:$0xff]   ;;  %v7653_v33 = vld [vmem:[#allocation8 + $0x4c0] ss:$16 sps:$4 sm:$0xff]  }
 0x375   : > { %v4345_v41 = vrot.slane %v4335_v26, %v8531_v3  ;;  %v4352_v46 = vrot.slane %v4336_v28, %v8531_v3  ;;  %v4386_v36 = vmul.f32 %v4282_v61, %v8443_v63  ;;  %v4388_v37 = vmul.f32 %v4290_v0, %v8479_v34  ;;  %v7656_v11 = vld [vmem:[#allocation8 + $0x6c0] ss:$16 sps:$4 sm:$0xff]   ;;  %v7661_v15 = vld [vmem:[#allocation8 + $0x4a4] ss:$16 sps:$4 sm:$0xff]  }
 0x376   : > { %v4359_v23 = vrot.slane %v4337_v21, %v8531_v3  ;;  %v4366_v24 = vrot.slane %v4338_v22, %v8531_v3  ;;  %v4391_v16 = vmul.f32 %v4302_v38, %v8545_v25  ;;  %v4390_v40 = vmul.f32 %v4298_v4, %v8543_v1  ;;  %v7664_v18 = vld [vmem:[#allocation8 + $0x6a4] ss:$16 sps:$4 sm:$0xff]   ;;  %v7659_v26 = vld [vmem:[#allocation8 + $0x4a0] ss:$16 sps:$4 sm:$0xff]  }
 0x377   : > { %v4367_v12 = vcombine.low %v4345_v41, %v4352_v46  ;;  %v7662_v28 = vld [vmem:[#allocation8 + $0x6a0] ss:$16 sps:$4 sm:$0xff]   ;;  %v7673_v41 = vld [vmem:[#allocation8 + $0x464] ss:$16 sps:$4 sm:$0xff]  }
 0x378   : > { %v4368_v27 = vcombine.low %v4359_v23, %v4366_v24  ;;  %v7665_v21 = vld [vmem:[#allocation8 + $0x480] ss:$16 sps:$4 sm:$0xff]   ;;  %v7676_v46 = vld [vmem:[#allocation8 + $0x664] ss:$16 sps:$4 sm:$0xff]  }
 0x379   : > { %v4375_v7 = vrot.slane %v4367_v12, %v8531_v3  ;;  %v7668_v22 = vld [vmem:[#allocation8 + $0x680] ss:$16 sps:$4 sm:$0xff]   ;;  %v7679_v24 = vld [vmem:[#allocation8 + $0x444] ss:$16 sps:$4 sm:$0xff]  }
 0x37a   : > { %v4382_v47 = vrot.slane %v4368_v27, %v8531_v3  ;;  %v7674_v23 = vld [vmem:[#allocation8 + $0x660] ss:$16 sps:$4 sm:$0xff]  }
 0x37b   : > { %v7677_v12 = vld [vmem:[#allocation8 + $0x440] ss:$16 sps:$4 sm:$0xff]  }
 0x37c   : > { %v4383_v35 = vcombine.low %v4375_v7, %v4382_v47  ;;  %v7680_v27 = vld [vmem:[#allocation8 + $0x640] ss:$16 sps:$4 sm:$0xff]   ;;  %v7685_v7 = vld [vmem:[#allocation8 + $0x424] ss:$16 sps:$4 sm:$0xff]  }
 0x37d   : > { %v7688_v47 = vld [vmem:[#allocation8 + $0x624] ss:$16 sps:$4 sm:$0xff]  }
 0x37e   : > { %v4385_v20 = vsub.f32 %v4277_v30, %v4383_v35  ;;  %v7683_v30 = vld [vmem:[#allocation8 + $0x420] ss:$16 sps:$4 sm:$0xff]  }
 0x37f   : > { %v7686_v35 = vld [vmem:[#allocation8 + $0x620] ss:$16 sps:$4 sm:$0xff]  }
 0x380   : > { %v4402_v42 = vrot.slane %v4385_v20, %v8586_v52  ;;  %v4410_v13 = vrot.slane %v4385_v20, %v8592_v56  ;;  %v4398_v43 = vrot.slane %v4385_v20, %v8583_v50  ;;  %v4406_v44 = vrot.slane %v4385_v20, %v8589_v59 }
 0x381   : > { %v4418_v45 = vrot.slane %v4385_v20, %v4301_v60  ;;  %v4426_v19 = vrot.slane %v4385_v20, %v4309_v17  ;;  %v4414_v29 = vrot.slane %v4385_v20, %v4297_v57  ;;  %v4422_v48 = vrot.slane %v4385_v20, %v4305_v14  ;;  %v7647_v14 = vld [vmem:[#allocation8 + $0x4e0] ss:$16 sps:$4 sm:$0xff]   ;;  %v7691_v20 = vld [vmem:[#allocation8 + $0x404] ss:$16 sps:$4 sm:$0xff]  }
 0x382   : > { %v4436_v49 = vadd.f32 %v4402_v42, %v4387_v31  ;;  %v4438_v63 = vadd.f32 %v4410_v13, %v4389_v32  ;;  %v4435_v54 = vadd.f32 %v4398_v43, %v4386_v36  ;;  %v4437_v34 = vadd.f32 %v4406_v44, %v4388_v37  ;;  %v7650_v17 = vld [vmem:[#allocation8 + $0x6e0] ss:$16 sps:$4 sm:$0xff]   ;;  %v7667_v31 = vld [vmem:[#allocation8 + $0x484] ss:$16 sps:$4 sm:$0xff]  }
 0x383   : > { %v4440_v51 = vadd.f32 %v4418_v45, %v4391_v16  ;;  %v4442_v25 = vadd.f32 %v4426_v19, %v4393_v55  ;;  %v8626_v53 = vadd.f32 %v4414_v29, %v4390_v40  ;;  %v8628_v1 = vadd.f32 %v4422_v48, %v4392_v5  ;;  %v7670_v32 = vld [vmem:[#allocation8 + $0x684] ss:$16 sps:$4 sm:$0xff]   ;;  %v7671_v55 = vld [vmem:[#allocation8 + $0x460] ss:$16 sps:$4 sm:$0xff]  }
 0x384   : > { %v4444_v61 = vmax.f32 %v4436_v49, 0.0  ;;  %v4446_v62 = vmax.f32 %v4438_v63, 0.0  ;;  %v4443_v0 = vmax.f32 %v4435_v54, 0.0  ;;  %v4445_v2 = vmax.f32 %v4437_v34, 0.0  ;;  %v7682_v5 = vld [vmem:[#allocation8 + $0x644] ss:$16 sps:$4 sm:$0xff]  }
 0x385   : > { %v4448_v4 = vmax.f32 %v4440_v51, 0.0  ;;  %v4450_v38 = vmax.f32 %v4442_v25, 0.0  ;;  %v7694_v36 = vld [vmem:[#allocation8 + $0x604] ss:$16 sps:$4 sm:$0xff]   ;;  %v7689_v37 = vld [vmem:[#allocation8 + $0x400] ss:$16 sps:$4 sm:$0xff]  }
 0x386   : > { %v8630_v60 = vpack.c.bf16 %v4444_v61, %v4444_v61  ;;  %v8632_v57 = vpack.c.bf16 %v4446_v62, %v4446_v62  ;;  %v8634_v39 = vpack.c.bf16 %v4443_v0, %v4443_v0  ;;  %v8636_v6 = vpack.c.bf16 %v4445_v2, %v4445_v2  ;;  %v7692_v16 = vld [vmem:[#allocation8 + $0x600] ss:$16 sps:$4 sm:$0xff]   ;;  %v7697_v40 = vld [vmem:[#allocation8 + $0x5e4] ss:$16 sps:$4 sm:$0xff]  }
 0x387   : > { %v8642_v10 = vpack.c.bf16 %v4448_v4, %v4448_v4  ;;  %v8644_v58 = vpack.c.bf16 %v4450_v38, %v4450_v38  ;;  %v7700_v42 = vld [vmem:[#allocation8 + $0x7e4] ss:$16 sps:$4 sm:$0xff]   ;;  %v7695_v13 = vld [vmem:[#allocation8 + $0x5e0] ss:$16 sps:$4 sm:$0xff]  }
 0x388   : > { %6027 = vmatprep.mubr.bf16.mxu0 %v8630_v60  ;;  %6068 = vmatprep.mubr.bf16.mxu1 %v8632_v57  ;;  %v7698_v43 = vld [vmem:[#allocation8 + $0x7e0] ss:$16 sps:$4 sm:$0xff]   ;;  %v7703_v44 = vld [vmem:[#allocation8 + $0x5c4] ss:$16 sps:$4 sm:$0xff]  }
 0x389   : > { %6028 = vmatmul.mubr.bf16.vlgmr.msra.gmra.mxu0 %v8634_v39  ;;  %6069 = vmatmul.mubr.bf16.vlgmr.msra.gmra.mxu1 %v8636_v6  ;;  %v7706_v45 = vld [vmem:[#allocation8 + $0x7c4] ss:$16 sps:$4 sm:$0xff]   ;;  %v7701_v19 = vld [vmem:[#allocation8 + $0x5c0] ss:$16 sps:$4 sm:$0xff]  }
 0x38a   : > { %6078 = vmatpush1.bf16.msra.mxu0 %v7647_v14  ;;  %6119 = vmatpush1.bf16.msra.mxu1 %v7650_v17  ;;  %v7704_v29 = vld [vmem:[#allocation8 + $0x7c0] ss:$16 sps:$4 sm:$0xff]   ;;  %v7709_v48 = vld [vmem:[#allocation8 + $0x5a4] ss:$16 sps:$4 sm:$0xff]  }
 0x38b   : > { %6109 = vmatprep.mubr.bf16.mxu0 %v8642_v10  ;;  %6150 = vmatprep.mubr.bf16.mxu1 %v8644_v58  ;;  %v7712_v49 = vld [vmem:[#allocation8 + $0x7a4] ss:$16 sps:$4 sm:$0xff]   ;;  %v7707_v63 = vld [vmem:[#allocation8 + $0x5a0] ss:$16 sps:$4 sm:$0xff]  }
 0x38c   : > { %6079 = vmatprep.subr.bf16.mxu0 %v7655_v8  ;;  %6120 = vmatprep.subr.bf16.mxu1 %v7658_v9  ;;  %v7710_v54 = vld [vmem:[#allocation8 + $0x7a0] ss:$16 sps:$4 sm:$0xff]   ;;  %v7715_v34 = vld [vmem:[#allocation8 + $0x584] ss:$16 sps:$4 sm:$0xff]  }
 0x38d   : > { %v7718_v51 = vld [vmem:[#allocation8 + $0x784] ss:$16 sps:$4 sm:$0xff]   ;;  %v7713_v25 = vld [vmem:[#allocation8 + $0x580] ss:$16 sps:$4 sm:$0xff]  }
 0x38e   : > { %6080 = vmatpush1.bf16.msra.mxu0 %v7653_v33  ;;  %6121 = vmatpush1.bf16.msra.mxu1 %v7656_v11  ;;  %v7716_v61 = vld [vmem:[#allocation8 + $0x780] ss:$16 sps:$4 sm:$0xff]   ;;  %v7721_v62 = vld [vmem:[#allocation8 + $0x564] ss:$16 sps:$4 sm:$0xff]  }
 0x38f   : > { %6081 = vmatprep.subr.bf16.mxu0 %v7661_v15  ;;  %6122 = vmatprep.subr.bf16.mxu1 %v7664_v18  ;;  %v7724_v0 = vld [vmem:[#allocation8 + $0x764] ss:$16 sps:$4 sm:$0xff]   ;;  %v7719_v2 = vld [vmem:[#allocation8 + $0x560] ss:$16 sps:$4 sm:$0xff]  }
 0x390   : > { %v7722_v4 = vld [vmem:[#allocation8 + $0x760] ss:$16 sps:$4 sm:$0xff]   ;;  %v7727_v38 = vld [vmem:[#allocation8 + $0x544] ss:$16 sps:$4 sm:$0xff]  }
 0x391   : > { %v7730_v14 = vld [vmem:[#allocation8 + $0x744] ss:$16 sps:$4 sm:$0xff]   ;;  %v7725_v17 = vld [vmem:[#allocation8 + $0x540] ss:$16 sps:$4 sm:$0xff]  }
 0x392   : > { %6082 = vmatpush1.bf16.msra.mxu0 %v7659_v26  ;;  %6123 = vmatpush1.bf16.msra.mxu1 %v7662_v28  ;;  %v7728_v8 = vld [vmem:[#allocation8 + $0x740] ss:$16 sps:$4 sm:$0xff]   ;;  %v7733_v9 = vld [vmem:[#allocation8 + $0x524] ss:$16 sps:$4 sm:$0xff]  }
 0x393   : > { %6083 = vmatprep.subr.bf16.mxu0 %v7667_v31  ;;  %6124 = vmatprep.subr.bf16.mxu1 %v7670_v32  ;;  %v7736_v33 = vld [vmem:[#allocation8 + $0x724] ss:$16 sps:$4 sm:$0xff]   ;;  %v7731_v11 = vld [vmem:[#allocation8 + $0x520] ss:$16 sps:$4 sm:$0xff]   ;;  %v4447_v32 = vmax.f32 %v8626_v53, 0.0 }
 0x394   : > { %v7734_v15 = vld [vmem:[#allocation8 + $0x720] ss:$16 sps:$4 sm:$0xff]   ;;  %v7739_v18 = vld [vmem:[#allocation8 + $0x504] ss:$16 sps:$4 sm:$0xff]   ;;  %v7749_v53 = vld [vmem:[#allocation8 + $0xc8] ss:$16 sps:$4 sm:$0xff]  }
 0x395   : > { %v7742_v26 = vld [vmem:[#allocation8 + $0x704] ss:$16 sps:$4 sm:$0xff]   ;;  %v7737_v28 = vld [vmem:[#allocation8 + $0x500] ss:$16 sps:$4 sm:$0xff]  }
 0x396   : > { %6084 = vmatpush1.bf16.msra.mxu0 %v7665_v21  ;;  %6125 = vmatpush1.bf16.msra.mxu1 %v7668_v22  ;;  %v7740_v31 = vld [vmem:[#allocation8 + $0x700] ss:$16 sps:$4 sm:$0xff]   ;;  %v4449_v21 = vmax.f32 %v8628_v1, 0.0  ;;  %v7745_v22 = vld [vmem:[#allocation8 + $0xec] ss:$16 sps:$4 sm:$0xff]  }
 0x397   : > { %6085 = vmatprep.subr.bf16.mxu0 %v7673_v41  ;;  %6126 = vmatprep.subr.bf16.mxu1 %v7676_v46  ;;  %v7748_v41 = vld [vmem:[#allocation8 + $0x2ec] ss:$16 sps:$4 sm:$0xff]   ;;  %v7743_v46 = vld [vmem:[#allocation8 + $0xe8] ss:$16 sps:$4 sm:$0xff]  }
 0x398   : > { %v7752_v1 = vld [vmem:[#allocation8 + $0x2c8] ss:$16 sps:$4 sm:$0xff]  }
 0x39a   : > { %6086 = vmatpush1.bf16.msra.mxu0 %v7671_v55  ;;  %6127 = vmatpush1.bf16.msra.mxu1 %v7674_v23  ;;  %v8650_v55 = vpack.c.bf16 %v4447_v32, %v4447_v32  ;;  %v8652_v23 = vpack.c.bf16 %v4449_v21, %v4449_v21  ;;  %v7818_v32 = vld [vmem:[#allocation8 + $0x368] ss:$16 sps:$4 sm:$0xff]   ;;  %v7823_v21 = vld [vmem:[#allocation8 + $0x14c] ss:$16 sps:$4 sm:$0xff]  }
 0x39b   : > { %6087 = vmatprep.subr.bf16.mxu0 %v7679_v24  ;;  %6128 = vmatprep.subr.bf16.mxu1 %v7682_v5  ;;  %v7746_v24 = vld [vmem:[#allocation8 + $0x2e8] ss:$16 sps:$4 sm:$0xff]   ;;  %v7751_v5 = vld [vmem:[#allocation8 + $0xcc] ss:$16 sps:$4 sm:$0xff]  }
 0x39e   : > { %6088 = vmatpush1.bf16.msra.mxu0 %v7677_v12  ;;  %6129 = vmatpush1.bf16.msra.mxu1 %v7680_v27  ;;  %v7754_v12 = vld [vmem:[#allocation8 + $0x2cc] ss:$16 sps:$4 sm:$0xff]  }
 0x39f   : > { %6089 = vmatprep.subr.bf16.mxu0 %v7685_v7  ;;  %6130 = vmatprep.subr.bf16.mxu1 %v7688_v47  ;;  %v7757_v27 = vld [vmem:[#allocation8 + $0xac] ss:$16 sps:$4 sm:$0xff]   ;;  %v7755_v47 = vld [vmem:[#allocation8 + $0xa8] ss:$16 sps:$4 sm:$0xff]  }
 0x3a0   : > { %v7760_v7 = vld [vmem:[#allocation8 + $0x2ac] ss:$16 sps:$4 sm:$0xff]  }
 0x3a2   : > { %6090 = vmatpush1.bf16.msra.mxu0 %v7683_v30  ;;  %6131 = vmatpush1.bf16.msra.mxu1 %v7686_v35  ;;  %v7758_v30 = vld [vmem:[#allocation8 + $0x2a8] ss:$16 sps:$4 sm:$0xff]   ;;  %v7763_v35 = vld [vmem:[#allocation8 + $0x8c] ss:$16 sps:$4 sm:$0xff]  }
 0x3a3   : > { %6091 = vmatprep.subr.bf16.mxu0 %v7691_v20  ;;  %6132 = vmatprep.subr.bf16.mxu1 %v7694_v36  ;;  %v7766_v20 = vld [vmem:[#allocation8 + $0x28c] ss:$16 sps:$4 sm:$0xff]   ;;  %v7761_v36 = vld [vmem:[#allocation8 + $0x88] ss:$16 sps:$4 sm:$0xff]  }
 0x3a6   : > { %6092 = vmatpush1.bf16.msra.mxu0 %v7689_v37  ;;  %6133 = vmatpush1.bf16.msra.mxu1 %v7692_v16  ;;  %v7769_v37 = vld [vmem:[#allocation8 + $0x6c] ss:$16 sps:$4 sm:$0xff]   ;;  %v7767_v16 = vld [vmem:[#allocation8 + $0x68] ss:$16 sps:$4 sm:$0xff]  }
 0x3a7   : > { %6093 = vmatprep.subr.bf16.mxu0 %v7697_v40  ;;  %6134 = vmatprep.subr.bf16.mxu1 %v7700_v42  ;;  %v7770_v40 = vld [vmem:[#allocation8 + $0x268] ss:$16 sps:$4 sm:$0xff]   ;;  %v7775_v42 = vld [vmem:[#allocation8 + $0x4c] ss:$16 sps:$4 sm:$0xff]  }
 0x3aa   : > { %6094 = vmatpush2.bf16.msra.mxu0 %v7695_v13  ;;  %6135 = vmatpush2.bf16.msra.mxu1 %v7698_v43  ;;  %v7778_v13 = vld [vmem:[#allocation8 + $0x24c] ss:$16 sps:$4 sm:$0xff]   ;;  %v7773_v43 = vld [vmem:[#allocation8 + $0x48] ss:$16 sps:$4 sm:$0xff]  }
 0x3ab   : > { %6095 = vmatprep.subr.bf16.mxu0 %v7703_v44  ;;  %6136 = vmatprep.subr.bf16.mxu1 %v7706_v45  ;;  %v7776_v44 = vld [vmem:[#allocation8 + $0x248] ss:$16 sps:$4 sm:$0xff]   ;;  %v7781_v45 = vld [vmem:[#allocation8 + $0x2c] ss:$16 sps:$4 sm:$0xff]  }
 0x3ae   : > { %6096 = vmatpush2.bf16.msra.mxu0 %v7701_v19  ;;  %6137 = vmatpush2.bf16.msra.mxu1 %v7704_v29  ;;  %v7784_v19 = vld [vmem:[#allocation8 + $0x22c] ss:$16 sps:$4 sm:$0xff]   ;;  %v7779_v29 = vld [vmem:[#allocation8 + $0x28] ss:$16 sps:$4 sm:$0xff]  }
 0x3af   : > { %6097 = vmatprep.subr.bf16.mxu0 %v7709_v48  ;;  %6138 = vmatprep.subr.bf16.mxu1 %v7712_v49  ;;  %v7782_v48 = vld [vmem:[#allocation8 + $0x228] ss:$16 sps:$4 sm:$0xff]   ;;  %v7787_v49 = vld [vmem:[#allocation8 + $0xc] ss:$16 sps:$4 sm:$0xff]  }
 0x3b2   : > { %6098 = vmatpush2.bf16.msra.mxu0 %v7707_v63  ;;  %6139 = vmatpush2.bf16.msra.mxu1 %v7710_v54  ;;  %v7790_v63 = vld [vmem:[#allocation8 + $0x20c] ss:$16 sps:$4 sm:$0xff]   ;;  %v7785_v54 = vld [vmem:[#allocation8 + $0x8] ss:$16 sps:$4 sm:$0xff]  }
 0x3b3   : > { %6099 = vmatprep.subr.bf16.mxu0 %v7715_v34  ;;  %6140 = vmatprep.subr.bf16.mxu1 %v7718_v51  ;;  %v7788_v34 = vld [vmem:[#allocation8 + $0x208] ss:$16 sps:$4 sm:$0xff]   ;;  %v7793_v51 = vld [vmem:[#allocation8 + $0x1ec] ss:$16 sps:$4 sm:$0xff]  }
 0x3b6   : > { %6100 = vmatpush2.bf16.msra.mxu0 %v7713_v25  ;;  %6141 = vmatpush2.bf16.msra.mxu1 %v7716_v61  ;;  %v7796_v25 = vld [vmem:[#allocation8 + $0x3ec] ss:$16 sps:$4 sm:$0xff]   ;;  %v7791_v61 = vld [vmem:[#allocation8 + $0x1e8] ss:$16 sps:$4 sm:$0xff]  }
 0x3b7   : > { %6101 = vmatprep.subr.bf16.mxu0 %v7721_v62  ;;  %6142 = vmatprep.subr.bf16.mxu1 %v7724_v0  ;;  %v7794_v62 = vld [vmem:[#allocation8 + $0x3e8] ss:$16 sps:$4 sm:$0xff]   ;;  %v7799_v0 = vld [vmem:[#allocation8 + $0x1cc] ss:$16 sps:$4 sm:$0xff]  }
 0x3ba   : > { %6102 = vmatpush2.bf16.msra.mxu0 %v7719_v2  ;;  %6143 = vmatpush2.bf16.msra.mxu1 %v7722_v4  ;;  %v7802_v2 = vld [vmem:[#allocation8 + $0x3cc] ss:$16 sps:$4 sm:$0xff]   ;;  %v7797_v4 = vld [vmem:[#allocation8 + $0x1c8] ss:$16 sps:$4 sm:$0xff]  }
 0x3bb   : > { %6103 = vmatprep.subr.bf16.mxu0 %v7727_v38  ;;  %6144 = vmatprep.subr.bf16.mxu1 %v7730_v14  ;;  %v7800_v38 = vld [vmem:[#allocation8 + $0x3c8] ss:$16 sps:$4 sm:$0xff]   ;;  %v7805_v14 = vld [vmem:[#allocation8 + $0x1ac] ss:$16 sps:$4 sm:$0xff]  }
 0x3be   : > { %6104 = vmatpush2.bf16.msra.mxu0 %v7725_v17  ;;  %6145 = vmatpush2.bf16.msra.mxu1 %v7728_v8  ;;  %v7808_v17 = vld [vmem:[#allocation8 + $0x3ac] ss:$16 sps:$4 sm:$0xff]   ;;  %v7803_v8 = vld [vmem:[#allocation8 + $0x1a8] ss:$16 sps:$4 sm:$0xff]  }
 0x3bf   : > { %6105 = vmatprep.subr.bf16.mxu0 %v7733_v9  ;;  %6146 = vmatprep.subr.bf16.mxu1 %v7736_v33  ;;  %v7806_v9 = vld [vmem:[#allocation8 + $0x3a8] ss:$16 sps:$4 sm:$0xff]   ;;  %v7811_v33 = vld [vmem:[#allocation8 + $0x18c] ss:$16 sps:$4 sm:$0xff]  }
 0x3c2   : > { %6106 = vmatpush2.bf16.msra.mxu0 %v7731_v11  ;;  %6147 = vmatpush2.bf16.msra.mxu1 %v7734_v15  ;;  %v7814_v11 = vld [vmem:[#allocation8 + $0x38c] ss:$16 sps:$4 sm:$0xff]   ;;  %v7809_v15 = vld [vmem:[#allocation8 + $0x188] ss:$16 sps:$4 sm:$0xff]  }
 0x3c3   : > { %6107 = vmatprep.subr.bf16.mxu0 %v7739_v18  ;;  %6148 = vmatprep.subr.bf16.mxu1 %v7742_v26  ;;  %v7812_v18 = vld [vmem:[#allocation8 + $0x388] ss:$16 sps:$4 sm:$0xff]   ;;  %v7817_v26 = vld [vmem:[#allocation8 + $0x16c] ss:$16 sps:$4 sm:$0xff]  }
 0x3c6   : > { %6108 = vmatpush2.bf16.msra.mxu0 %v7737_v28  ;;  %6149 = vmatpush2.bf16.msra.mxu1 %v7740_v31  ;;  %v7820_v28 = vld [vmem:[#allocation8 + $0x36c] ss:$16 sps:$4 sm:$0xff]   ;;  %v7815_v31 = vld [vmem:[#allocation8 + $0x168] ss:$16 sps:$4 sm:$0xff]  }
 0x3c7   : > { %6159 = vmatprep.subr.bf16.mxu0 %v7745_v22  ;;  %6200 = vmatprep.subr.bf16.mxu1 %v7748_v41  ;;  %v7826_v22 = vld [vmem:[#allocation8 + $0x34c] ss:$16 sps:$4 sm:$0xff]   ;;  %v7821_v41 = vld [vmem:[#allocation8 + $0x148] ss:$16 sps:$4 sm:$0xff]  }
 0x3c9   : > { %6110 = vmatmul.mubr.bf16.vlgmr.msra.gmra.mxu0 %v8650_v55  ;;  %6151 = vmatmul.mubr.bf16.vlgmr.msra.gmra.mxu1 %v8652_v23 }
 0x3ca   : > { %6160 = vmatpush1.bf16.msra.mxu0 %v7743_v46  ;;  %6191 = vmatprep.mubr.bf16.mxu0 %v8630_v60  ;;  %v7764_v60 = vld [vmem:[#allocation8 + $0x288] ss:$16 sps:$4 sm:$0xff]  }
 0x3cb   : > { %6201 = vmatpush1.bf16.msra.mxu1 %v7746_v24  ;;  %6232 = vmatprep.mubr.bf16.mxu1 %v8632_v57  ;;  %v7772_v57 = vld [vmem:[#allocation8 + $0x26c] ss:$16 sps:$4 sm:$0xff]   ;;  %v7824_v46 = vld [vmem:[#allocation8 + $0x348] ss:$16 sps:$4 sm:$0xff]  }
 0x3cc   : > { %6161 = vmatprep.subr.bf16.mxu0 %v7751_v5  ;;  %6202 = vmatprep.subr.bf16.mxu1 %v7754_v12  ;;  %v7829_v24 = vld [vmem:[#allocation8 + $0x12c] ss:$16 sps:$4 sm:$0xff]   ;;  %v7827_v12 = vld [vmem:[#allocation8 + $0x128] ss:$16 sps:$4 sm:$0xff]  }
 0x3cd   : > { %v7832_v5 = vld [vmem:[#allocation8 + $0x32c] ss:$16 sps:$4 sm:$0xff]  }
 0x3ce   : > { %6162 = vmatpush1.bf16.msra.mxu0 %v7749_v53  ;;  %v7830_v53 = vld [vmem:[#allocation8 + $0x328] ss:$16 sps:$4 sm:$0xff]  }
 0x3cf   : > { %6203 = vmatpush1.bf16.msra.mxu1 %v7752_v1  ;;  %6163 = vmatprep.subr.bf16.mxu0 %v7757_v27  ;;  %v7835_v1 = vld [vmem:[#allocation8 + $0x10c] ss:$16 sps:$4 sm:$0xff]  }
 0x3d0   : > { %6204 = vmatprep.subr.bf16.mxu1 %v7760_v7  ;;  %v7838_v27 = vld [vmem:[#allocation8 + $0x30c] ss:$16 sps:$4 sm:$0xff]   ;;  %v7833_v7 = vld [vmem:[#allocation8 + $0x108] ss:$16 sps:$4 sm:$0xff]  }
 0x3d2   : > { %6164 = vmatpush1.bf16.msra.mxu0 %v7755_v47  ;;  %v7836_v47 = vld [vmem:[#allocation8 + $0x308] ss:$16 sps:$4 sm:$0xff]  }
 0x3d3   : > { %6205 = vmatpush1.bf16.msra.mxu1 %v7758_v30  ;;  %6165 = vmatprep.subr.bf16.mxu0 %v7763_v35  ;;  %v7841_v30 = vld [vmem:[#allocation8 + $0x4ec] ss:$16 sps:$4 sm:$0xff]  }
 0x3d4   : > { %6206 = vmatprep.subr.bf16.mxu1 %v7766_v20  ;;  %v7844_v35 = vld [vmem:[#allocation8 + $0x6ec] ss:$16 sps:$4 sm:$0xff]   ;;  %v7839_v20 = vld [vmem:[#allocation8 + $0x4e8] ss:$16 sps:$4 sm:$0xff]  }
 0x3d6   : > { %6166 = vmatpush1.bf16.msra.mxu0 %v7761_v36  ;;  %v7842_v36 = vld [vmem:[#allocation8 + $0x6e8] ss:$16 sps:$4 sm:$0xff]  }
 0x3d7   : > { %6207 = vmatpush1.bf16.msra.mxu1 %v7764_v60  ;;  %6167 = vmatprep.subr.bf16.mxu0 %v7769_v37  ;;  %v7847_v60 = vld [vmem:[#allocation8 + $0x4cc] ss:$16 sps:$4 sm:$0xff]  }
 0x3d8   : > { %6208 = vmatprep.subr.bf16.mxu1 %v7772_v57  ;;  %v7850_v37 = vld [vmem:[#allocation8 + $0x6cc] ss:$16 sps:$4 sm:$0xff]   ;;  %v7845_v57 = vld [vmem:[#allocation8 + $0x4c8] ss:$16 sps:$4 sm:$0xff]  }
 0x3da   : > { %6168 = vmatpush1.bf16.msra.mxu0 %v7767_v16  ;;  %v7848_v16 = vld [vmem:[#allocation8 + $0x6c8] ss:$16 sps:$4 sm:$0xff]  }
 0x3db   : > { %6209 = vmatpush1.bf16.msra.mxu1 %v7770_v40  ;;  %6169 = vmatprep.subr.bf16.mxu0 %v7775_v42  ;;  %v7853_v40 = vld [vmem:[#allocation8 + $0x4ac] ss:$16 sps:$4 sm:$0xff]  }
 0x3dc   : > { %6210 = vmatprep.subr.bf16.mxu1 %v7778_v13  ;;  %v7856_v42 = vld [vmem:[#allocation8 + $0x6ac] ss:$16 sps:$4 sm:$0xff]   ;;  %v7851_v13 = vld [vmem:[#allocation8 + $0x4a8] ss:$16 sps:$4 sm:$0xff]  }
 0x3de   : > { %6170 = vmatpush1.bf16.msra.mxu0 %v7773_v43  ;;  %v7859_v43 = vld [vmem:[#allocation8 + $0x48c] ss:$16 sps:$4 sm:$0xff]  }
 0x3df   : > { %6211 = vmatpush1.bf16.msra.mxu1 %v7776_v44  ;;  %6171 = vmatprep.subr.bf16.mxu0 %v7781_v45  ;;  %v7857_v44 = vld [vmem:[#allocation8 + $0x488] ss:$16 sps:$4 sm:$0xff]   ;;  %v7865_v45 = vld [vmem:[#allocation8 + $0x46c] ss:$16 sps:$4 sm:$0xff]  }
 0x3e0   : > { %6212 = vmatprep.subr.bf16.mxu1 %v7784_v19  ;;  %v7868_v19 = vld [vmem:[#allocation8 + $0x66c] ss:$16 sps:$4 sm:$0xff]  }
 0x3e2   : > { %6172 = vmatpush1.bf16.msra.mxu0 %v7779_v29  ;;  %v7866_v29 = vld [vmem:[#allocation8 + $0x668] ss:$16 sps:$4 sm:$0xff]  }
 0x3e3   : > { %6213 = vmatpush1.bf16.msra.mxu1 %v7782_v48  ;;  %6173 = vmatprep.subr.bf16.mxu0 %v7787_v49  ;;  %v7871_v48 = vld [vmem:[#allocation8 + $0x44c] ss:$16 sps:$4 sm:$0xff]  }
 0x3e4   : > { %6214 = vmatprep.subr.bf16.mxu1 %v7790_v63  ;;  %v7874_v49 = vld [vmem:[#allocation8 + $0x64c] ss:$16 sps:$4 sm:$0xff]   ;;  %v7869_v63 = vld [vmem:[#allocation8 + $0x448] ss:$16 sps:$4 sm:$0xff]  }
 0x3e6   : > { %6174 = vmatpush1.bf16.msra.mxu0 %v7785_v54  ;;  %v7872_v54 = vld [vmem:[#allocation8 + $0x648] ss:$16 sps:$4 sm:$0xff]  }
 0x3e7   : > { %6215 = vmatpush1.bf16.msra.mxu1 %v7788_v34  ;;  %6175 = vmatprep.subr.bf16.mxu0 %v7793_v51  ;;  %v7877_v34 = vld [vmem:[#allocation8 + $0x42c] ss:$16 sps:$4 sm:$0xff]  }
 0x3e8   : > { %6216 = vmatprep.subr.bf16.mxu1 %v7796_v25  ;;  %v7880_v51 = vld [vmem:[#allocation8 + $0x62c] ss:$16 sps:$4 sm:$0xff]   ;;  %v7875_v25 = vld [vmem:[#allocation8 + $0x428] ss:$16 sps:$4 sm:$0xff]  }
 0x3ea   : > { %6176 = vmatpush2.bf16.msra.mxu0 %v7791_v61  ;;  %v7878_v61 = vld [vmem:[#allocation8 + $0x628] ss:$16 sps:$4 sm:$0xff]  }
 0x3eb   : > { %6217 = vmatpush2.bf16.msra.mxu1 %v7794_v62  ;;  %6177 = vmatprep.subr.bf16.mxu0 %v7799_v0  ;;  %v7883_v62 = vld [vmem:[#allocation8 + $0x40c] ss:$16 sps:$4 sm:$0xff]  }
 0x3ec   : > { %6218 = vmatprep.subr.bf16.mxu1 %v7802_v2  ;;  %v7886_v0 = vld [vmem:[#allocation8 + $0x60c] ss:$16 sps:$4 sm:$0xff]   ;;  %v7881_v2 = vld [vmem:[#allocation8 + $0x408] ss:$16 sps:$4 sm:$0xff]  }
 0x3ee   : > { %6178 = vmatpush2.bf16.msra.mxu0 %v7797_v4  ;;  %v7884_v4 = vld [vmem:[#allocation8 + $0x608] ss:$16 sps:$4 sm:$0xff]  }
 0x3ef   : > { %6219 = vmatpush2.bf16.msra.mxu1 %v7800_v38  ;;  %6179 = vmatprep.subr.bf16.mxu0 %v7805_v14  ;;  %v7889_v38 = vld [vmem:[#allocation8 + $0x5ec] ss:$16 sps:$4 sm:$0xff]  }
 0x3f0   : > { %6220 = vmatprep.subr.bf16.mxu1 %v7808_v17  ;;  %v7892_v14 = vld [vmem:[#allocation8 + $0x7ec] ss:$16 sps:$4 sm:$0xff]   ;;  %v7887_v17 = vld [vmem:[#allocation8 + $0x5e8] ss:$16 sps:$4 sm:$0xff]  }
 0x3f2   : > { %6180 = vmatpush2.bf16.msra.mxu0 %v7803_v8  ;;  %v7890_v8 = vld [vmem:[#allocation8 + $0x7e8] ss:$16 sps:$4 sm:$0xff]  }
 0x3f3   : > { %6221 = vmatpush2.bf16.msra.mxu1 %v7806_v9  ;;  %6181 = vmatprep.subr.bf16.mxu0 %v7811_v33  ;;  %v7895_v9 = vld [vmem:[#allocation8 + $0x5cc] ss:$16 sps:$4 sm:$0xff]  }
 0x3f4   : > { %6222 = vmatprep.subr.bf16.mxu1 %v7814_v11  ;;  %v7898_v33 = vld [vmem:[#allocation8 + $0x7cc] ss:$16 sps:$4 sm:$0xff]   ;;  %v7893_v11 = vld [vmem:[#allocation8 + $0x5c8] ss:$16 sps:$4 sm:$0xff]  }
 0x3f6   : > { %6182 = vmatpush2.bf16.msra.mxu0 %v7809_v15  ;;  %v7896_v15 = vld [vmem:[#allocation8 + $0x7c8] ss:$16 sps:$4 sm:$0xff]  }
 0x3f7   : > { %6223 = vmatpush2.bf16.msra.mxu1 %v7812_v18  ;;  %6183 = vmatprep.subr.bf16.mxu0 %v7817_v26  ;;  %v7901_v18 = vld [vmem:[#allocation8 + $0x5ac] ss:$16 sps:$4 sm:$0xff]  }
 0x3f8   : > { %6224 = vmatprep.subr.bf16.mxu1 %v7820_v28  ;;  %v7904_v26 = vld [vmem:[#allocation8 + $0x7ac] ss:$16 sps:$4 sm:$0xff]   ;;  %v7899_v28 = vld [vmem:[#allocation8 + $0x5a8] ss:$16 sps:$4 sm:$0xff]  }
 0x3fa   : > { %6184 = vmatpush2.bf16.msra.mxu0 %v7815_v31  ;;  %v7902_v31 = vld [vmem:[#allocation8 + $0x7a8] ss:$16 sps:$4 sm:$0xff]  }
 0x3fb   : > { %6225 = vmatpush2.bf16.msra.mxu1 %v7818_v32  ;;  %6185 = vmatprep.subr.bf16.mxu0 %v7823_v21  ;;  %v7907_v32 = vld [vmem:[#allocation8 + $0x58c] ss:$16 sps:$4 sm:$0xff]  }
 0x3fc   : > { %6226 = vmatprep.subr.bf16.mxu1 %v7826_v22  ;;  %v7910_v21 = vld [vmem:[#allocation8 + $0x78c] ss:$16 sps:$4 sm:$0xff]   ;;  %v7905_v22 = vld [vmem:[#allocation8 + $0x588] ss:$16 sps:$4 sm:$0xff]  }
 0x3fe   : > { %6186 = vmatpush2.bf16.msra.mxu0 %v7821_v41  ;;  %v7908_v41 = vld [vmem:[#allocation8 + $0x788] ss:$16 sps:$4 sm:$0xff]  }
 0x3ff   : > { %6227 = vmatpush2.bf16.msra.mxu1 %v7824_v46  ;;  %6187 = vmatprep.subr.bf16.mxu0 %v7829_v24  ;;  %v7913_v46 = vld [vmem:[#allocation8 + $0x56c] ss:$16 sps:$4 sm:$0xff]  }
 0x400   : > { %6228 = vmatprep.subr.bf16.mxu1 %v7832_v5  ;;  %v7916_v24 = vld [vmem:[#allocation8 + $0x76c] ss:$16 sps:$4 sm:$0xff]   ;;  %v7911_v5 = vld [vmem:[#allocation8 + $0x568] ss:$16 sps:$4 sm:$0xff]  }
 0x402   : > { %6188 = vmatpush2.bf16.msra.mxu0 %v7827_v12  ;;  %v7914_v12 = vld [vmem:[#allocation8 + $0x768] ss:$16 sps:$4 sm:$0xff]  }
 0x403   : > { %6229 = vmatpush2.bf16.msra.mxu1 %v7830_v53  ;;  %6189 = vmatprep.subr.bf16.mxu0 %v7835_v1  ;;  %v7919_v53 = vld [vmem:[#allocation8 + $0x54c] ss:$16 sps:$4 sm:$0xff]  }
 0x404   : > { %6230 = vmatprep.subr.bf16.mxu1 %v7838_v27  ;;  %v7922_v1 = vld [vmem:[#allocation8 + $0x74c] ss:$16 sps:$4 sm:$0xff]   ;;  %v7917_v27 = vld [vmem:[#allocation8 + $0x548] ss:$16 sps:$4 sm:$0xff]  }
 0x406   : > { %6190 = vmatpush2.bf16.msra.mxu0 %v7833_v7  ;;  %v7920_v7 = vld [vmem:[#allocation8 + $0x748] ss:$16 sps:$4 sm:$0xff]  }
 0x407   : > { %6231 = vmatpush2.bf16.msra.mxu1 %v7836_v47  ;;  %6241 = vmatprep.subr.bf16.mxu0 %v7841_v30  ;;  %v7925_v47 = vld [vmem:[#allocation8 + $0x52c] ss:$16 sps:$4 sm:$0xff]  }
 0x408   : > { %6282 = vmatprep.subr.bf16.mxu1 %v7844_v35  ;;  %v7928_v30 = vld [vmem:[#allocation8 + $0x72c] ss:$16 sps:$4 sm:$0xff]   ;;  %v7923_v35 = vld [vmem:[#allocation8 + $0x528] ss:$16 sps:$4 sm:$0xff]  }
 0x409   : > { %6192 = vmatmul.mubr.bf16.vlgmr.msra.gmra.mxu0 %v8634_v39  ;;  %v7854_v39 = vld [vmem:[#allocation8 + $0x6a8] ss:$16 sps:$4 sm:$0xff]  }
 0x40a   : > { %6233 = vmatmul.mubr.bf16.vlgmr.msra.gmra.mxu1 %v8636_v6  ;;  %6242 = vmatpush1.bf16.msra.mxu0 %v7839_v20  ;;  %v7862_v6 = vld [vmem:[#allocation8 + $0x68c] ss:$16 sps:$4 sm:$0xff]   ;;  %v7926_v20 = vld [vmem:[#allocation8 + $0x728] ss:$16 sps:$4 sm:$0xff]  }
 0x40b   : > { %6273 = vmatprep.mubr.bf16.mxu0 %v8642_v10  ;;  %6283 = vmatpush1.bf16.msra.mxu1 %v7842_v36  ;;  %v7860_v10 = vld [vmem:[#allocation8 + $0x688] ss:$16 sps:$4 sm:$0xff]   ;;  %v7931_v36 = vld [vmem:[#allocation8 + $0x50c] ss:$16 sps:$4 sm:$0xff]  }
 0x40c   : > { %6314 = vmatprep.mubr.bf16.mxu1 %v8644_v58  ;;  %6243 = vmatprep.subr.bf16.mxu0 %v7847_v60  ;;  %v7863_v58 = vld [vmem:[#allocation8 + $0x468] ss:$16 sps:$4 sm:$0xff]   ;;  %v7934_v60 = vld [vmem:[#allocation8 + $0x70c] ss:$16 sps:$4 sm:$0xff]  }
 0x40d   : > { %6284 = vmatprep.subr.bf16.mxu1 %v7850_v37  ;;  %v7929_v37 = vld [vmem:[#allocation8 + $0x508] ss:$16 sps:$4 sm:$0xff]  }
 0x40e   : > { %6244 = vmatpush1.bf16.msra.mxu0 %v7845_v57  ;;  %v7932_v57 = vld [vmem:[#allocation8 + $0x708] ss:$16 sps:$4 sm:$0xff]  }
 0x40f   : > { %6285 = vmatpush1.bf16.msra.mxu1 %v7848_v16  ;;  %6245 = vmatprep.subr.bf16.mxu0 %v7853_v40 }
 0x410   : > { %6286 = vmatprep.subr.bf16.mxu1 %v7856_v42 }
 0x412   : > { %6246 = vmatpush1.bf16.msra.mxu0 %v7851_v13 }
 0x413   : > { %6287 = vmatpush1.bf16.msra.mxu1 %v7854_v39  ;;  %6247 = vmatprep.subr.bf16.mxu0 %v7859_v43 }
 0x414   : > { %6288 = vmatprep.subr.bf16.mxu1 %v7862_v6 }
 0x416   : > { %6248 = vmatpush1.bf16.msra.mxu0 %v7857_v44 }
 0x417   : > { %6289 = vmatpush1.bf16.msra.mxu1 %v7860_v10  ;;  %6249 = vmatprep.subr.bf16.mxu0 %v7865_v45 }
 0x418   : > { %6290 = vmatprep.subr.bf16.mxu1 %v7868_v19 }
 0x41a   : > { %6250 = vmatpush1.bf16.msra.mxu0 %v7863_v58 }
 0x41b   : > { %6291 = vmatpush1.bf16.msra.mxu1 %v7866_v29  ;;  %6251 = vmatprep.subr.bf16.mxu0 %v7871_v48 }
 0x41c   : > { %6292 = vmatprep.subr.bf16.mxu1 %v7874_v49 }
 0x41e   : > { %6252 = vmatpush1.bf16.msra.mxu0 %v7869_v63 }
 0x41f   : > { %6293 = vmatpush1.bf16.msra.mxu1 %v7872_v54  ;;  %6253 = vmatprep.subr.bf16.mxu0 %v7877_v34 }
 0x420   : > { %6294 = vmatprep.subr.bf16.mxu1 %v7880_v51 }
 0x422   : > { %6254 = vmatpush1.bf16.msra.mxu0 %v7875_v25 }
 0x423   : > { %6295 = vmatpush1.bf16.msra.mxu1 %v7878_v61  ;;  %6255 = vmatprep.subr.bf16.mxu0 %v7883_v62 }
 0x424   : > { %6296 = vmatprep.subr.bf16.mxu1 %v7886_v0 }
 0x426   : > { %6256 = vmatpush1.bf16.msra.mxu0 %v7881_v2 }
 0x427   : > { %6297 = vmatpush1.bf16.msra.mxu1 %v7884_v4  ;;  %6257 = vmatprep.subr.bf16.mxu0 %v7889_v38 }
 0x428   : > { %6298 = vmatprep.subr.bf16.mxu1 %v7892_v14 }
 0x42a   : > { %6258 = vmatpush2.bf16.msra.mxu0 %v7887_v17 }
 0x42b   : > { %6299 = vmatpush2.bf16.msra.mxu1 %v7890_v8  ;;  %6259 = vmatprep.subr.bf16.mxu0 %v7895_v9 }
 0x42c   : > { %6300 = vmatprep.subr.bf16.mxu1 %v7898_v33 }
 0x42e   : > { %6260 = vmatpush2.bf16.msra.mxu0 %v7893_v11 }
 0x42f   : > { %6301 = vmatpush2.bf16.msra.mxu1 %v7896_v15  ;;  %6261 = vmatprep.subr.bf16.mxu0 %v7901_v18 }
 0x430   : > { %6302 = vmatprep.subr.bf16.mxu1 %v7904_v26 }
 0x432   : > { %6262 = vmatpush2.bf16.msra.mxu0 %v7899_v28 }
 0x433   : > { %6303 = vmatpush2.bf16.msra.mxu1 %v7902_v31  ;;  %6263 = vmatprep.subr.bf16.mxu0 %v7907_v32 }
 0x434   : > { %6304 = vmatprep.subr.bf16.mxu1 %v7910_v21 }
 0x436   : > { %6264 = vmatpush2.bf16.msra.mxu0 %v7905_v22 }
 0x437   : > { %6305 = vmatpush2.bf16.msra.mxu1 %v7908_v41  ;;  %6265 = vmatprep.subr.bf16.mxu0 %v7913_v46 }
 0x438   : > { %6306 = vmatprep.subr.bf16.mxu1 %v7916_v24 }
 0x43a   : > { %6266 = vmatpush2.bf16.msra.mxu0 %v7911_v5 }
 0x43b   : > { %6307 = vmatpush2.bf16.msra.mxu1 %v7914_v12  ;;  %6267 = vmatprep.subr.bf16.mxu0 %v7919_v53 }
 0x43c   : > { %6308 = vmatprep.subr.bf16.mxu1 %v7922_v1 }
 0x43e   : > { %6268 = vmatpush2.bf16.msra.mxu0 %v7917_v27 }
 0x43f   : > { %6309 = vmatpush2.bf16.msra.mxu1 %v7920_v7  ;;  %6269 = vmatprep.subr.bf16.mxu0 %v7925_v47 }
 0x440   : > { %6310 = vmatprep.subr.bf16.mxu1 %v7928_v30 }
 0x442   : > { %6270 = vmatpush2.bf16.msra.mxu0 %v7923_v35 }
 0x443   : > { %6311 = vmatpush2.bf16.msra.mxu1 %v7926_v20  ;;  %6271 = vmatprep.subr.bf16.mxu0 %v7931_v36 }
 0x444   : > { %6312 = vmatprep.subr.bf16.mxu1 %v7934_v60 }
 0x446   : > { %6272 = vmatpush2.bf16.msra.mxu0 %v7929_v37 }
 0x447   : > { %6313 = vmatpush2.bf16.msra.mxu1 %v7932_v57 }
 0x449   : > { %6274 = vmatmul.mubr.bf16.vlgmr.msra.gmra.mxu0 %v8650_v55  ;;  %v6029_v16 = vpop.f32.mrf.mxu0  ;;  %v6070_v40 = vpop.f32.mrf.mxu1 }
 0x44a   : > { %6315 = vmatmul.mubr.bf16.vlgmr.msra.gmra.mxu1 %v8652_v23  ;;  %v6071_v42 = vadd.f32 %v6070_v40, %v6029_v16 }
 0x44b   : > { %v6031_v13 = vpop.f32.mrf.mxu0  ;;  %v6072_v39 = vpop.f32.mrf.mxu1 }
 0x44c   : > { %v6073_v43 = vadd.f32 %v6072_v39, %v6031_v13 }
 0x44d   : > { %v6033_v6 = vpop.f32.mrf.mxu0  ;;  %v6074_v44 = vpop.f32.mrf.mxu1 }
 0x44f   : > { %v6034_v10 = vpop.f32.mrf.mxu0  ;;  %v6075_v45 = vpop.f32.mrf.mxu1 }
 0x489   : > { %v6111_v19 = vpop.f32.mrf.mxu0  ;;  %v6152_v58 = vpop.f32.mrf.mxu1 }
 0x48a   : > { %v6112_v29 = vadd.f32 %v6111_v19, %v6071_v42 }
 0x48b   : > { %v6113_v48 = vpop.f32.mrf.mxu0  ;;  %v6154_v49 = vpop.f32.mrf.mxu1 }
 0x48c   : > { %v8664_v63 = vadd.f32 %v6152_v58, %v6112_v29  ;;  %v6114_v55 = vadd.f32 %v6113_v48, %v6073_v43 }
 0x48d   : > { %v6115_v54 = vpop.f32.mrf.mxu0  ;;  %v6156_v34 = vpop.f32.mrf.mxu1 }
 0x48e   : > { %v6323_v23 = vrot.slane %v8664_v63, 4  ;;  %v6351_v51 = vmul.f32 %v8664_v63, %v8664_v63  ;;  %v8669_v25 = vadd.f32 %v6154_v49, %v6114_v55 }
 0x48f   : > { %v6116_v61 = vpop.f32.mrf.mxu0  ;;  %v6157_v62 = vpop.f32.mrf.mxu1 }
 0x490   : > { %v6324_v0 = vadd.f32 %v6323_v23, %v8664_v63  ;;  %v6355_v2 = vrot.slane %v6351_v51, 4  ;;  %v6329_v4 = vrot.slane %v8669_v25, 4  ;;  %v6352_v38 = vmul.f32 %v8669_v25, %v8669_v25 }
 0x492   : > { %v6325_v14 = vrot.slane %v6324_v0, 2  ;;  %v6356_v17 = vadd.f32 %v6355_v2, %v6351_v51  ;;  %v6330_v8 = vadd.f32 %v6329_v4, %v8669_v25  ;;  %v6361_v9 = vrot.slane %v6352_v38, 4 }
 0x494   : > { %v6326_v33 = vadd.f32 %v6325_v14, %v6324_v0  ;;  %v6357_v11 = vrot.slane %v6356_v17, 2  ;;  %v6331_v15 = vrot.slane %v6330_v8, 2  ;;  %v6362_v18 = vadd.f32 %v6361_v9, %v6352_v38 }
 0x496   : > { %v6327_v26 = vrot.slane %v6326_v33, 1  ;;  %v6358_v28 = vadd.f32 %v6357_v11, %v6356_v17  ;;  %v6332_v31 = vadd.f32 %v6331_v15, %v6330_v8  ;;  %v6363_v32 = vrot.slane %v6362_v18, 2 }
 0x498   : > { %v6328_v21 = vadd.f32 %v6327_v26, %v6326_v33  ;;  %v6359_v22 = vrot.slane %v6358_v28, 1  ;;  %v6333_v41 = vrot.slane %v6332_v31, 1  ;;  %v6364_v46 = vadd.f32 %v6363_v32, %v6362_v18 }
 0x49a   : > { %v8676_v24 = vmul.f32 0.125, %v6328_v21  ;;  %v6360_v5 = vadd.f32 %v6359_v22, %v6358_v28  ;;  %v6334_v12 = vadd.f32 %v6333_v41, %v6332_v31  ;;  %v6365_v53 = vrot.slane %v6364_v46, 1 }
 0x49c   : > { %v6379_v1 = vmul.f32 0.125, %v6360_v5  ;;  %v6383_v27 = vmul.f32 %v8676_v24, %v8676_v24  ;;  %v8680_v7 = vmul.f32 0.125, %v6334_v12  ;;  %v6366_v47 = vadd.f32 %v6365_v53, %v6364_v46 }
 0x49e   : > { %v6387_v30 = vsub.f32 %v6379_v1, %v6383_v27  ;;  %v6380_v35 = vmul.f32 0.125, %v6366_v47  ;;  %v6384_v20 = vmul.f32 %v8680_v7, %v8680_v7 }
 0x4a0   : > { %v6391_v36 = vmax.f32 %v6387_v30, 0.0  ;;  %v6388_v60 = vsub.f32 %v6380_v35, %v6384_v20 }
 0x4a2   : > { %v6396_v37 = vadd.f32 1e-05, %v6391_v36  ;;  %v6392_v57 = vmax.f32 %v6388_v60, 0.0 }
 0x4a4   : > { %v6397_v16 = vadd.f32 1e-05, %v6392_v57  ;;  %7951 = vrsqrt.f32 %v6396_v37 }
 0x4a6   : > { %7953 = vrsqrt.f32 %v6397_v16 }
 0x4b1   : > { %v8684_v40 = vpop.eup %7951 }
 0x4b3   : > { %v8686_v42 = vpop.eup %7953 }
 0x4b4   : > { %v6408_v13 = vcombine.low %v8684_v40, %v8686_v42 }
 0x4c9   : > { %v6193_v39 = vpop.f32.mrf.mxu0 }
 0x4ca   : > { %v6234_v43 = vpop.f32.mrf.mxu1 }
 0x4cb   : > { %v6195_v6 = vpop.f32.mrf.mxu0  ;;  %v6235_v29 = vadd.f32 %v6234_v43, %v6193_v39 }
 0x4cc   : > { %v6236_v44 = vpop.f32.mrf.mxu1 }
 0x4cd   : > { %v6197_v10 = vpop.f32.mrf.mxu0  ;;  %v6237_v49 = vadd.f32 %v6236_v44, %v6195_v6 }
 0x4ce   : > { %v6238_v45 = vpop.f32.mrf.mxu1 }
 0x4cf   : > { %v6198_v19 = vpop.f32.mrf.mxu0 }
 0x4d0   : > { %v6239_v58 = vpop.f32.mrf.mxu1 }
 0x509   : > { %v6275_v48 = vpop.f32.mrf.mxu0 }
 0x50a   : > { %v6276_v55 = vadd.f32 %v6275_v48, %v6235_v29  ;;  %v6316_v54 = vpop.f32.mrf.mxu1 }
 0x50b   : > { %v6277_v34 = vpop.f32.mrf.mxu0 }
 0x50c   : > { %v8690_v23 = vadd.f32 %v6316_v54, %v6276_v55  ;;  %v6278_v51 = vadd.f32 %v6277_v34, %v6237_v49  ;;  %v6318_v61 = vpop.f32.mrf.mxu1  ;;  %v6416_v55 = vrot.slane %v6408_v13, %v8531_v3 }
 0x50d   : > { %v6279_v62 = vpop.f32.mrf.mxu0 }
 0x50e   : > { %v6335_v0 = vrot.slane %v8690_v23, 4  ;;  %v6353_v2 = vmul.f32 %v8690_v23, %v8690_v23  ;;  %v8695_v4 = vadd.f32 %v6318_v61, %v6278_v51  ;;  %v6320_v38 = vpop.f32.mrf.mxu1  ;;  %v6395_v51 = vld [vmem:[#allocation10] ss:$2 sm:$0xf] }
 0x50f   : > { %v6280_v14 = vpop.f32.mrf.mxu0 }
 0x510   : > { %v6336_v17 = vadd.f32 %v6335_v0, %v8690_v23  ;;  %v6367_v8 = vrot.slane %v6353_v2, 4  ;;  %v6341_v9 = vrot.slane %v8695_v4, 4  ;;  %v6354_v33 = vmul.f32 %v8695_v4, %v8695_v4  ;;  %v6321_v11 = vpop.f32.mrf.mxu1 }
 0x512   : > { %v6337_v15 = vrot.slane %v6336_v17, 2  ;;  %v6368_v18 = vadd.f32 %v6367_v8, %v6353_v2  ;;  %v6342_v26 = vadd.f32 %v6341_v9, %v8695_v4  ;;  %v6373_v28 = vrot.slane %v6354_v33, 4 }
 0x514   : > { %v6338_v31 = vadd.f32 %v6337_v15, %v6336_v17  ;;  %v6369_v32 = vrot.slane %v6368_v18, 2  ;;  %v6343_v21 = vrot.slane %v6342_v26, 2  ;;  %v6374_v22 = vadd.f32 %v6373_v28, %v6354_v33 }
 0x516   : > { %v6339_v41 = vrot.slane %v6338_v31, 1  ;;  %v6370_v46 = vadd.f32 %v6369_v32, %v6368_v18  ;;  %v6344_v5 = vadd.f32 %v6343_v21, %v6342_v26  ;;  %v6375_v12 = vrot.slane %v6374_v22, 2 }
 0x518   : > { %v6340_v53 = vadd.f32 %v6339_v41, %v6338_v31  ;;  %v6371_v1 = vrot.slane %v6370_v46, 1  ;;  %v6345_v27 = vrot.slane %v6344_v5, 1  ;;  %v6376_v47 = vadd.f32 %v6375_v12, %v6374_v22 }
 0x51a   : > { %v6349_v30 = vmul.f32 0.125, %v6340_v53  ;;  %v6372_v35 = vadd.f32 %v6371_v1, %v6370_v46  ;;  %v6346_v20 = vadd.f32 %v6345_v27, %v6344_v5  ;;  %v6377_v36 = vrot.slane %v6376_v47, 1 }
 0x51c   : > { %v6381_v60 = vmul.f32 0.125, %v6372_v35  ;;  %v6385_v37 = vmul.f32 %v6349_v30, %v6349_v30  ;;  %v6350_v57 = vmul.f32 0.125, %v6346_v20  ;;  %v6378_v16 = vadd.f32 %v6377_v36, %v6376_v47 }
 0x51e   : > { %v6389_v39 = vsub.f32 %v6381_v60, %v6385_v37  ;;  %v6382_v43 = vmul.f32 0.125, %v6378_v16  ;;  %v6386_v6 = vmul.f32 %v6350_v57, %v6350_v57 }
 0x520   : > { %v6393_v44 = vmax.f32 %v6389_v39, 0.0  ;;  %v6390_v10 = vsub.f32 %v6382_v43, %v6386_v6 }
 0x522   : > { %v6398_v45 = vadd.f32 1e-05, %v6393_v44  ;;  %v6394_v19 = vmax.f32 %v6390_v10, 0.0 }
 0x524   : > { %v6399_v58 = vadd.f32 1e-05, %v6394_v19  ;;  %7955 = vrsqrt.f32 %v6398_v45 }
 0x526   : > { %7957 = vrsqrt.f32 %v6399_v58 }
 0x531   : > { %v7956_v29 = vpop.eup %7955 }
 0x533   : > { %v7958_v48 = vpop.eup %7957 }
 0x534   : > { %v6409_v49 = vcombine.low %v7956_v29, %v7958_v48 }
 0x536   : > { %v6423_v54 = vrot.slane %v6409_v49, %v8531_v3 }
 0x538   : > { %v6424_v34 = vcombine.low %v6416_v55, %v6423_v54 }
 0x53a   : > { %v6431_v61 = vrot.slane %v6424_v34, %v8531_v3 }
 0x53c   : > { %v6433_v62 = vmul.f32 %v6431_v61, %v6395_v51 }
 0x53e   : > { %v6440_v0 = vrot.slane %v6433_v62, %v8583_v50  ;;  %v6444_v2 = vrot.slane %v6433_v62, %v8586_v52  ;;  %v6448_v38 = vrot.slane %v6433_v62, %v8589_v59  ;;  %v6452_v14 = vrot.slane %v6433_v62, %v8592_v56 }
 0x540   : > { %v6457_v17 = vmul.f32 %v6440_v0, %v8676_v24  ;;  %v6458_v40 = vmul.f32 %v6444_v2, %v8680_v7  ;;  %v6459_v42 = vmul.f32 %v6448_v38, %v6349_v30  ;;  %v6460_v13 = vmul.f32 %v6452_v14, %v6350_v57  ;;  %v6435_v24 = vld [vmem:[#allocation10 + $0x1] ss:$2 sm:$0xf] }
 0x541   : > { %v6493_v8 = vmul.f32 %v6448_v38, %v8690_v23  ;;  %v6491_v9 = vmul.f32 %v6440_v0, %v8664_v63  ;;  %v6492_v33 = vmul.f32 %v6444_v2, %v8669_v25  ;;  %v6494_v32 = vmul.f32 %v6452_v14, %v8695_v4 }
 0x542   : > { %v6465_v11 = vcombine.low %v6457_v17, %v6458_v40  ;;  %v6466_v15 = vcombine.low %v6459_v42, %v6460_v13 }
 0x544   : > { %v6473_v18 = vrot.slane %v6465_v11, %v8531_v3  ;;  %v6480_v26 = vrot.slane %v6466_v15, %v8531_v3 }
 0x546   : > { %v6481_v28 = vcombine.low %v6473_v18, %v6480_v26 }
 0x548   : > { %v6488_v7 = vrot.slane %v6481_v28, %v8531_v3 }
 0x54a   : > { %v6490_v31 = vsub.f32 %v6435_v24, %v6488_v7 }
 0x54c   : > { %v6511_v23 = vrot.slane %v6490_v31, %v8592_v56  ;;  %v6499_v63 = vrot.slane %v6490_v31, %v8583_v50  ;;  %v6503_v21 = vrot.slane %v6490_v31, %v8586_v52  ;;  %v6507_v25 = vrot.slane %v6490_v31, %v8589_v59 }
 0x54e   : > { %v6519_v22 = vadd.f32 %v6511_v23, %v6494_v32  ;;  %v6516_v41 = vadd.f32 %v6499_v63, %v6491_v9  ;;  %v6517_v3 = vadd.f32 %v6503_v21, %v6492_v33  ;;  %v6518_v46 = vadd.f32 %v6507_v25, %v6493_v8 }
 0x550   : > { %v6523_v5 = vmax.f32 %v6519_v22, 0.0  ;;  %v6520_v4 = vmax.f32 %v6516_v41, 0.0  ;;  %v6521_v12 = vmax.f32 %v6517_v3, 0.0  ;;  %v6522_v56 = vmax.f32 %v6518_v46, 0.0 }
 0x552   : > { %6524 = vst [vmem:[%s294_s11] sm:$0xff] %v6520_v4  ;;  %6525 = vst [vmem:[%s294_s11 + $0x8] sm:$0xff] %v6521_v12 }
 0x553   : > { %6526 = vst [vmem:[%s294_s11 + $0x10] sm:$0xff] %v6522_v56  ;;  %6527 = vst [vmem:[%s294_s11 + $0x18] sm:$0xff] %v6523_v5 }
 0x554   : > { %8104 = shalt.err (!%p8101_p11)
}
 0x555   : > { %s8105_s22 = scalar_lea.hbm %s8731_s6, 512  ;;  %s8109_s7 = scalar_lea.hbm %s8779_s5, 1024 }
 0x556   : > { %p8106_p13 = scmp.ne.s32.totalorder %s8731_s6, %s8105_s22  ;;  %p8110_p4 = scmp.lt.s32.totalorder %s8731_s6, %s8779_s5 }
 0x557   : > { %p8111_p6 = scmp.lt.s32.totalorder %s8109_s7, %s8105_s22 }
 0x558   : > { %p8107_p1 = pnand %p8106_p13, %p8797_p7 }
 0x559   : > { %p8112_p2 = por %p8111_p6, %p8110_p4 }
 0x55a   : > { %p8108_p3 = pneg %p8107_p1 }
 0x55c   : > { %p8113_p8 = pnand %p8112_p2, %p8108_p3 }
 0x55e   : > { %8116 = shalt.err (!%p8113_p8)
}
 0x55f   : > { %7469 = dma.vmem_to_hbm [thread:$0]  (%p8797_p7), %s8733_s23, 512, %s8731_s6, %s6529_s24  }
 0x560 PF: > { %s6555_s25 = sand.u32 1, %s8151_s18   ;;  %p8798_p10 = scmp.ne.s32.totalorder %s8789_s14, 0 }
 0x561   : > { %p8799_p0 = scmp.ge.s32.totalorder %s8163_s21, 2  ;;  %s6556_s11 = scalar_lea.sflag [#allocation4], %s6555_s25 }
 0x563   : > { %p7489_p12 = pnand %p8799_p0, %p8798_p10 }
 0x565   : > { %p7490_p5 = pneg %p7489_p12 }
 0x567   : > { %8146 = dma.done.wait (%p7490_p5), %s6556_s11, 512  }
 0x568   : > { %8148 = vsyncadd (%p7490_p5), %s6556_s11, 4294966784  ;;  %p20_p9 = scmp.ge.s32.totalorder %s8291_s28, 4   ;;  %s8800_s18 = smov %s8155_s19 }
 0x569   : > { %s8801_s19 = smov %s8159_s20  ;;  %s8802_s20 = smov %s8302_s9 }
 0x56a   : > { %s8803_s21 = smov %s8291_s28  ;;  %22 = sbr.rel (!%p20_p9) target bundleno = 7 (0x7), region = 103 }
 0x56f   :  { %6561 = vsyncpa [#allocation3], 1 }
 0x570   :  { %6563 = vsyncpa [#allocation3 + $0x1], 1 }
 0x571   :  { %6564 = vsyncpa [#allocation6], 1 }
 0x572   :  { %6565 = vsyncpa [#allocation9], 1 }
 0x573   :  { %6566 = vsyncpa [#allocation4], 1 }
 0x574   :  { %6568 = vsyncpa [#allocation4 + $0x1], 1 }

</bundles_post_ra>
